<compile_context>
chip_gen: v6e
topology: v6e:2x2x1
jax: 0.10.0
libtpu: 0.0.40
codegen_flags: <defaults>
</compile_context>

<pallas_src>
import jax
import jax.numpy as jnp
from jax import lax
from jax.experimental import pallas as pl
from jax.experimental.pallas import tpu as pltpu

# --- small, TPU-friendly configuration consistent with the module structure ---
N_EMBED = 128               # module hardcodes 384; scaled down, same semantics
N_HEAD = 4
HEAD_SIZE = N_EMBED // N_HEAD
HIDDEN = 4 * N_EMBED
LN_EPS = 1e-5


def _layernorm(x, gamma, beta):
    mu = jnp.mean(x, axis=-1, keepdims=True)
    var = jnp.mean(jnp.square(x - mu), axis=-1, keepdims=True)
    return (x - mu) * lax.rsqrt(var + LN_EPS) * gamma + beta


def block_kernel(x_ref,
                 wqkv_ref, wo_ref, bo_ref,
                 g1_ref, b1_ref, g2_ref, b2_ref,
                 w1_ref, bf1_ref, w2_ref, bf2_ref,
                 o_ref):
    xb = x_ref[...]                              # (BC, T, C) float32
    BC, T, C = xb.shape
    x = xb.reshape(BC * T, C)                    # (M, C); layout-preserving merge

    # ---------------- LayerNorm 1 (f32) ----------------
    xn = _layernorm(x, g1_ref[...], b1_ref[...])

    # ---------------- fused QKV projection (bf16 x bf16 -> f32 acc) ----------------
    qkv = jnp.dot(xn.astype(jnp.bfloat16), wqkv_ref[...],
                  preferred_element_type=jnp.float32)            # (M, 3C)

    # causal mask built once per kernel invocation
    row = lax.broadcasted_iota(jnp.int32, (T, T), 0)
    col = lax.broadcasted_iota(jnp.int32, (T, T), 1)
    causal = row >= col
    neg_big = jnp.float32(-1e30)

    wo = wo_ref[...]                             # (C, C) bf16, resident in VMEM

    # ---------------- multi-head causal self-attention ----------------
    # Output projection fused into the head loop:
    #   sa = sum_h  head_out_h @ wo[h*hs:(h+1)*hs, :]
    nt_dims = (((1,), (1,)), ((), ()))           # contract last dims: q @ k^T
    sa_blocks = []
    for b in range(BC):                          # static unroll over batch rows
        r = slice(b * T, (b + 1) * T)
        sa_b = jnp.zeros((T, C), jnp.float32)
        for h in range(N_HEAD):                  # static unroll over heads
            c0 = h * HEAD_SIZE
            qh = qkv[r, c0:c0 + HEAD_SIZE].astype(jnp.bfloat16)   # scale folded into wq
            kh = qkv[r, C + c0:C + c0 + HEAD_SIZE].astype(jnp.bfloat16)
            vh = qkv[r, 2 * C + c0:2 * C + c0 + HEAD_SIZE].astype(jnp.bfloat16)

            s = lax.dot_general(qh, kh, nt_dims,
                                preferred_element_type=jnp.float32)   # (T, T)
            s = jnp.where(causal, s, neg_big)
            s = s - jnp.max(s, axis=-1, keepdims=True)
            p = jnp.exp(s)
            p = p * pl.reciprocal(jnp.sum(p, axis=-1, keepdims=True), approx=True)

            head = jnp.dot(p.astype(jnp.bfloat16), vh,
                           preferred_element_type=jnp.float32)        # (T, hs)
            sa_b = sa_b + jnp.dot(head.astype(jnp.bfloat16),
                                  wo[c0:c0 + HEAD_SIZE, :],
                                  preferred_element_type=jnp.float32)
        sa_blocks.append(sa_b)
    sa = jnp.concatenate(sa_blocks, axis=0)                           # (M, C)

    x1 = x + sa + bo_ref[...]                    # first residual (f32)

    # ---------------- LayerNorm 2 + FeedForward ----------------
    xn2 = _layernorm(x1, g2_ref[...], b2_ref[...])

    hdn = jnp.dot(xn2.astype(jnp.bfloat16), w1_ref[...],
                  preferred_element_type=jnp.float32) + bf1_ref[...]
    hdn = jnp.maximum(hdn, 0.0)                  # ReLU
    ff = jnp.dot(hdn.astype(jnp.bfloat16), w2_ref[...],
                 preferred_element_type=jnp.float32) + bf2_ref[...]

    o_ref[...] = (x1 + ff).reshape(BC, T, C)     # second residual


def pack_params(wq, wk, wv, wo, bo, g1, b1, g2, b2, w1, bf1, w2, bf2):
    """Fuse QKV, fold the attention scale into wq, cast matmul weights to bf16."""
    scale = jnp.float32(N_EMBED) ** jnp.float32(-0.5)   # torch uses C ** -0.5 (C = n_embed)
    wqkv = jnp.concatenate([wq * scale, wk, wv], axis=1).astype(jnp.bfloat16)
    return (wqkv, wo.astype(jnp.bfloat16), bo,
            g1, b1, g2, b2,
            w1.astype(jnp.bfloat16), bf1, w2.astype(jnp.bfloat16), bf2)


def transformer_block(x, packed_params, *, batch_chunk=None):
    B, T, C = x.shape
    if batch_chunk is None:
        # Fully fold the batch (single grid step) — optimal on single-TC v5e/v6e.
        # On v7x (2 TensorCores) prefer batch_chunk = B // 2 so the 'parallel'
        # grid axis is sharded across both cores.
        batch_chunk = B
    assert B % batch_chunk == 0

    in_specs = [pl.BlockSpec((batch_chunk, T, C), lambda i: (i, 0, 0))]
    in_specs += [pl.BlockSpec(p.shape, lambda i: (0, 0)) for p in packed_params]

    return pl.pallas_call(
        block_kernel,
        out_shape=jax.ShapeDtypeStruct((B, T, C), jnp.float32),
        grid_spec=pltpu.PrefetchScalarGridSpec(
            num_scalar_prefetch=0,
            grid=(B // batch_chunk,),
            in_specs=in_specs,
            out_specs=pl.BlockSpec((batch_chunk, T, C), lambda i: (i, 0, 0)),
        ),
        compiler_params=pltpu.CompilerParams(
            dimension_semantics=("parallel",),
            vmem_limit_bytes=64 * 1024 * 1024,
        ),
    )(x, *packed_params)


def reference_block(x, params):
    """Pure-JAX f32 reference mirroring the PyTorch forward (dropout = identity)."""
    (wq, wk, wv, wo, bo, g1, b1, g2, b2, w1, bf1, w2, bf2) = params
    B, T, C = x.shape

    def ln(z, g, b):
        mu = jnp.mean(z, -1, keepdims=True)
        var = jnp.mean(jnp.square(z - mu), -1, keepdims=True)
        return (z - mu) / jnp.sqrt(var + LN_EPS) * g + b

    xn = ln(x, g1, b1)
    q = xn @ wq
    k = xn @ wk
    v = xn @ wv
    q = q.reshape(B, T, N_HEAD, HEAD_SIZE).transpose(0, 2, 1, 3)
    k = k.reshape(B, T, N_HEAD, HEAD_SIZE).transpose(0, 2, 1, 3)
    v = v.reshape(B, T, N_HEAD, HEAD_SIZE).transpose(0, 2, 1, 3)
    wei = jnp.einsum("bhqd,bhkd->bhqk", q, k) * (C ** -0.5)   # NOTE: C = n_embed, as in torch code
    mask = jnp.tril(jnp.ones((T, T), bool))
    wei = jnp.where(mask, wei, -jnp.inf)
    wei = jax.nn.softmax(wei, axis=-1)
    att = jnp.einsum("bhqk,bhkd->bhqd", wei, v)
    att = att.transpose(0, 2, 1, 3).reshape(B, T, C)
    x1 = x + (att @ wo + bo)
    xn2 = ln(x1, g2, b2)
    ff = jnp.maximum(xn2 @ w1 + bf1, 0.0) @ w2 + bf2
    return x1 + ff


if __name__ == "__main__":
    B, T, C = 2, 64, N_EMBED
    key = jax.random.PRNGKey(0)
    keys = jax.random.split(key, 10)

    s = 0.02
    wq = jax.random.normal(keys[0], (C, C), jnp.float32) * s
    wk = jax.random.normal(keys[1], (C, C), jnp.float32) * s
    wv = jax.random.normal(keys[2], (C, C), jnp.float32) * s
    wo = jax.random.normal(keys[3], (C, C), jnp.float32) * s
    bo = jax.random.normal(keys[4], (1, C), jnp.float32) * s
    g1 = jnp.ones((1, C), jnp.float32)
    b1 = jnp.zeros((1, C), jnp.float32)
    g2 = jnp.ones((1, C), jnp.float32)
    b2 = jnp.zeros((1, C), jnp.float32)
    w1 = jax.random.normal(keys[5], (C, HIDDEN), jnp.float32) * s
    bf1 = jax.random.normal(keys[6], (1, HIDDEN), jnp.float32) * s
    w2 = jax.random.normal(keys[7], (HIDDEN, C), jnp.float32) * s
    bf2 = jax.random.normal(keys[8], (1, C), jnp.float32) * s
    params_f32 = (wq, wk, wv, wo, bo, g1, b1, g2, b2, w1, bf1, w2, bf2)
    packed = pack_params(*params_f32)

    x = jax.random.normal(keys[9], (B, T, C), jnp.float32)

    out = transformer_block(x, packed)
    out = jax.block_until_ready(out)

    ref = reference_block(x, params_f32)
    assert out.shape == (B, T, C)
    # bf16 matmul operands (f32 accumulation) vs pure-f32 reference -> looser tolerance.
    assert jnp.allclose(out, ref, rtol=2e-2, atol=2e-2), "mismatch vs reference"

    print("KERNEL_OK")
</pallas_src>

<mosaic_0001>
module attributes {stable_mosaic.version = 11 : i64} {
  func.func @block_kernel(%arg0: i32, %arg1: memref<2x64x128xf32, #tpu.memory_space<vmem>>, %arg2: memref<128x384xbf16, #tpu.memory_space<vmem>>, %arg3: memref<128x128xbf16, #tpu.memory_space<vmem>>, %arg4: memref<1x128xf32, #tpu.memory_space<vmem>>, %arg5: memref<1x128xf32, #tpu.memory_space<vmem>>, %arg6: memref<1x128xf32, #tpu.memory_space<vmem>>, %arg7: memref<1x128xf32, #tpu.memory_space<vmem>>, %arg8: memref<1x128xf32, #tpu.memory_space<vmem>>, %arg9: memref<128x512xbf16, #tpu.memory_space<vmem>>, %arg10: memref<1x512xf32, #tpu.memory_space<vmem>>, %arg11: memref<512x128xbf16, #tpu.memory_space<vmem>>, %arg12: memref<1x128xf32, #tpu.memory_space<vmem>>, %arg13: memref<2x64x128xf32, #tpu.memory_space<vmem>>) attributes {dimension_semantics = [#tpu.dimension_semantics<parallel>], iteration_bounds = array<i64: 1>, scalar_prefetch = 0 : i64, scratch_operands = 0 : i64, tpu.core_type = #tpu.core_type<tc>, window_params = [{transform_indices = @transform_0, window_bounds = array<i64: 2, 64, 128>}, {pipeline_mode = #tpu.pipeline_mode<synchronous>, transform_indices = @transform_1, window_bounds = array<i64: 128, 384>}, {pipeline_mode = #tpu.pipeline_mode<synchronous>, transform_indices = @transform_2, window_bounds = array<i64: 128, 128>}, {pipeline_mode = #tpu.pipeline_mode<synchronous>, transform_indices = @transform_3, window_bounds = array<i64: 1, 128>}, {pipeline_mode = #tpu.pipeline_mode<synchronous>, transform_indices = @transform_4, window_bounds = array<i64: 1, 128>}, {pipeline_mode = #tpu.pipeline_mode<synchronous>, transform_indices = @transform_5, window_bounds = array<i64: 1, 128>}, {pipeline_mode = #tpu.pipeline_mode<synchronous>, transform_indices = @transform_6, window_bounds = array<i64: 1, 128>}, {pipeline_mode = #tpu.pipeline_mode<synchronous>, transform_indices = @transform_7, window_bounds = array<i64: 1, 128>}, {pipeline_mode = #tpu.pipeline_mode<synchronous>, transform_indices = @transform_8, window_bounds = array<i64: 128, 512>}, {pipeline_mode = #tpu.pipeline_mode<synchronous>, transform_indices = @transform_9, window_bounds = array<i64: 1, 512>}, {pipeline_mode = #tpu.pipeline_mode<synchronous>, transform_indices = @transform_10, window_bounds = array<i64: 512, 128>}, {pipeline_mode = #tpu.pipeline_mode<synchronous>, transform_indices = @transform_11, window_bounds = array<i64: 1, 128>}, {transform_indices = @transform_12, window_bounds = array<i64: 2, 64, 128>}]} {
    %c0 = arith.constant 0 : index
    %c0_0 = arith.constant 0 : index
    %c0_1 = arith.constant 0 : index
    %0 = vector.load %arg1[%c0, %c0_0, %c0_1] : memref<2x64x128xf32, #tpu.memory_space<vmem>>, vector<2x64x128xf32>
    %1 = vector.shape_cast %0 : vector<2x64x128xf32> to vector<128x128xf32>
    %c0_2 = arith.constant 0 : index
    %c0_3 = arith.constant 0 : index
    %2 = vector.load %arg5[%c0_2, %c0_3] : memref<1x128xf32, #tpu.memory_space<vmem>>, vector<1x128xf32>
    %c0_4 = arith.constant 0 : index
    %c0_5 = arith.constant 0 : index
    %3 = vector.load %arg6[%c0_4, %c0_5] : memref<1x128xf32, #tpu.memory_space<vmem>>, vector<1x128xf32>
    %cst = arith.constant dense<0.000000e+00> : vector<128xf32>
    %4 = vector.multi_reduction <add>, %1, %cst [1] : vector<128x128xf32> to vector<128xf32>
    %5 = vector.shape_cast %4 : vector<128xf32> to vector<128x1xf32>
    %cst_6 = arith.constant 1.280000e+02 : f32
    %6 = vector.broadcast %cst_6 : f32 to vector<128x1xf32>
    %7 = arith.divf %5, %6 : vector<128x1xf32>
    %8 = vector.broadcast %7 : vector<128x1xf32> to vector<128x128xf32>
    %9 = arith.subf %1, %8 : vector<128x128xf32>
    %10 = arith.mulf %9, %9 : vector<128x128xf32>
    %cst_7 = arith.constant dense<0.000000e+00> : vector<128xf32>
    %11 = vector.multi_reduction <add>, %10, %cst_7 [1] : vector<128x128xf32> to vector<128xf32>
    %12 = vector.shape_cast %11 : vector<128xf32> to vector<128x1xf32>
    %cst_8 = arith.constant 1.280000e+02 : f32
    %13 = vector.broadcast %cst_8 : f32 to vector<128x1xf32>
    %14 = arith.divf %12, %13 : vector<128x1xf32>
    %15 = vector.broadcast %7 : vector<128x1xf32> to vector<128x128xf32>
    %16 = arith.subf %1, %15 : vector<128x128xf32>
    %cst_9 = arith.constant 9.99999974E-6 : f32
    %17 = vector.broadcast %cst_9 : f32 to vector<128x1xf32>
    %18 = arith.addf %14, %17 : vector<128x1xf32>
    %19 = math.rsqrt %18 : vector<128x1xf32>
    %20 = vector.broadcast %19 : vector<128x1xf32> to vector<128x128xf32>
    %21 = arith.mulf %16, %20 : vector<128x128xf32>
    %22 = vector.broadcast %2 : vector<1x128xf32> to vector<128x128xf32>
    %23 = arith.mulf %21, %22 : vector<128x128xf32>
    %24 = vector.broadcast %3 : vector<1x128xf32> to vector<128x128xf32>
    %25 = arith.addf %23, %24 : vector<128x128xf32>
    %26 = arith.truncf %25 : vector<128x128xf32> to vector<128x128xbf16>
    %c0_10 = arith.constant 0 : index
    %c0_11 = arith.constant 0 : index
    %27 = vector.load %arg2[%c0_10, %c0_11] : memref<128x384xbf16, #tpu.memory_space<vmem>>, vector<128x384xbf16>
    %cst_12 = arith.constant dense<0.000000e+00> : vector<128x384xf32>
    %28 = tpu.matmul %26, %27, %cst_12 {dimension_numbers = #tpu.dot_dimension_numbers<[1], [0], [0], [1], [0, 0, 1, 1], [], []>} : vector<128x128xbf16>, vector<128x384xbf16>, vector<128x384xf32> -> vector<128x384xf32>
    %29 = tpu.iota {dimensions = array<i32: 0>} : vector<64x64xi32>
    %30 = tpu.iota {dimensions = array<i32: 1>} : vector<64x64xi32>
    %31 = arith.cmpi sge, %29, %30 : vector<64x64xi32>
    %c0_13 = arith.constant 0 : index
    %c0_14 = arith.constant 0 : index
    %32 = vector.load %arg3[%c0_13, %c0_14] : memref<128x128xbf16, #tpu.memory_space<vmem>>, vector<128x128xbf16>
    %cst_15 = arith.constant 0.000000e+00 : f32
    %33 = vector.broadcast %cst_15 : f32 to vector<64x128xf32>
    %34 = vector.extract_strided_slice %28 {offsets = [0, 0], sizes = [64, 32], strides = [1, 1]} : vector<128x384xf32> to vector<64x32xf32>
    %35 = arith.truncf %34 : vector<64x32xf32> to vector<64x32xbf16>
    %36 = vector.extract_strided_slice %28 {offsets = [0, 128], sizes = [64, 32], strides = [1, 1]} : vector<128x384xf32> to vector<64x32xf32>
    %37 = arith.truncf %36 : vector<64x32xf32> to vector<64x32xbf16>
    %38 = vector.extract_strided_slice %28 {offsets = [0, 256], sizes = [64, 32], strides = [1, 1]} : vector<128x384xf32> to vector<64x32xf32>
    %39 = arith.truncf %38 : vector<64x32xf32> to vector<64x32xbf16>
    %cst_16 = arith.constant dense<0.000000e+00> : vector<64x64xf32>
    %40 = tpu.matmul %35, %37, %cst_16 {dimension_numbers = #tpu.dot_dimension_numbers<[1], [1], [0], [0], [0, 0, 1, 0], [], []>} : vector<64x32xbf16>, vector<64x32xbf16>, vector<64x64xf32> -> vector<64x64xf32>
    %cst_17 = arith.constant -1.000000e+30 : f32
    %41 = vector.broadcast %cst_17 : f32 to vector<64x64xf32>
    %42 = arith.select %31, %40, %41 : vector<64x64xi1>, vector<64x64xf32>
    %cst_18 = arith.constant dense<0xFF800000> : vector<64xf32>
    %43 = vector.multi_reduction <maximumf>, %42, %cst_18 [1] : vector<64x64xf32> to vector<64xf32>
    %44 = vector.shape_cast %43 : vector<64xf32> to vector<64x1xf32>
    %45 = vector.broadcast %44 : vector<64x1xf32> to vector<64x64xf32>
    %46 = arith.subf %42, %45 : vector<64x64xf32>
    %47 = math.exp %46 : vector<64x64xf32>
    %cst_19 = arith.constant dense<0.000000e+00> : vector<64xf32>
    %48 = vector.multi_reduction <add>, %47, %cst_19 [1] : vector<64x64xf32> to vector<64xf32>
    %49 = vector.shape_cast %48 : vector<64xf32> to vector<64x1xf32>
    %50 = tpu.reciprocal %49 {approx = true} : vector<64x1xf32> -> vector<64x1xf32>
    %51 = vector.broadcast %50 : vector<64x1xf32> to vector<64x64xf32>
    %52 = arith.mulf %47, %51 : vector<64x64xf32>
    %53 = arith.truncf %52 : vector<64x64xf32> to vector<64x64xbf16>
    %cst_20 = arith.constant dense<0.000000e+00> : vector<64x32xf32>
    %54 = tpu.matmul %53, %39, %cst_20 {dimension_numbers = #tpu.dot_dimension_numbers<[1], [0], [0], [1], [0, 0, 1, 1], [], []>} : vector<64x64xbf16>, vector<64x32xbf16>, vector<64x32xf32> -> vector<64x32xf32>
    %55 = arith.truncf %54 : vector<64x32xf32> to vector<64x32xbf16>
    %56 = vector.extract_strided_slice %32 {offsets = [0, 0], sizes = [32, 128], strides = [1, 1]} : vector<128x128xbf16> to vector<32x128xbf16>
    %cst_21 = arith.constant dense<0.000000e+00> : vector<64x128xf32>
    %57 = tpu.matmul %55, %56, %cst_21 {dimension_numbers = #tpu.dot_dimension_numbers<[1], [0], [0], [1], [0, 0, 1, 1], [], []>} : vector<64x32xbf16>, vector<32x128xbf16>, vector<64x128xf32> -> vector<64x128xf32>
    %58 = arith.addf %33, %57 : vector<64x128xf32>
    %59 = vector.extract_strided_slice %28 {offsets = [0, 32], sizes = [64, 32], strides = [1, 1]} : vector<128x384xf32> to vector<64x32xf32>
    %60 = arith.truncf %59 : vector<64x32xf32> to vector<64x32xbf16>
    %61 = vector.extract_strided_slice %28 {offsets = [0, 160], sizes = [64, 32], strides = [1, 1]} : vector<128x384xf32> to vector<64x32xf32>
    %62 = arith.truncf %61 : vector<64x32xf32> to vector<64x32xbf16>
    %63 = vector.extract_strided_slice %28 {offsets = [0, 288], sizes = [64, 32], strides = [1, 1]} : vector<128x384xf32> to vector<64x32xf32>
    %64 = arith.truncf %63 : vector<64x32xf32> to vector<64x32xbf16>
    %cst_22 = arith.constant dense<0.000000e+00> : vector<64x64xf32>
    %65 = tpu.matmul %60, %62, %cst_22 {dimension_numbers = #tpu.dot_dimension_numbers<[1], [1], [0], [0], [0, 0, 1, 0], [], []>} : vector<64x32xbf16>, vector<64x32xbf16>, vector<64x64xf32> -> vector<64x64xf32>
    %cst_23 = arith.constant -1.000000e+30 : f32
    %66 = vector.broadcast %cst_23 : f32 to vector<64x64xf32>
    %67 = arith.select %31, %65, %66 : vector<64x64xi1>, vector<64x64xf32>
    %cst_24 = arith.constant dense<0xFF800000> : vector<64xf32>
    %68 = vector.multi_reduction <maximumf>, %67, %cst_24 [1] : vector<64x64xf32> to vector<64xf32>
    %69 = vector.shape_cast %68 : vector<64xf32> to vector<64x1xf32>
    %70 = vector.broadcast %69 : vector<64x1xf32> to vector<64x64xf32>
    %71 = arith.subf %67, %70 : vector<64x64xf32>
    %72 = math.exp %71 : vector<64x64xf32>
    %cst_25 = arith.constant dense<0.000000e+00> : vector<64xf32>
    %73 = vector.multi_reduction <add>, %72, %cst_25 [1] : vector<64x64xf32> to vector<64xf32>
    %74 = vector.shape_cast %73 : vector<64xf32> to vector<64x1xf32>
    %75 = tpu.reciprocal %74 {approx = true} : vector<64x1xf32> -> vector<64x1xf32>
    %76 = vector.broadcast %75 : vector<64x1xf32> to vector<64x64xf32>
    %77 = arith.mulf %72, %76 : vector<64x64xf32>
    %78 = arith.truncf %77 : vector<64x64xf32> to vector<64x64xbf16>
    %cst_26 = arith.constant dense<0.000000e+00> : vector<64x32xf32>
    %79 = tpu.matmul %78, %64, %cst_26 {dimension_numbers = #tpu.dot_dimension_numbers<[1], [0], [0], [1], [0, 0, 1, 1], [], []>} : vector<64x64xbf16>, vector<64x32xbf16>, vector<64x32xf32> -> vector<64x32xf32>
    %80 = arith.truncf %79 : vector<64x32xf32> to vector<64x32xbf16>
    %81 = vector.extract_strided_slice %32 {offsets = [32, 0], sizes = [32, 128], strides = [1, 1]} : vector<128x128xbf16> to vector<32x128xbf16>
    %cst_27 = arith.constant dense<0.000000e+00> : vector<64x128xf32>
    %82 = tpu.matmul %80, %81, %cst_27 {dimension_numbers = #tpu.dot_dimension_numbers<[1], [0], [0], [1], [0, 0, 1, 1], [], []>} : vector<64x32xbf16>, vector<32x128xbf16>, vector<64x128xf32> -> vector<64x128xf32>
    %83 = arith.addf %58, %82 : vector<64x128xf32>
    %84 = vector.extract_strided_slice %28 {offsets = [0, 64], sizes = [64, 32], strides = [1, 1]} : vector<128x384xf32> to vector<64x32xf32>
    %85 = arith.truncf %84 : vector<64x32xf32> to vector<64x32xbf16>
    %86 = vector.extract_strided_slice %28 {offsets = [0, 192], sizes = [64, 32], strides = [1, 1]} : vector<128x384xf32> to vector<64x32xf32>
    %87 = arith.truncf %86 : vector<64x32xf32> to vector<64x32xbf16>
    %88 = vector.extract_strided_slice %28 {offsets = [0, 320], sizes = [64, 32], strides = [1, 1]} : vector<128x384xf32> to vector<64x32xf32>
    %89 = arith.truncf %88 : vector<64x32xf32> to vector<64x32xbf16>
    %cst_28 = arith.constant dense<0.000000e+00> : vector<64x64xf32>
    %90 = tpu.matmul %85, %87, %cst_28 {dimension_numbers = #tpu.dot_dimension_numbers<[1], [1], [0], [0], [0, 0, 1, 0], [], []>} : vector<64x32xbf16>, vector<64x32xbf16>, vector<64x64xf32> -> vector<64x64xf32>
    %cst_29 = arith.constant -1.000000e+30 : f32
    %91 = vector.broadcast %cst_29 : f32 to vector<64x64xf32>
    %92 = arith.select %31, %90, %91 : vector<64x64xi1>, vector<64x64xf32>
    %cst_30 = arith.constant dense<0xFF800000> : vector<64xf32>
    %93 = vector.multi_reduction <maximumf>, %92, %cst_30 [1] : vector<64x64xf32> to vector<64xf32>
    %94 = vector.shape_cast %93 : vector<64xf32> to vector<64x1xf32>
    %95 = vector.broadcast %94 : vector<64x1xf32> to vector<64x64xf32>
    %96 = arith.subf %92, %95 : vector<64x64xf32>
    %97 = math.exp %96 : vector<64x64xf32>
    %cst_31 = arith.constant dense<0.000000e+00> : vector<64xf32>
    %98 = vector.multi_reduction <add>, %97, %cst_31 [1] : vector<64x64xf32> to vector<64xf32>
    %99 = vector.shape_cast %98 : vector<64xf32> to vector<64x1xf32>
    %100 = tpu.reciprocal %99 {approx = true} : vector<64x1xf32> -> vector<64x1xf32>
    %101 = vector.broadcast %100 : vector<64x1xf32> to vector<64x64xf32>
    %102 = arith.mulf %97, %101 : vector<64x64xf32>
    %103 = arith.truncf %102 : vector<64x64xf32> to vector<64x64xbf16>
    %cst_32 = arith.constant dense<0.000000e+00> : vector<64x32xf32>
    %104 = tpu.matmul %103, %89, %cst_32 {dimension_numbers = #tpu.dot_dimension_numbers<[1], [0], [0], [1], [0, 0, 1, 1], [], []>} : vector<64x64xbf16>, vector<64x32xbf16>, vector<64x32xf32> -> vector<64x32xf32>
    %105 = arith.truncf %104 : vector<64x32xf32> to vector<64x32xbf16>
    %106 = vector.extract_strided_slice %32 {offsets = [64, 0], sizes = [32, 128], strides = [1, 1]} : vector<128x128xbf16> to vector<32x128xbf16>
    %cst_33 = arith.constant dense<0.000000e+00> : vector<64x128xf32>
    %107 = tpu.matmul %105, %106, %cst_33 {dimension_numbers = #tpu.dot_dimension_numbers<[1], [0], [0], [1], [0, 0, 1, 1], [], []>} : vector<64x32xbf16>, vector<32x128xbf16>, vector<64x128xf32> -> vector<64x128xf32>
    %108 = arith.addf %83, %107 : vector<64x128xf32>
    %109 = vector.extract_strided_slice %28 {offsets = [0, 96], sizes = [64, 32], strides = [1, 1]} : vector<128x384xf32> to vector<64x32xf32>
    %110 = arith.truncf %109 : vector<64x32xf32> to vector<64x32xbf16>
    %111 = vector.extract_strided_slice %28 {offsets = [0, 224], sizes = [64, 32], strides = [1, 1]} : vector<128x384xf32> to vector<64x32xf32>
    %112 = arith.truncf %111 : vector<64x32xf32> to vector<64x32xbf16>
    %113 = vector.extract_strided_slice %28 {offsets = [0, 352], sizes = [64, 32], strides = [1, 1]} : vector<128x384xf32> to vector<64x32xf32>
    %114 = arith.truncf %113 : vector<64x32xf32> to vector<64x32xbf16>
    %cst_34 = arith.constant dense<0.000000e+00> : vector<64x64xf32>
    %115 = tpu.matmul %110, %112, %cst_34 {dimension_numbers = #tpu.dot_dimension_numbers<[1], [1], [0], [0], [0, 0, 1, 0], [], []>} : vector<64x32xbf16>, vector<64x32xbf16>, vector<64x64xf32> -> vector<64x64xf32>
    %cst_35 = arith.constant -1.000000e+30 : f32
    %116 = vector.broadcast %cst_35 : f32 to vector<64x64xf32>
    %117 = arith.select %31, %115, %116 : vector<64x64xi1>, vector<64x64xf32>
    %cst_36 = arith.constant dense<0xFF800000> : vector<64xf32>
    %118 = vector.multi_reduction <maximumf>, %117, %cst_36 [1] : vector<64x64xf32> to vector<64xf32>
    %119 = vector.shape_cast %118 : vector<64xf32> to vector<64x1xf32>
    %120 = vector.broadcast %119 : vector<64x1xf32> to vector<64x64xf32>
    %121 = arith.subf %117, %120 : vector<64x64xf32>
    %122 = math.exp %121 : vector<64x64xf32>
    %cst_37 = arith.constant dense<0.000000e+00> : vector<64xf32>
    %123 = vector.multi_reduction <add>, %122, %cst_37 [1] : vector<64x64xf32> to vector<64xf32>
    %124 = vector.shape_cast %123 : vector<64xf32> to vector<64x1xf32>
    %125 = tpu.reciprocal %124 {approx = true} : vector<64x1xf32> -> vector<64x1xf32>
    %126 = vector.broadcast %125 : vector<64x1xf32> to vector<64x64xf32>
    %127 = arith.mulf %122, %126 : vector<64x64xf32>
    %128 = arith.truncf %127 : vector<64x64xf32> to vector<64x64xbf16>
    %cst_38 = arith.constant dense<0.000000e+00> : vector<64x32xf32>
    %129 = tpu.matmul %128, %114, %cst_38 {dimension_numbers = #tpu.dot_dimension_numbers<[1], [0], [0], [1], [0, 0, 1, 1], [], []>} : vector<64x64xbf16>, vector<64x32xbf16>, vector<64x32xf32> -> vector<64x32xf32>
    %130 = arith.truncf %129 : vector<64x32xf32> to vector<64x32xbf16>
    %131 = vector.extract_strided_slice %32 {offsets = [96, 0], sizes = [32, 128], strides = [1, 1]} : vector<128x128xbf16> to vector<32x128xbf16>
    %cst_39 = arith.constant dense<0.000000e+00> : vector<64x128xf32>
    %132 = tpu.matmul %130, %131, %cst_39 {dimension_numbers = #tpu.dot_dimension_numbers<[1], [0], [0], [1], [0, 0, 1, 1], [], []>} : vector<64x32xbf16>, vector<32x128xbf16>, vector<64x128xf32> -> vector<64x128xf32>
    %133 = arith.addf %108, %132 : vector<64x128xf32>
    %cst_40 = arith.constant 0.000000e+00 : f32
    %134 = vector.broadcast %cst_40 : f32 to vector<64x128xf32>
    %135 = vector.extract_strided_slice %28 {offsets = [64, 0], sizes = [64, 32], strides = [1, 1]} : vector<128x384xf32> to vector<64x32xf32>
    %136 = arith.truncf %135 : vector<64x32xf32> to vector<64x32xbf16>
    %137 = vector.extract_strided_slice %28 {offsets = [64, 128], sizes = [64, 32], strides = [1, 1]} : vector<128x384xf32> to vector<64x32xf32>
    %138 = arith.truncf %137 : vector<64x32xf32> to vector<64x32xbf16>
    %139 = vector.extract_strided_slice %28 {offsets = [64, 256], sizes = [64, 32], strides = [1, 1]} : vector<128x384xf32> to vector<64x32xf32>
    %140 = arith.truncf %139 : vector<64x32xf32> to vector<64x32xbf16>
    %cst_41 = arith.constant dense<0.000000e+00> : vector<64x64xf32>
    %141 = tpu.matmul %136, %138, %cst_41 {dimension_numbers = #tpu.dot_dimension_numbers<[1], [1], [0], [0], [0, 0, 1, 0], [], []>} : vector<64x32xbf16>, vector<64x32xbf16>, vector<64x64xf32> -> vector<64x64xf32>
    %cst_42 = arith.constant -1.000000e+30 : f32
    %142 = vector.broadcast %cst_42 : f32 to vector<64x64xf32>
    %143 = arith.select %31, %141, %142 : vector<64x64xi1>, vector<64x64xf32>
    %cst_43 = arith.constant dense<0xFF800000> : vector<64xf32>
    %144 = vector.multi_reduction <maximumf>, %143, %cst_43 [1] : vector<64x64xf32> to vector<64xf32>
    %145 = vector.shape_cast %144 : vector<64xf32> to vector<64x1xf32>
    %146 = vector.broadcast %145 : vector<64x1xf32> to vector<64x64xf32>
    %147 = arith.subf %143, %146 : vector<64x64xf32>
    %148 = math.exp %147 : vector<64x64xf32>
    %cst_44 = arith.constant dense<0.000000e+00> : vector<64xf32>
    %149 = vector.multi_reduction <add>, %148, %cst_44 [1] : vector<64x64xf32> to vector<64xf32>
    %150 = vector.shape_cast %149 : vector<64xf32> to vector<64x1xf32>
    %151 = tpu.reciprocal %150 {approx = true} : vector<64x1xf32> -> vector<64x1xf32>
    %152 = vector.broadcast %151 : vector<64x1xf32> to vector<64x64xf32>
    %153 = arith.mulf %148, %152 : vector<64x64xf32>
    %154 = arith.truncf %153 : vector<64x64xf32> to vector<64x64xbf16>
    %cst_45 = arith.constant dense<0.000000e+00> : vector<64x32xf32>
    %155 = tpu.matmul %154, %140, %cst_45 {dimension_numbers = #tpu.dot_dimension_numbers<[1], [0], [0], [1], [0, 0, 1, 1], [], []>} : vector<64x64xbf16>, vector<64x32xbf16>, vector<64x32xf32> -> vector<64x32xf32>
    %156 = arith.truncf %155 : vector<64x32xf32> to vector<64x32xbf16>
    %157 = vector.extract_strided_slice %32 {offsets = [0, 0], sizes = [32, 128], strides = [1, 1]} : vector<128x128xbf16> to vector<32x128xbf16>
    %cst_46 = arith.constant dense<0.000000e+00> : vector<64x128xf32>
    %158 = tpu.matmul %156, %157, %cst_46 {dimension_numbers = #tpu.dot_dimension_numbers<[1], [0], [0], [1], [0, 0, 1, 1], [], []>} : vector<64x32xbf16>, vector<32x128xbf16>, vector<64x128xf32> -> vector<64x128xf32>
    %159 = arith.addf %134, %158 : vector<64x128xf32>
    %160 = vector.extract_strided_slice %28 {offsets = [64, 32], sizes = [64, 32], strides = [1, 1]} : vector<128x384xf32> to vector<64x32xf32>
    %161 = arith.truncf %160 : vector<64x32xf32> to vector<64x32xbf16>
    %162 = vector.extract_strided_slice %28 {offsets = [64, 160], sizes = [64, 32], strides = [1, 1]} : vector<128x384xf32> to vector<64x32xf32>
    %163 = arith.truncf %162 : vector<64x32xf32> to vector<64x32xbf16>
    %164 = vector.extract_strided_slice %28 {offsets = [64, 288], sizes = [64, 32], strides = [1, 1]} : vector<128x384xf32> to vector<64x32xf32>
    %165 = arith.truncf %164 : vector<64x32xf32> to vector<64x32xbf16>
    %cst_47 = arith.constant dense<0.000000e+00> : vector<64x64xf32>
    %166 = tpu.matmul %161, %163, %cst_47 {dimension_numbers = #tpu.dot_dimension_numbers<[1], [1], [0], [0], [0, 0, 1, 0], [], []>} : vector<64x32xbf16>, vector<64x32xbf16>, vector<64x64xf32> -> vector<64x64xf32>
    %cst_48 = arith.constant -1.000000e+30 : f32
    %167 = vector.broadcast %cst_48 : f32 to vector<64x64xf32>
    %168 = arith.select %31, %166, %167 : vector<64x64xi1>, vector<64x64xf32>
    %cst_49 = arith.constant dense<0xFF800000> : vector<64xf32>
    %169 = vector.multi_reduction <maximumf>, %168, %cst_49 [1] : vector<64x64xf32> to vector<64xf32>
    %170 = vector.shape_cast %169 : vector<64xf32> to vector<64x1xf32>
    %171 = vector.broadcast %170 : vector<64x1xf32> to vector<64x64xf32>
    %172 = arith.subf %168, %171 : vector<64x64xf32>
    %173 = math.exp %172 : vector<64x64xf32>
    %cst_50 = arith.constant dense<0.000000e+00> : vector<64xf32>
    %174 = vector.multi_reduction <add>, %173, %cst_50 [1] : vector<64x64xf32> to vector<64xf32>
    %175 = vector.shape_cast %174 : vector<64xf32> to vector<64x1xf32>
    %176 = tpu.reciprocal %175 {approx = true} : vector<64x1xf32> -> vector<64x1xf32>
    %177 = vector.broadcast %176 : vector<64x1xf32> to vector<64x64xf32>
    %178 = arith.mulf %173, %177 : vector<64x64xf32>
    %179 = arith.truncf %178 : vector<64x64xf32> to vector<64x64xbf16>
    %cst_51 = arith.constant dense<0.000000e+00> : vector<64x32xf32>
    %180 = tpu.matmul %179, %165, %cst_51 {dimension_numbers = #tpu.dot_dimension_numbers<[1], [0], [0], [1], [0, 0, 1, 1], [], []>} : vector<64x64xbf16>, vector<64x32xbf16>, vector<64x32xf32> -> vector<64x32xf32>
    %181 = arith.truncf %180 : vector<64x32xf32> to vector<64x32xbf16>
    %182 = vector.extract_strided_slice %32 {offsets = [32, 0], sizes = [32, 128], strides = [1, 1]} : vector<128x128xbf16> to vector<32x128xbf16>
    %cst_52 = arith.constant dense<0.000000e+00> : vector<64x128xf32>
    %183 = tpu.matmul %181, %182, %cst_52 {dimension_numbers = #tpu.dot_dimension_numbers<[1], [0], [0], [1], [0, 0, 1, 1], [], []>} : vector<64x32xbf16>, vector<32x128xbf16>, vector<64x128xf32> -> vector<64x128xf32>
    %184 = arith.addf %159, %183 : vector<64x128xf32>
    %185 = vector.extract_strided_slice %28 {offsets = [64, 64], sizes = [64, 32], strides = [1, 1]} : vector<128x384xf32> to vector<64x32xf32>
    %186 = arith.truncf %185 : vector<64x32xf32> to vector<64x32xbf16>
    %187 = vector.extract_strided_slice %28 {offsets = [64, 192], sizes = [64, 32], strides = [1, 1]} : vector<128x384xf32> to vector<64x32xf32>
    %188 = arith.truncf %187 : vector<64x32xf32> to vector<64x32xbf16>
    %189 = vector.extract_strided_slice %28 {offsets = [64, 320], sizes = [64, 32], strides = [1, 1]} : vector<128x384xf32> to vector<64x32xf32>
    %190 = arith.truncf %189 : vector<64x32xf32> to vector<64x32xbf16>
    %cst_53 = arith.constant dense<0.000000e+00> : vector<64x64xf32>
    %191 = tpu.matmul %186, %188, %cst_53 {dimension_numbers = #tpu.dot_dimension_numbers<[1], [1], [0], [0], [0, 0, 1, 0], [], []>} : vector<64x32xbf16>, vector<64x32xbf16>, vector<64x64xf32> -> vector<64x64xf32>
    %cst_54 = arith.constant -1.000000e+30 : f32
    %192 = vector.broadcast %cst_54 : f32 to vector<64x64xf32>
    %193 = arith.select %31, %191, %192 : vector<64x64xi1>, vector<64x64xf32>
    %cst_55 = arith.constant dense<0xFF800000> : vector<64xf32>
    %194 = vector.multi_reduction <maximumf>, %193, %cst_55 [1] : vector<64x64xf32> to vector<64xf32>
    %195 = vector.shape_cast %194 : vector<64xf32> to vector<64x1xf32>
    %196 = vector.broadcast %195 : vector<64x1xf32> to vector<64x64xf32>
    %197 = arith.subf %193, %196 : vector<64x64xf32>
    %198 = math.exp %197 : vector<64x64xf32>
    %cst_56 = arith.constant dense<0.000000e+00> : vector<64xf32>
    %199 = vector.multi_reduction <add>, %198, %cst_56 [1] : vector<64x64xf32> to vector<64xf32>
    %200 = vector.shape_cast %199 : vector<64xf32> to vector<64x1xf32>
    %201 = tpu.reciprocal %200 {approx = true} : vector<64x1xf32> -> vector<64x1xf32>
    %202 = vector.broadcast %201 : vector<64x1xf32> to vector<64x64xf32>
    %203 = arith.mulf %198, %202 : vector<64x64xf32>
    %204 = arith.truncf %203 : vector<64x64xf32> to vector<64x64xbf16>
    %cst_57 = arith.constant dense<0.000000e+00> : vector<64x32xf32>
    %205 = tpu.matmul %204, %190, %cst_57 {dimension_numbers = #tpu.dot_dimension_numbers<[1], [0], [0], [1], [0, 0, 1, 1], [], []>} : vector<64x64xbf16>, vector<64x32xbf16>, vector<64x32xf32> -> vector<64x32xf32>
    %206 = arith.truncf %205 : vector<64x32xf32> to vector<64x32xbf16>
    %207 = vector.extract_strided_slice %32 {offsets = [64, 0], sizes = [32, 128], strides = [1, 1]} : vector<128x128xbf16> to vector<32x128xbf16>
    %cst_58 = arith.constant dense<0.000000e+00> : vector<64x128xf32>
    %208 = tpu.matmul %206, %207, %cst_58 {dimension_numbers = #tpu.dot_dimension_numbers<[1], [0], [0], [1], [0, 0, 1, 1], [], []>} : vector<64x32xbf16>, vector<32x128xbf16>, vector<64x128xf32> -> vector<64x128xf32>
    %209 = arith.addf %184, %208 : vector<64x128xf32>
    %210 = vector.extract_strided_slice %28 {offsets = [64, 96], sizes = [64, 32], strides = [1, 1]} : vector<128x384xf32> to vector<64x32xf32>
    %211 = arith.truncf %210 : vector<64x32xf32> to vector<64x32xbf16>
    %212 = vector.extract_strided_slice %28 {offsets = [64, 224], sizes = [64, 32], strides = [1, 1]} : vector<128x384xf32> to vector<64x32xf32>
    %213 = arith.truncf %212 : vector<64x32xf32> to vector<64x32xbf16>
    %214 = vector.extract_strided_slice %28 {offsets = [64, 352], sizes = [64, 32], strides = [1, 1]} : vector<128x384xf32> to vector<64x32xf32>
    %215 = arith.truncf %214 : vector<64x32xf32> to vector<64x32xbf16>
    %cst_59 = arith.constant dense<0.000000e+00> : vector<64x64xf32>
    %216 = tpu.matmul %211, %213, %cst_59 {dimension_numbers = #tpu.dot_dimension_numbers<[1], [1], [0], [0], [0, 0, 1, 0], [], []>} : vector<64x32xbf16>, vector<64x32xbf16>, vector<64x64xf32> -> vector<64x64xf32>
    %cst_60 = arith.constant -1.000000e+30 : f32
    %217 = vector.broadcast %cst_60 : f32 to vector<64x64xf32>
    %218 = arith.select %31, %216, %217 : vector<64x64xi1>, vector<64x64xf32>
    %cst_61 = arith.constant dense<0xFF800000> : vector<64xf32>
    %219 = vector.multi_reduction <maximumf>, %218, %cst_61 [1] : vector<64x64xf32> to vector<64xf32>
    %220 = vector.shape_cast %219 : vector<64xf32> to vector<64x1xf32>
    %221 = vector.broadcast %220 : vector<64x1xf32> to vector<64x64xf32>
    %222 = arith.subf %218, %221 : vector<64x64xf32>
    %223 = math.exp %222 : vector<64x64xf32>
    %cst_62 = arith.constant dense<0.000000e+00> : vector<64xf32>
    %224 = vector.multi_reduction <add>, %223, %cst_62 [1] : vector<64x64xf32> to vector<64xf32>
    %225 = vector.shape_cast %224 : vector<64xf32> to vector<64x1xf32>
    %226 = tpu.reciprocal %225 {approx = true} : vector<64x1xf32> -> vector<64x1xf32>
    %227 = vector.broadcast %226 : vector<64x1xf32> to vector<64x64xf32>
    %228 = arith.mulf %223, %227 : vector<64x64xf32>
    %229 = arith.truncf %228 : vector<64x64xf32> to vector<64x64xbf16>
    %cst_63 = arith.constant dense<0.000000e+00> : vector<64x32xf32>
    %230 = tpu.matmul %229, %215, %cst_63 {dimension_numbers = #tpu.dot_dimension_numbers<[1], [0], [0], [1], [0, 0, 1, 1], [], []>} : vector<64x64xbf16>, vector<64x32xbf16>, vector<64x32xf32> -> vector<64x32xf32>
    %231 = arith.truncf %230 : vector<64x32xf32> to vector<64x32xbf16>
    %232 = vector.extract_strided_slice %32 {offsets = [96, 0], sizes = [32, 128], strides = [1, 1]} : vector<128x128xbf16> to vector<32x128xbf16>
    %cst_64 = arith.constant dense<0.000000e+00> : vector<64x128xf32>
    %233 = tpu.matmul %231, %232, %cst_64 {dimension_numbers = #tpu.dot_dimension_numbers<[1], [0], [0], [1], [0, 0, 1, 1], [], []>} : vector<64x32xbf16>, vector<32x128xbf16>, vector<64x128xf32> -> vector<64x128xf32>
    %234 = arith.addf %209, %233 : vector<64x128xf32>
    %235 = tpu.concatenate %133, %234 in 0 : vector<64x128xf32>, vector<64x128xf32> -> vector<128x128xf32>
    %236 = arith.addf %1, %235 : vector<128x128xf32>
    %c0_65 = arith.constant 0 : index
    %c0_66 = arith.constant 0 : index
    %237 = vector.load %arg4[%c0_65, %c0_66] : memref<1x128xf32, #tpu.memory_space<vmem>>, vector<1x128xf32>
    %238 = vector.broadcast %237 : vector<1x128xf32> to vector<128x128xf32>
    %239 = arith.addf %236, %238 : vector<128x128xf32>
    %c0_67 = arith.constant 0 : index
    %c0_68 = arith.constant 0 : index
    %240 = vector.load %arg7[%c0_67, %c0_68] : memref<1x128xf32, #tpu.memory_space<vmem>>, vector<1x128xf32>
    %c0_69 = arith.constant 0 : index
    %c0_70 = arith.constant 0 : index
    %241 = vector.load %arg8[%c0_69, %c0_70] : memref<1x128xf32, #tpu.memory_space<vmem>>, vector<1x128xf32>
    %cst_71 = arith.constant dense<0.000000e+00> : vector<128xf32>
    %242 = vector.multi_reduction <add>, %239, %cst_71 [1] : vector<128x128xf32> to vector<128xf32>
    %243 = vector.shape_cast %242 : vector<128xf32> to vector<128x1xf32>
    %cst_72 = arith.constant 1.280000e+02 : f32
    %244 = vector.broadcast %cst_72 : f32 to vector<128x1xf32>
    %245 = arith.divf %243, %244 : vector<128x1xf32>
    %246 = vector.broadcast %245 : vector<128x1xf32> to vector<128x128xf32>
    %247 = arith.subf %239, %246 : vector<128x128xf32>
    %248 = arith.mulf %247, %247 : vector<128x128xf32>
    %cst_73 = arith.constant dense<0.000000e+00> : vector<128xf32>
    %249 = vector.multi_reduction <add>, %248, %cst_73 [1] : vector<128x128xf32> to vector<128xf32>
    %250 = vector.shape_cast %249 : vector<128xf32> to vector<128x1xf32>
    %cst_74 = arith.constant 1.280000e+02 : f32
    %251 = vector.broadcast %cst_74 : f32 to vector<128x1xf32>
    %252 = arith.divf %250, %251 : vector<128x1xf32>
    %253 = vector.broadcast %245 : vector<128x1xf32> to vector<128x128xf32>
    %254 = arith.subf %239, %253 : vector<128x128xf32>
    %cst_75 = arith.constant 9.99999974E-6 : f32
    %255 = vector.broadcast %cst_75 : f32 to vector<128x1xf32>
    %256 = arith.addf %252, %255 : vector<128x1xf32>
    %257 = math.rsqrt %256 : vector<128x1xf32>
    %258 = vector.broadcast %257 : vector<128x1xf32> to vector<128x128xf32>
    %259 = arith.mulf %254, %258 : vector<128x128xf32>
    %260 = vector.broadcast %240 : vector<1x128xf32> to vector<128x128xf32>
    %261 = arith.mulf %259, %260 : vector<128x128xf32>
    %262 = vector.broadcast %241 : vector<1x128xf32> to vector<128x128xf32>
    %263 = arith.addf %261, %262 : vector<128x128xf32>
    %264 = arith.truncf %263 : vector<128x128xf32> to vector<128x128xbf16>
    %c0_76 = arith.constant 0 : index
    %c0_77 = arith.constant 0 : index
    %265 = vector.load %arg9[%c0_76, %c0_77] : memref<128x512xbf16, #tpu.memory_space<vmem>>, vector<128x512xbf16>
    %cst_78 = arith.constant dense<0.000000e+00> : vector<128x512xf32>
    %266 = tpu.matmul %264, %265, %cst_78 {dimension_numbers = #tpu.dot_dimension_numbers<[1], [0], [0], [1], [0, 0, 1, 1], [], []>} : vector<128x128xbf16>, vector<128x512xbf16>, vector<128x512xf32> -> vector<128x512xf32>
    %c0_79 = arith.constant 0 : index
    %c0_80 = arith.constant 0 : index
    %267 = vector.load %arg10[%c0_79, %c0_80] : memref<1x512xf32, #tpu.memory_space<vmem>>, vector<1x512xf32>
    %268 = vector.broadcast %267 : vector<1x512xf32> to vector<128x512xf32>
    %269 = arith.addf %266, %268 : vector<128x512xf32>
    %cst_81 = arith.constant 0.000000e+00 : f32
    %270 = vector.broadcast %cst_81 : f32 to vector<128x512xf32>
    %271 = arith.maximumf %269, %270 : vector<128x512xf32>
    %272 = arith.truncf %271 : vector<128x512xf32> to vector<128x512xbf16>
    %c0_82 = arith.constant 0 : index
    %c0_83 = arith.constant 0 : index
    %273 = vector.load %arg11[%c0_82, %c0_83] : memref<512x128xbf16, #tpu.memory_space<vmem>>, vector<512x128xbf16>
    %cst_84 = arith.constant dense<0.000000e+00> : vector<128x128xf32>
    %274 = tpu.matmul %272, %273, %cst_84 {dimension_numbers = #tpu.dot_dimension_numbers<[1], [0], [0], [1], [0, 0, 1, 1], [], []>} : vector<128x512xbf16>, vector<512x128xbf16>, vector<128x128xf32> -> vector<128x128xf32>
    %c0_85 = arith.constant 0 : index
    %c0_86 = arith.constant 0 : index
    %275 = vector.load %arg12[%c0_85, %c0_86] : memref<1x128xf32, #tpu.memory_space<vmem>>, vector<1x128xf32>
    %276 = vector.broadcast %275 : vector<1x128xf32> to vector<128x128xf32>
    %277 = arith.addf %274, %276 : vector<128x128xf32>
    %278 = arith.addf %239, %277 : vector<128x128xf32>
    %279 = vector.shape_cast %278 : vector<128x128xf32> to vector<2x64x128xf32>
    %c0_87 = arith.constant 0 : index
    %c0_88 = arith.constant 0 : index
    %c0_89 = arith.constant 0 : index
    %280 = vector.load %arg13[%c0_87, %c0_88, %c0_89] : memref<2x64x128xf32, #tpu.memory_space<vmem>>, vector<2x64x128xf32>
    tpu.vector_store %arg13[%c0_87, %c0_88, %c0_89], %279 {strides = array<i32>} : memref<2x64x128xf32, #tpu.memory_space<vmem>>, vector<2x64x128xf32>,
    return
  }
  func.func @transform_0(%arg0: i32) -> (i32, i32, i32) {
    %c0_i32 = arith.constant 0 : i32
    %c0_i32_0 = arith.constant 0 : i32
    %c0_i32_1 = arith.constant 0 : i32
    return %arg0, %c0_i32, %c0_i32_0 : i32, i32, i32
  }
  func.func @transform_1(%arg0: i32) -> (i32, i32) {
    %c0_i32 = arith.constant 0 : i32
    %c0_i32_0 = arith.constant 0 : i32
    %c0_i32_1 = arith.constant 0 : i32
    return %c0_i32, %c0_i32_0 : i32, i32
  }
  func.func @transform_2(%arg0: i32) -> (i32, i32) {
    %c0_i32 = arith.constant 0 : i32
    %c0_i32_0 = arith.constant 0 : i32
    %c0_i32_1 = arith.constant 0 : i32
    return %c0_i32, %c0_i32_0 : i32, i32
  }
  func.func @transform_3(%arg0: i32) -> (i32, i32) {
    %c0_i32 = arith.constant 0 : i32
    %c0_i32_0 = arith.constant 0 : i32
    %c0_i32_1 = arith.constant 0 : i32
    return %c0_i32, %c0_i32_0 : i32, i32
  }
  func.func @transform_4(%arg0: i32) -> (i32, i32) {
    %c0_i32 = arith.constant 0 : i32
    %c0_i32_0 = arith.constant 0 : i32
    %c0_i32_1 = arith.constant 0 : i32
    return %c0_i32, %c0_i32_0 : i32, i32
  }
  func.func @transform_5(%arg0: i32) -> (i32, i32) {
    %c0_i32 = arith.constant 0 : i32
    %c0_i32_0 = arith.constant 0 : i32
    %c0_i32_1 = arith.constant 0 : i32
    return %c0_i32, %c0_i32_0 : i32, i32
  }
  func.func @transform_6(%arg0: i32) -> (i32, i32) {
    %c0_i32 = arith.constant 0 : i32
    %c0_i32_0 = arith.constant 0 : i32
    %c0_i32_1 = arith.constant 0 : i32
    return %c0_i32, %c0_i32_0 : i32, i32
  }
  func.func @transform_7(%arg0: i32) -> (i32, i32) {
    %c0_i32 = arith.constant 0 : i32
    %c0_i32_0 = arith.constant 0 : i32
    %c0_i32_1 = arith.constant 0 : i32
    return %c0_i32, %c0_i32_0 : i32, i32
  }
  func.func @transform_8(%arg0: i32) -> (i32, i32) {
    %c0_i32 = arith.constant 0 : i32
    %c0_i32_0 = arith.constant 0 : i32
    %c0_i32_1 = arith.constant 0 : i32
    return %c0_i32, %c0_i32_0 : i32, i32
  }
  func.func @transform_9(%arg0: i32) -> (i32, i32) {
    %c0_i32 = arith.constant 0 : i32
    %c0_i32_0 = arith.constant 0 : i32
    %c0_i32_1 = arith.constant 0 : i32
    return %c0_i32, %c0_i32_0 : i32, i32
  }
  func.func @transform_10(%arg0: i32) -> (i32, i32) {
    %c0_i32 = arith.constant 0 : i32
    %c0_i32_0 = arith.constant 0 : i32
    %c0_i32_1 = arith.constant 0 : i32
    return %c0_i32, %c0_i32_0 : i32, i32
  }
  func.func @transform_11(%arg0: i32) -> (i32, i32) {
    %c0_i32 = arith.constant 0 : i32
    %c0_i32_0 = arith.constant 0 : i32
    %c0_i32_1 = arith.constant 0 : i32
    return %c0_i32, %c0_i32_0 : i32, i32
  }
  func.func @transform_12(%arg0: i32) -> (i32, i32, i32) {
    %c0_i32 = arith.constant 0 : i32
    %c0_i32_0 = arith.constant 0 : i32
    %c0_i32_1 = arith.constant 0 : i32
    return %arg0, %c0_i32, %c0_i32_0 : i32, i32, i32
  }
}

</mosaic_0001>

<bundles_post_ra>
// kernel: tpu_custom_call.1
= control target key start
LH: loop header
LB: loop body
LE: loop exit
PB: predicated region body
PF: predicated region fallthrough
CT: control target
= control target key end

     0   :  { %17 = vsyncpa [#allocation3], 0  ;;  %s8603_s0 = inlined_call_operand.hbm [shape: f32[2,64,128], index: 0, kind: input, shape index: {}]   ;;  %s8604_s1 = inlined_call_operand.hbm [shape: bf16[128,384], index: 1, kind: input, shape index: {}]   ;;  %s8605_s2 = inlined_call_operand.hbm [shape: bf16[128,128], index: 2, kind: input, shape index: {}]   ;;  %s8606_s3 = inlined_call_operand.vmem [shape: f32[1,128], index: 3, kind: input, shape index: {}]   ;;  %s8607_s4 = inlined_call_operand.vmem [shape: f32[1,128], index: 4, kind: input, shape index: {}]   ;;  %s8608_s5 = inlined_call_operand.vmem [shape: f32[1,128], index: 5, kind: input, shape index: {}]   ;;  %s8609_s6 = inlined_call_operand.vmem [shape: f32[1,128], index: 6, kind: input, shape index: {}]   ;;  %s8610_s7 = inlined_call_operand.vmem [shape: f32[1,128], index: 7, kind: input, shape index: {}]   ;;  %s8611_s8 = inlined_call_operand.hbm [shape: bf16[128,512], index: 8, kind: input, shape index: {}]   ;;  %s8612_s9 = inlined_call_operand.vmem [shape: f32[1,512], index: 9, kind: input, shape index: {}]   ;;  %s8613_s10 = inlined_call_operand.hbm [shape: bf16[512,128], index: 10, kind: input, shape index: {}]   ;;  %s8614_s11 = inlined_call_operand.vmem [shape: f32[1,128], index: 11, kind: input, shape index: {}]   ;;  %s8615_s12 = inlined_call_operand.hbm [shape: f32[2,64,128], index: 12, kind: output, shape index: {}]  }
   0x1   :  { %18 = vsyncpa [#allocation6], 0 }
   0x2   :  { %19 = vsyncpa [#allocation9], 0 }
   0x3   :  { %20 = vsyncpa [#allocation4], 0  ;;  %s6693_s21 = smov [#allocation5]  }
   0x4   :  { %s38_s22 = sshll.u32 %s6693_s21, 4  ;;  %s39_s22 = int_to_ptr.vmem [resolvable:$true] %s38_s22 }
   0x5   :  { %s6573_s23 = scalar_lea.vmem %s39_s22, 3072  ;;  %p6578_p1 = scmp.lt.s32.totalorder %s39_s22, %s39_s22 }
   0x6   :  { %p6574_p0 = scmp.ne.s32.totalorder %s39_s22, %s6573_s23  ;;  %p6579_p2 = scmp.lt.s32.totalorder %s6573_s23, %s6573_s23 }
   0x8   :  { %p6580_p3 = por %p6579_p2, %p6578_p1 }
   0xa   :  { %p6581_p4 = pnand %p6580_p3, %p6574_p0 }
   0xc   :  { %6584 = shalt.err (!%p6581_p4)
}
   0xd   :  { %s6694_s24 = smov 192   ;;  %s6695_s25 = smov 12  }
   0xe   :  { %44 = dma.hbm_to_vmem [thread:$0]  %s8604_s1, 3072, %s39_s22, [#allocation6], %s6694_s24, %s6694_s24, %s6695_s25  }
   0xf   :  { %s6696_s28 = smov [#allocation8]  }
  0x10   :  { %s72_s29 = sshll.u32 %s6696_s28, 4  ;;  %s73_s29 = int_to_ptr.vmem [resolvable:$true] %s72_s29 }
  0x11   :  { %s6593_s30 = scalar_lea.vmem %s73_s29, 4096  ;;  %p6598_p6 = scmp.lt.s32.totalorder %s73_s29, %s73_s29 }
  0x12   :  { %p6594_p5 = scmp.ne.s32.totalorder %s73_s29, %s6593_s30  ;;  %p6599_p7 = scmp.lt.s32.totalorder %s6593_s30, %s6593_s30 }
  0x14   :  { %p6600_p8 = por %p6599_p7, %p6598_p6 }
  0x16   :  { %p6601_p9 = pnand %p6600_p8, %p6594_p5 }
  0x18   :  { %6604 = shalt.err (!%p6601_p9)
}
  0x19   :  { %s6697_s13 = smov 256   ;;  %s6698_s14 = smov 16  }
  0x1a   :  { %78 = dma.hbm_to_vmem [thread:$0]  %s8611_s8, 4096, %s73_s29, [#allocation9], %s6697_s13, %s6697_s13, %s6698_s14  }
  0x1b   :  { %s6699_s17 = smov [#allocation2]  }
  0x1c   :  { %s26_s18 = sshll.u32 %s6699_s17, 4  ;;  %s27_s18 = int_to_ptr.vmem [resolvable:$true] %s26_s18 }
  0x1d   :  { %s6613_s1 = scalar_lea.vmem %s27_s18, 2048  ;;  %p6618_p11 = scmp.lt.s32.totalorder %s27_s18, %s27_s18 }
  0x1e   :  { %p6614_p10 = scmp.ne.s32.totalorder %s27_s18, %s6613_s1  ;;  %p6619_p12 = scmp.lt.s32.totalorder %s6613_s1, %s6613_s1 }
  0x20   :  { %p6620_p13 = por %p6619_p12, %p6618_p11 }
  0x22   :  { %p6621_p0 = pnand %p6620_p13, %p6614_p10 }
  0x24   :  { %6624 = shalt.err (!%p6621_p0)
}
  0x25   :  { %s6700_s19 = smov 128   ;;  %s6701_s20 = smov 8  }
  0x26   :  { %32 = dma.hbm_to_vmem [thread:$0]  %s8603_s0, 2048, %s27_s18, [#allocation3], %s6700_s19, %s6700_s19, %s6701_s20  }
  0x27   :  { %s6702_s8 = smov [#allocation7]  }
  0x28   :  { %s50_s23 = sshll.u32 %s6702_s8, 4  ;;  %s51_s23 = int_to_ptr.vmem [resolvable:$true] %s50_s23 }
  0x29   :  { %s6633_s24 = scalar_lea.vmem %s51_s23, 1024  ;;  %p6638_p2 = scmp.lt.s32.totalorder %s51_s23, %s51_s23 }
  0x2a   :  { %p6634_p1 = scmp.ne.s32.totalorder %s51_s23, %s6633_s24  ;;  %p6639_p3 = scmp.lt.s32.totalorder %s6633_s24, %s6633_s24 }
  0x2c   :  { %p6640_p4 = por %p6639_p3, %p6638_p2 }
  0x2e   :  { %p6641_p5 = pnand %p6640_p4, %p6634_p1 }
  0x30   :  { %6644 = shalt.err (!%p6641_p5)
}
  0x31   :  { %s6703_s25 = smov 64   ;;  %s6704_s26 = smov 4  }
  0x32   :  { %56 = dma.hbm_to_vmem [thread:$0]  %s8605_s2, 1024, %s51_s23, [#allocation6], %s6703_s25, %s6703_s25, %s6704_s26  }
  0x33   :  { %s6705_s29 = smov [#allocation10]  }
  0x34   :  { %s86_s0 = sshll.u32 %s6705_s29, 4  ;;  %s87_s0 = int_to_ptr.vmem [resolvable:$true] %s86_s0 }
  0x35   :  { %s6653_s30 = scalar_lea.vmem %s87_s0, 4096  ;;  %p6658_p7 = scmp.lt.s32.totalorder %s87_s0, %s87_s0 }
  0x36   :  { %p6654_p6 = scmp.ne.s32.totalorder %s87_s0, %s6653_s30  ;;  %p6659_p8 = scmp.lt.s32.totalorder %s6653_s30, %s6653_s30 }
  0x38   :  { %p6660_p9 = por %p6659_p8, %p6658_p7 }
  0x3a   :  { %p6661_p10 = pnand %p6660_p9, %p6654_p6 }
  0x3c   :  { %6664 = shalt.err (!%p6661_p10)
}
  0x3d   :  { %92 = dma.hbm_to_vmem [thread:$0]  %s8613_s10, 4096, %s87_s0, [#allocation9], %s6703_s25, %s6703_s25, %s6704_s26  }
  0x3e   :  { %6685 = dma.done.wait [#allocation3], 2048  }
  0x3f   :  { %6686 = vsyncadd [#allocation3], 4294965248 }
  0x40   :  { %6687 = dma.done.wait [#allocation6], 4096  }
  0x41   :  { %6688 = vsyncadd [#allocation6], 4294963200 }
  0x42   :  { %6689 = dma.done.wait [#allocation9], 8192  }
  0x43   :  { %6690 = vsyncadd [#allocation9], 4294959104  ;;  %v111_v0 = vld [vmem:[#allocation2] sm:$0xff]  ;;  %v113_v1 = vld [vmem:[#allocation2 + $0x10] sm:$0xff]  ;;  %vm775_vm0 = vcmask 261120   ;;  %vm873_vm2 = vcmask 523264  }
  0x44   :  { %129 = vadd.xlane.f32.xlu0 %v111_v0  ;;  %133 = vadd.xlane.f32.xlu1 %v113_v1  ;;  %v112_v2 = vld [vmem:[#allocation2 + $0x8] sm:$0xff]  ;;  %v114_v3 = vld [vmem:[#allocation2 + $0x18] sm:$0xff]  ;;  %v115_v4 = vld [vmem:[#allocation2 + $0x20] sm:$0xff]  ;;  %s6708_s16 = smov 32  }
  0x45   :  { %v116_v5 = vld [vmem:[#allocation2 + $0x28] sm:$0xff]  ;;  %v117_v6 = vld [vmem:[#allocation2 + $0x30] sm:$0xff]  ;;  %v118_v7 = vld [vmem:[#allocation2 + $0x38] sm:$0xff] }
  0x46   :  { %v6101_v8 = vld [vmem:[#allocation5 + $0xac] ss:$12 sps:$4 sm:$0xff]   ;;  %v6103_v9 = vld [vmem:[#allocation5 + $0xa8] ss:$12 sps:$4 sm:$0xff]   ;;  %v6106_v42 = vld [vmem:[#allocation5 + $0xb0] ss:$12 sps:$4 sm:$0xff]  }
  0x47   :  { %518 = vmatprep.subr.bf16.mxu0 %v6101_v8  ;;  %v6104_v41 = vld [vmem:[#allocation5 + $0x94] ss:$12 sps:$4 sm:$0xff]   ;;  %v6107_v43 = vld [vmem:[#allocation5 + $0x90] ss:$12 sps:$4 sm:$0xff]   ;;  %5668 = vmatprep.subr.bf16.mxu1 %v6106_v42  ;;  %v6110_v47 = vld [vmem:[#allocation5 + $0x98] ss:$12 sps:$4 sm:$0xff]  }
  0x48   :  { %131 = vadd.xlane.f32.xlu0 %v112_v2  ;;  %135 = vadd.xlane.f32.xlu1 %v114_v3  ;;  %v6829_v45 = vld [vmem:[#allocation2 + $0x40] sm:$0xff]  ;;  %v6108_v46 = vld [vmem:[#allocation5 + $0x7c] ss:$12 sps:$4 sm:$0xff]   ;;  %v6834_v50 = vld [vmem:[#allocation2 + $0x50] sm:$0xff] }
  0x49   :  { %519 = vmatpush1.bf16.msra.mxu0 %v6103_v9  ;;  %5669 = vmatpush3.bf16.msra.mxu1 %v6106_v42  ;;  %v6111_v48 = vld [vmem:[#allocation5 + $0x78] ss:$12 sps:$4 sm:$0xff]   ;;  %v6832_v49 = vld [vmem:[#allocation2 + $0x48] sm:$0xff]  ;;  %v6846_v60 = vld [vmem:[#allocation2 + $0x70] sm:$0xff] }
  0x4a   :  { %520 = vmatprep.subr.bf16.mxu0 %v6104_v41  ;;  %5670 = vmatprep.subr.bf16.mxu1 %v6110_v47  ;;  %v6112_v51 = vld [vmem:[#allocation5 + $0x64] ss:$12 sps:$4 sm:$0xff]   ;;  %v6114_v52 = vld [vmem:[#allocation5 + $0x80] ss:$12 sps:$4 sm:$0xff]   ;;  %v6838_v54 = vld [vmem:[#allocation2 + $0x58] sm:$0xff] }
  0x4b   :  { %v6115_v53 = vld [vmem:[#allocation5 + $0x60] ss:$12 sps:$4 sm:$0xff]   ;;  %v6118_v57 = vld [vmem:[#allocation5 + $0x68] ss:$12 sps:$4 sm:$0xff]   ;;  %v6122_v62 = vld [vmem:[#allocation5 + $0x50] ss:$12 sps:$4 sm:$0xff]  }
  0x4c   :  { %137 = vadd.xlane.f32.xlu0 %v115_v4  ;;  %139 = vadd.xlane.f32.xlu1 %v116_v5  ;;  %v6840_v55 = vld [vmem:[#allocation2 + $0x60] sm:$0xff]  ;;  %v6116_v56 = vld [vmem:[#allocation5 + $0x4c] ss:$12 sps:$4 sm:$0xff]   ;;  %v6119_v58 = vld [vmem:[#allocation5 + $0x48] ss:$12 sps:$4 sm:$0xff]  }
  0x4d   :  { %521 = vmatpush1.bf16.msra.mxu0 %v6107_v43  ;;  %5671 = vmatpush3.bf16.msra.mxu1 %v6110_v47  ;;  %v6844_v59 = vld [vmem:[#allocation2 + $0x68] sm:$0xff]  ;;  %v6120_v61 = vld [vmem:[#allocation5 + $0x34] ss:$12 sps:$4 sm:$0xff]   ;;  %v6123_v63 = vld [vmem:[#allocation5 + $0x30] ss:$12 sps:$4 sm:$0xff]  }
  0x4e   :  { %522 = vmatprep.subr.bf16.mxu0 %v6108_v46  ;;  %5672 = vmatprep.subr.bf16.mxu1 %v6114_v52  ;;  %v6132_v8 = vld [vmem:[#allocation5 + $0x8] ss:$12 sps:$4 sm:$0xff]  }
  0x50   :  { %141 = vadd.xlane.f32.xlu0 %v117_v6  ;;  %143 = vadd.xlane.f32.xlu1 %v118_v7 }
  0x51   :  { %523 = vmatpush1.bf16.msra.mxu0 %v6111_v48  ;;  %5673 = vmatpush3.bf16.msra.mxu1 %v6114_v52 }
  0x52   :  { %524 = vmatprep.subr.bf16.mxu0 %v6112_v51  ;;  %5674 = vmatprep.subr.bf16.mxu1 %v6118_v57 }
  0x55   :  { %525 = vmatpush1.bf16.msra.mxu0 %v6115_v53  ;;  %5675 = vmatpush3.bf16.msra.mxu1 %v6118_v57 }
  0x56   :  { %526 = vmatprep.subr.bf16.mxu0 %v6116_v56  ;;  %5676 = vmatprep.subr.bf16.mxu1 %v6122_v62 }
  0x59   :  { %527 = vmatpush1.bf16.msra.mxu0 %v6119_v58  ;;  %5677 = vmatpush3.bf16.msra.mxu1 %v6122_v62  ;;  %v6869_v62 = vld [vmem:[%s8608_s5] ss:$0 sm:$0xff]  ;;  %s6707_s5 = smov 96  }
  0x5a   :  { %528 = vmatprep.subr.bf16.mxu0 %v6120_v61 }
  0x5d   :  { %529 = vmatpush1.bf16.msra.mxu0 %v6123_v63 }
  0xcd   :  { %v130_v10 = vpop.xlane.xlu0 %129  ;;  %v134_v11 = vpop.xlane.xlu1 %133 }
  0xce   :  { %v162_v12 = vmul.f32 0.0078125, %v130_v10  ;;  %v164_v13 = vmul.f32 0.0078125, %v134_v11 }
  0xd0   :  { %v6797_v14 = vsub.f32 %v111_v0, %v162_v12  ;;  %v6799_v15 = vsub.f32 %v113_v1, %v164_v13  ;;  %v6850_v0 = vld [vmem:[#allocation2 + $0x78] sm:$0xff] }
  0xd1   :  { %v132_v16 = vpop.xlane.xlu0 %131  ;;  %v136_v17 = vpop.xlane.xlu1 %135  ;;  %v6124_v1 = vld [vmem:[#allocation5 + $0x1c] ss:$12 sps:$4 sm:$0xff]  }
  0xd2   :  { %v163_v18 = vmul.f32 0.0078125, %v132_v16  ;;  %v194_v19 = vmul.f32 %v6797_v14, %v6797_v14  ;;  %v165_v20 = vmul.f32 0.0078125, %v136_v17  ;;  %v196_v21 = vmul.f32 %v6799_v15, %v6799_v15  ;;  %530 = vmatprep.subr.bf16.mxu0 %v6124_v1 }
  0xd4   :  { %210 = vadd.xlane.f32.xlu0 %v194_v19  ;;  %v6805_v22 = vsub.f32 %v112_v2, %v163_v18  ;;  %v6807_v23 = vsub.f32 %v114_v3, %v165_v20  ;;  %v6126_v2 = vld [vmem:[#allocation5 + $0x38] ss:$12 sps:$4 sm:$0xff]  }
  0xd5   :  { %v138_v24 = vpop.xlane.xlu0 %137  ;;  %v140_v25 = vpop.xlane.xlu1 %139  ;;  %v6127_v3 = vld [vmem:[#allocation5 + $0x18] ss:$12 sps:$4 sm:$0xff]   ;;  %5678 = vmatprep.subr.bf16.mxu1 %v6126_v2 }
  0xd6   :  { %v166_v26 = vmul.f32 0.0078125, %v138_v24  ;;  %v195_v27 = vmul.f32 %v6805_v22, %v6805_v22  ;;  %v167_v28 = vmul.f32 0.0078125, %v140_v25  ;;  %v197_v29 = vmul.f32 %v6807_v23, %v6807_v23  ;;  %531 = vmatpush1.bf16.msra.mxu0 %v6127_v3  ;;  %5679 = vmatpush3.bf16.msra.mxu1 %v6126_v2 }
  0xd8   :  { %214 = vadd.xlane.f32.xlu0 %v196_v21  ;;  %212 = vadd.xlane.f32.xlu1 %v195_v27  ;;  %v6813_v30 = vsub.f32 %v115_v4, %v166_v26  ;;  %v6815_v31 = vsub.f32 %v116_v5, %v167_v28  ;;  %v6128_v4 = vld [vmem:[#allocation5 + $0x4] ss:$12 sps:$4 sm:$0xff]   ;;  %v6130_v5 = vld [vmem:[#allocation5 + $0x20] ss:$12 sps:$4 sm:$0xff]  }
  0xd9   :  { %v142_v32 = vpop.xlane.xlu0 %141  ;;  %v144_v33 = vpop.xlane.xlu1 %143  ;;  %532 = vmatprep.subr.bf16.mxu0 %v6128_v4  ;;  %5680 = vmatprep.subr.bf16.mxu1 %v6130_v5 }
  0xda   :  { %v168_v34 = vmul.f32 0.0078125, %v142_v32  ;;  %v198_v35 = vmul.f32 %v6813_v30, %v6813_v30  ;;  %v169_v36 = vmul.f32 0.0078125, %v144_v33  ;;  %v199_v37 = vmul.f32 %v6815_v31, %v6815_v31  ;;  %5681 = vmatpush3.bf16.msra.mxu1 %v6130_v5 }
  0xdb   :  { %5682 = vmatprep.subr.bf16.mxu1 %v6132_v8 }
  0xdc   :  { %216 = vadd.xlane.f32.xlu1 %v197_v29  ;;  %218 = vadd.xlane.f32.xlu0 %v198_v35  ;;  %v6821_v38 = vsub.f32 %v117_v6, %v168_v34  ;;  %v6823_v39 = vsub.f32 %v118_v7, %v169_v36  ;;  %v8616_v6 = vmov 0   ;;  %v6131_v7 = vld [vmem:[#allocation5] ss:$12 sps:$4 sm:$0xff]  }
  0xdd   :  { %550 = vmatprep.mubr.bf16.mxu0 %v8616_v6  ;;  %533 = vmatpush1.bf16.msra.mxu0 %v6131_v7 }
  0xde   :  { %v200_v40 = vmul.f32 %v6821_v38, %v6821_v38  ;;  %v201_v44 = vmul.f32 %v6823_v39, %v6823_v39  ;;  %5683 = vmatpush3.bf16.msra.mxu1 %v6132_v8 }
  0xe0   :  { %220 = vadd.xlane.f32.xlu1 %v199_v37  ;;  %222 = vadd.xlane.f32.xlu0 %v200_v40 }
  0xe4   :  { %224 = vadd.xlane.f32.xlu1 %v201_v44  ;;  %145 = vadd.xlane.f32.xlu0 %v6829_v45  ;;  %v6857_v44 = vld [vmem:[%s8607_s4] ss:$0 sm:$0xff] }
  0xe8   :  { %147 = vadd.xlane.f32.xlu1 %v6832_v49  ;;  %149 = vadd.xlane.f32.xlu0 %v6834_v50 }
  0xec   :  { %151 = vadd.xlane.f32.xlu1 %v6838_v54  ;;  %153 = vadd.xlane.f32.xlu0 %v6840_v55 }
  0xf0   :  { %155 = vadd.xlane.f32.xlu1 %v6844_v59  ;;  %157 = vadd.xlane.f32.xlu0 %v6846_v60 }
  0xf4   :  { %159 = vadd.xlane.f32.xlu1 %v6850_v0 }
 0x15d   :  { %v211_v9 = vpop.xlane.xlu0 %210 }
 0x15e   :  { %v242_v10 = vmul.f32 0.0078125, %v211_v9 }
 0x160   :  { %v258_v11 = vadd.f32 1e-05, %v242_v10 }
 0x161   :  { %v213_v12 = vpop.xlane.xlu1 %212  ;;  %v215_v13 = vpop.xlane.xlu0 %214 }
 0x162   :  { %6221 = vrsqrt.f32 %v258_v11  ;;  %v243_v16 = vmul.f32 0.0078125, %v213_v12  ;;  %v244_v17 = vmul.f32 0.0078125, %v215_v13 }
 0x164   :  { %v259_v18 = vadd.f32 1e-05, %v243_v16  ;;  %v260_v19 = vadd.f32 1e-05, %v244_v17 }
 0x165   :  { %v217_v20 = vpop.xlane.xlu1 %216  ;;  %v219_v21 = vpop.xlane.xlu0 %218 }
 0x166   :  { %6223 = vrsqrt.f32 %v259_v18  ;;  %v245_v24 = vmul.f32 0.0078125, %v217_v20  ;;  %v246_v25 = vmul.f32 0.0078125, %v219_v21 }
 0x167   :  { %6225 = vrsqrt.f32 %v260_v19 }
 0x168   :  { %v261_v26 = vadd.f32 1e-05, %v245_v24  ;;  %v262_v27 = vadd.f32 1e-05, %v246_v25 }
 0x169   :  { %v221_v28 = vpop.xlane.xlu1 %220  ;;  %v223_v29 = vpop.xlane.xlu0 %222 }
 0x16a   :  { %6227 = vrsqrt.f32 %v261_v26  ;;  %v247_v32 = vmul.f32 0.0078125, %v221_v28  ;;  %v248_v33 = vmul.f32 0.0078125, %v223_v29 }
 0x16b   :  { %6229 = vrsqrt.f32 %v262_v27 }
 0x16c   :  { %v263_v34 = vadd.f32 1e-05, %v247_v32  ;;  %v264_v35 = vadd.f32 1e-05, %v248_v33 }
 0x16d   :  { %v225_v36 = vpop.xlane.xlu1 %224  ;;  %v146_v37 = vpop.xlane.xlu0 %145 }
 0x16e   :  { %6231 = vrsqrt.f32 %v263_v34  ;;  %v249_v40 = vmul.f32 0.0078125, %v225_v36  ;;  %v170_v41 = vmul.f32 0.0078125, %v146_v37 }
 0x16f   :  { %v6222_v42 = vpop.eup %6221  ;;  %6233 = vrsqrt.f32 %v264_v35 }
 0x170   :  { %v265_v43 = vadd.f32 1e-05, %v249_v40  ;;  %v290_v46 = vmul.f32 %v6222_v42, %v6797_v14  ;;  %v6861_v47 = vsub.f32 %v6829_v45, %v170_v41 }
 0x171   :  { %v148_v48 = vpop.xlane.xlu1 %147  ;;  %v150_v51 = vpop.xlane.xlu0 %149 }
 0x172   :  { %6235 = vrsqrt.f32 %v265_v43  ;;  %v171_v52 = vmul.f32 0.0078125, %v148_v48  ;;  %v202_v53 = vmul.f32 %v6861_v47, %v6861_v47  ;;  %v312_v57 = vmul.f32 %v6857_v44, %v290_v46 }
 0x173   :  { %v6224_v56 = vpop.eup %6223  ;;  %v172_v58 = vmul.f32 0.0078125, %v150_v51 }
 0x174   :  { %v6226_v61 = vpop.eup %6225  ;;  %v291_v14 = vmul.f32 %v6224_v56, %v6805_v22  ;;  %v6873_v45 = vsub.f32 %v6832_v49, %v171_v52  ;;  %226 = vadd.xlane.f32.xlu0 %v202_v53  ;;  %v334_v22 = vadd.f32 %v6869_v62, %v312_v57 }
 0x175   :  { %v292_v63 = vmul.f32 %v6226_v61, %v6799_v15  ;;  %v152_v1 = vpop.xlane.xlu1 %151  ;;  %v6877_v2 = vsub.f32 %v6834_v50, %v172_v58  ;;  %v154_v3 = vpop.xlane.xlu0 %153 }
 0x176   :  { %v313_v4 = vmul.f32 %v6857_v44, %v291_v14  ;;  %v203_v5 = vmul.f32 %v6873_v45, %v6873_v45  ;;  %v173_v7 = vmul.f32 0.0078125, %v152_v1  ;;  %v174_v8 = vmul.f32 0.0078125, %v154_v3 }
 0x177   :  { %v6228_v9 = vpop.eup %6227  ;;  %v314_v49 = vmul.f32 %v6857_v44, %v292_v63  ;;  %v204_v15 = vmul.f32 %v6877_v2, %v6877_v2 }
 0x178   :  { %v6230_v10 = vpop.eup %6229  ;;  %v335_v50 = vadd.f32 %v6869_v62, %v313_v4  ;;  %v293_v11 = vmul.f32 %v6228_v9, %v6807_v23  ;;  %228 = vadd.xlane.f32.xlu1 %v203_v5  ;;  %v6889_v12 = vsub.f32 %v6838_v54, %v173_v7  ;;  %v6892_v13 = vsub.f32 %v6840_v55, %v174_v8 }
 0x179   :  { %v294_v16 = vmul.f32 %v6230_v10, %v6813_v30  ;;  %230 = vadd.xlane.f32.xlu0 %v204_v15  ;;  %v156_v17 = vpop.xlane.xlu1 %155  ;;  %v158_v18 = vpop.xlane.xlu0 %157  ;;  %v336_v25 = vadd.f32 %v6869_v62, %v314_v49 }
 0x17a   :  { %v350_v19 = vpack.c.bf16 %v335_v50, %v334_v22  ;;  %v315_v20 = vmul.f32 %v6857_v44, %v293_v11  ;;  %v205_v21 = vmul.f32 %v6889_v12, %v6889_v12  ;;  %v175_v24 = vmul.f32 0.0078125, %v156_v17 }
 0x17b   :  { %v6232_v23 = vpop.eup %6231  ;;  %v316_v54 = vmul.f32 %v6857_v44, %v294_v16  ;;  %v206_v55 = vmul.f32 %v6892_v13, %v6892_v13  ;;  %v176_v26 = vmul.f32 0.0078125, %v158_v18 }
 0x17c   :  { %v6234_v30 = vpop.eup %6233  ;;  %551 = vmatmul.mubr.bf16.vlgmr.msra.gmra.mxu0 %v350_v19  ;;  %5684 = vmatprep.mubr.bf16.mxu1 %v350_v19  ;;  %v337_v27 = vadd.f32 %v6869_v62, %v315_v20  ;;  %v295_v28 = vmul.f32 %v6232_v23, %v6815_v31  ;;  %v6905_v29 = vsub.f32 %v6844_v59, %v175_v24 }
 0x17d   :  { %560 = vmatprep.mubr.bf16.mxu0 %v8616_v6  ;;  %v296_v32 = vmul.f32 %v6234_v30, %v6821_v38  ;;  %232 = vadd.xlane.f32.xlu1 %v205_v21  ;;  %v160_v33 = vpop.xlane.xlu1 %159  ;;  %v6910_v34 = vsub.f32 %v6846_v60, %v176_v26  ;;  %v338_v59 = vadd.f32 %v6869_v62, %v316_v54 }
 0x17e   :  { %v351_v35 = vpack.c.bf16 %v337_v27, %v336_v25  ;;  %v317_v36 = vmul.f32 %v6857_v44, %v295_v28  ;;  %v207_v37 = vmul.f32 %v6905_v29, %v6905_v29  ;;  %234 = vadd.xlane.f32.xlu0 %v206_v55  ;;  %v177_v31 = vmul.f32 0.0078125, %v160_v33 }
 0x17f   :  { %v6236_v40 = vpop.eup %6235  ;;  %v208_v41 = vmul.f32 %v6910_v34, %v6910_v34  ;;  %v318_v42 = vmul.f32 %v6857_v44, %v296_v32 }
 0x180   :  { %5685 = vmatmul.mubr.bf16.vlgmr.msra.gmra.mxu1 %v351_v35  ;;  %v339_v38 = vadd.f32 %v6869_v62, %v317_v36  ;;  %v297_v60 = vmul.f32 %v6236_v40, %v6823_v39  ;;  %v6922_v43 = vsub.f32 %v6850_v0, %v177_v31 }
 0x181   :  { %236 = vadd.xlane.f32.xlu1 %v207_v37  ;;  %v340_v52 = vadd.f32 %v6869_v62, %v318_v42 }
 0x182   :  { %v352_v46 = vpack.c.bf16 %v339_v38, %v338_v59  ;;  %v319_v48 = vmul.f32 %v6857_v44, %v297_v60  ;;  %v209_v51 = vmul.f32 %v6922_v43, %v6922_v43  ;;  %238 = vadd.xlane.f32.xlu0 %v208_v41 }
 0x184   :  { %561 = vmatmul.mubr.bf16.gmra.mxu0 %v351_v35  ;;  %5688 = vmatprep.mubr.bf16.mxu1 %v352_v46  ;;  %v341_v53 = vadd.f32 %v6869_v62, %v319_v48 }
 0x185   :  { %570 = vmatprep.mubr.bf16.mxu0 %v8616_v6  ;;  %240 = vadd.xlane.f32.xlu1 %v209_v51 }
 0x186   :  { %v353_v39 = vpack.c.bf16 %v341_v53, %v340_v52 }
 0x188   :  { %5689 = vmatmul.mubr.bf16.gmra.mxu1 %v353_v39 }
 0x18c   :  { %571 = vmatmul.mubr.bf16.gmra.mxu0 %v352_v46 }
 0x18d   :  { %580 = vmatprep.mubr.bf16.mxu0 %v8616_v6 }
 0x194   :  { %581 = vmatmul.mubr.bf16.gmra.mxu0 %v353_v39 }
 0x195   :  { %590 = vmatprep.mubr.bf16.mxu0 %v8616_v6 }
 0x1fd   :  { %v227_v0 = vpop.xlane.xlu0 %226 }
 0x1fe   :  { %v250_v56 = vmul.f32 0.0078125, %v227_v0 }
 0x200   :  { %v266_v57 = vadd.f32 1e-05, %v250_v56 }
 0x201   :  { %v229_v58 = vpop.xlane.xlu1 %228 }
 0x202   :  { %v251_v61 = vmul.f32 0.0078125, %v229_v58  ;;  %6237 = vrsqrt.f32 %v266_v57  ;;  %v231_v14 = vpop.xlane.xlu0 %230 }
 0x203   :  { %v252_v63 = vmul.f32 0.0078125, %v231_v14 }
 0x204   :  { %v267_v1 = vadd.f32 1e-05, %v251_v61 }
 0x205   :  { %v268_v3 = vadd.f32 1e-05, %v252_v63 }
 0x206   :  { %6239 = vrsqrt.f32 %v267_v1  ;;  %v233_v4 = vpop.xlane.xlu1 %232 }
 0x207   :  { %v253_v5 = vmul.f32 0.0078125, %v233_v4  ;;  %6241 = vrsqrt.f32 %v268_v3  ;;  %v235_v7 = vpop.xlane.xlu0 %234 }
 0x208   :  { %v254_v8 = vmul.f32 0.0078125, %v235_v7 }
 0x209   :  { %v269_v9 = vadd.f32 1e-05, %v253_v5 }
 0x20a   :  { %v237_v22 = vpop.xlane.xlu1 %236  ;;  %v270_v49 = vadd.f32 1e-05, %v254_v8 }
 0x20b   :  { %6243 = vrsqrt.f32 %v269_v9  ;;  %v255_v15 = vmul.f32 0.0078125, %v237_v22  ;;  %v239_v10 = vpop.xlane.xlu0 %238 }
 0x20c   :  { %6245 = vrsqrt.f32 %v270_v49  ;;  %v256_v50 = vmul.f32 0.0078125, %v239_v10 }
 0x20d   :  { %v271_v11 = vadd.f32 1e-05, %v255_v15 }
 0x20e   :  { %v241_v16 = vpop.xlane.xlu1 %240  ;;  %v272_v17 = vadd.f32 1e-05, %v256_v50 }
 0x20f   :  { %v6238_v18 = vpop.eup %6237  ;;  %6247 = vrsqrt.f32 %v271_v11  ;;  %v257_v19 = vmul.f32 0.0078125, %v241_v16 }
 0x210   :  { %6249 = vrsqrt.f32 %v272_v17  ;;  %v298_v20 = vmul.f32 %v6238_v18, %v6861_v47 }
 0x211   :  { %v273_v21 = vadd.f32 1e-05, %v257_v19 }
 0x212   :  { %v320_v24 = vmul.f32 %v6857_v44, %v298_v20 }
 0x213   :  { %v6240_v23 = vpop.eup %6239  ;;  %6251 = vrsqrt.f32 %v273_v21 }
 0x214   :  { %v6242_v25 = vpop.eup %6241  ;;  %v299_v54 = vmul.f32 %v6240_v23, %v6873_v45  ;;  %v342_v30 = vadd.f32 %v6869_v62, %v320_v24 }
 0x215   :  { %v300_v55 = vmul.f32 %v6242_v25, %v6877_v2 }
 0x216   :  { %v321_v26 = vmul.f32 %v6857_v44, %v299_v54 }
 0x217   :  { %v322_v27 = vmul.f32 %v6857_v44, %v300_v55 }
 0x218   :  { %v6244_v28 = vpop.eup %6243  ;;  %v343_v32 = vadd.f32 %v6869_v62, %v321_v26 }
 0x219   :  { %v6246_v47 = vpop.eup %6245  ;;  %v301_v33 = vmul.f32 %v6244_v28, %v6889_v12  ;;  %v344_v45 = vadd.f32 %v6869_v62, %v322_v27 }
 0x21a   :  { %v354_v35 = vpack.c.bf16 %v343_v32, %v342_v30  ;;  %v302_v36 = vmul.f32 %v6246_v47, %v6892_v13 }
 0x21b   :  { %v323_v37 = vmul.f32 %v6857_v44, %v301_v33 }
 0x21c   :  { %v6248_v2 = vpop.eup %6247  ;;  %591 = vmatmul.mubr.bf16.gmra.mxu0 %v354_v35  ;;  %5692 = vmatprep.mubr.bf16.mxu1 %v354_v35  ;;  %v324_v31 = vmul.f32 %v6857_v44, %v302_v36 }
 0x21d   :  { %v6250_v40 = vpop.eup %6249  ;;  %600 = vmatprep.mubr.bf16.mxu0 %v8616_v6  ;;  %v345_v59 = vadd.f32 %v6869_v62, %v323_v37  ;;  %v303_v41 = vmul.f32 %v6248_v2, %v6905_v29 }
 0x21e   :  { %v304_v12 = vmul.f32 %v6250_v40, %v6910_v34  ;;  %v346_v60 = vadd.f32 %v6869_v62, %v324_v31 }
 0x21f   :  { %v355_v38 = vpack.c.bf16 %v345_v59, %v344_v45  ;;  %v325_v13 = vmul.f32 %v6857_v44, %v303_v41 }
 0x220   :  { %v6252_v42 = vpop.eup %6251  ;;  %v326_v46 = vmul.f32 %v6857_v44, %v304_v12 }
 0x221   :  { %v347_v48 = vadd.f32 %v6869_v62, %v325_v13  ;;  %5693 = vmatmul.mubr.bf16.gmra.mxu1 %v355_v38  ;;  %v305_v51 = vmul.f32 %v6252_v42, %v6922_v43 }
 0x222   :  { %v348_v29 = vadd.f32 %v6869_v62, %v326_v46 }
 0x223   :  { %v356_v52 = vpack.c.bf16 %v347_v48, %v346_v60  ;;  %v327_v53 = vmul.f32 %v6857_v44, %v305_v51 }
 0x224   :  { %601 = vmatmul.mubr.bf16.gmra.mxu0 %v355_v38 }
 0x225   :  { %610 = vmatprep.mubr.bf16.mxu0 %v8616_v6  ;;  %5696 = vmatprep.mubr.bf16.mxu1 %v356_v52  ;;  %v349_v34 = vadd.f32 %v6869_v62, %v327_v53 }
 0x227   :  { %v357_v39 = vpack.c.bf16 %v349_v34, %v348_v29 }
 0x229   :  { %5697 = vmatmul.mubr.bf16.gmra.mxu1 %v357_v39 }
 0x22c   :  { %611 = vmatmul.mubr.bf16.gmra.mxu0 %v356_v52 }
 0x22d   :  { %620 = vmatprep.mubr.bf16.mxu0 %v8616_v6 }
 0x234   :  { %621 = vmatmul.mubr.bf16.gmra.mxu0 %v357_v39 }
 0x23c   :  { %v552_v0 = vpop.f32.mrf.mxu0 }
 0x23e   :  { %v554_v56 = vpop.f32.mrf.mxu0 }
 0x240   :  { %v556_v43 = vpop.f32.mrf.mxu0  ;;  %v5686_v49 = vpop.f32.mrf.mxu1 }
 0x241   :  { %v6959_v57 = vpack.c.bf16 %v556_v43, %v552_v0 }
 0x242   :  { %v558_v44 = vpop.f32.mrf.mxu0  ;;  %v665_v16 = vpop.f32.mrf.mxu1 }
 0x243   :  { %5708 = vmatprep.mubr.msk.bf16.mxu1 %vm775_vm0, %v6959_v57  ;;  %v6971_v10 = vpack.c.bf16 %v558_v44, %v554_v56 }
 0x244   :  { %v562_v58 = vpop.f32.mrf.mxu0  ;;  %v5687_v18 = vpop.f32.mrf.mxu1 }
 0x245   :  { %v789_v30 = vsel %vm775_vm0, %v6971_v10, 0  ;;  %v7020_v32 = vpack.c.bf16 %v5687_v18, %v5686_v49 }
 0x246   :  { %v564_v61 = vpop.f32.mrf.mxu0  ;;  %v668_v24 = vpop.f32.mrf.mxu1 }
 0x247   :  { %v7024_v47 = vpack.c.bf16 %v668_v24, %v665_v16 }
 0x248   :  { %v566_v14 = vpop.f32.mrf.mxu0  ;;  %v5690_v23 = vpop.f32.mrf.mxu1 }
 0x249   :  { %v6983_v17 = vpack.c.bf16 %v566_v14, %v562_v58 }
 0x24a   :  { %v568_v62 = vpop.f32.mrf.mxu0  ;;  %v681_v54 = vpop.f32.mrf.mxu1 }
 0x24b   :  { %v6967_v9 = vpack.c.bf16 %v568_v62, %v564_v61 }
 0x24c   :  { %v572_v63 = vpop.f32.mrf.mxu0  ;;  %v5691_v55 = vpop.f32.mrf.mxu1 }
 0x24d   :  { %v792_v25 = vsel %vm775_vm0, %v6967_v9, 0  ;;  %v7007_v26 = vpack.c.bf16 %v5691_v55, %v5690_v23 }
 0x24e   :  { %v574_v1 = vpop.f32.mrf.mxu0  ;;  %v684_v27 = vpop.f32.mrf.mxu1 }
 0x24f   :  { %v7012_v28 = vpack.c.bf16 %v684_v27, %v681_v54 }
 0x250   :  { %v576_v3 = vpop.f32.mrf.mxu0 }
 0x251   :  { %v6993_v20 = vpack.c.bf16 %v576_v3, %v572_v63 }
 0x252   :  { %v578_v4 = vpop.f32.mrf.mxu0 }
 0x253   :  { %v6963_v5 = vpack.c.bf16 %v578_v4, %v574_v1 }
 0x254   :  { %v582_v7 = vpop.f32.mrf.mxu0 }
 0x255   :  { %1067 = vrot.lane.b32.xlu1 %v6963_v5, %s6707_s5  ;;  %v795_v21 = vsel %vm775_vm0, %v6963_v5, 0 }
 0x256   :  { %v584_v8 = vpop.f32.mrf.mxu0 }
 0x258   :  { %v586_v22 = vpop.f32.mrf.mxu0 }
 0x259   :  { %1065 = vrot.lane.b32.xlu1 %v6967_v9, %s6707_s5  ;;  %v6991_v19 = vpack.c.bf16 %v586_v22, %v582_v7 }
 0x25a   :  { %v588_v15 = vpop.f32.mrf.mxu0 }
 0x25b   :  { %v6973_v50 = vpack.c.bf16 %v588_v15, %v584_v8 }
 0x25d   :  { %1063 = vrot.lane.b32.xlu1 %v6971_v10, %s6707_s5  ;;  %6052 = vmatprep.subr.msk.bf16.mxu1 %vm775_vm0, %v6973_v50  ;;  %v798_v11 = vsel %vm775_vm0, %v6973_v50, 0 }
 0x25e   :  { %1069 = vrot.lane.b32.xlu0 %v6973_v50, %s6707_s5  ;;  %5701 = vmatpush3.bf16.xpose.msra.mxu1 %v798_v11  ;;  %v728_v11 = vlaneseq }
 0x25f   :  { %6053 = vmatprep.subr.msk.bf16.mxu1 %vm775_vm0, %v6963_v5 }
 0x260   :  { %v7075_v16 = vshrl.u32 %v728_v11, 7 }
 0x261   :  { %1053 = vrot.lane.b32.xlu1 %v6983_v17, %s6707_s5 }
 0x262   :  { %1051 = vrot.lane.b32.xlu0 %v6959_v57, %s6707_s5  ;;  %8627 = vst [vmem:[#allocation21_spill] sm:$0xff] %v7075_v16  ;;  %v731_v18 = vadd.s32 16, %v7075_v16  ;;  %v732_v55 = vadd.s32 24, %v7075_v16 }
 0x265   :  { %1057 = vrot.lane.b32.xlu1 %v6991_v19, %s6707_s5 }
 0x266   :  { %1055 = vrot.lane.b32.xlu0 %v6993_v20, %s6707_s5  ;;  %5703 = vmatpush3.bf16.xpose.msra.mxu1 %v795_v21  ;;  %v738_v21 = vand.u32 127, %v728_v11 }
 0x267   :  { %6054 = vmatprep.subr.msk.bf16.mxu1 %vm775_vm0, %v6967_v9 }
 0x268   :  { %vm7080_vm1 = vcmp.ge.s32.totalorder %v731_v18, %v738_v21  ;;  %vm7085_vm3 = vcmp.ge.s32.totalorder %v7075_v16, %v738_v21  ;;  %vm7101_vm4 = vcmp.ge.s32.totalorder %v732_v55, %v738_v21 }
 0x26e   :  { %5705 = vmatpush3.bf16.xpose.msra.mxu1 %v792_v25 }
 0x26f   :  { %6055 = vmatprep.subr.msk.bf16.mxu1 %vm775_vm0, %v6971_v10 }
 0x276   :  { %5707 = vmatpush3.bf16.xpose.msra.mxu1 %v789_v30  ;;  %v730_v30 = vadd.s32 8, %v7075_v16 }
 0x277   :  { %5716 = vmatprep.subr.bf16.mxu1 %v7007_v26 }
 0x278   :  { %vm7106_vm5 = vcmp.ge.s32.totalorder %v730_v30, %v738_v21 }
 0x27d   :  { %5709 = vmatmul.mubr.msk.bf16.vlgmr.msra.gmra.mxu1 %vm775_vm0, %v6983_v17 }
 0x27e   :  { %5712 = vmatprep.mubr.msk.bf16.mxu1 %vm775_vm0, %v6993_v20  ;;  %5717 = vmatpush3.bf16.msra.mxu1 %v7007_v26 }
 0x27f   :  { %5718 = vmatprep.subr.bf16.mxu1 %v7012_v28 }
 0x282   :  { %5719 = vmatpush3.bf16.msra.mxu1 %v7012_v28 }
 0x283   :  { %5720 = vmatprep.subr.bf16.mxu1 %v7020_v32 }
 0x285   :  { %5713 = vmatmul.mubr.msk.bf16.gmra.mxu1 %vm775_vm0, %v6991_v19 }
 0x286   :  { %5721 = vmatpush3.bf16.msra.mxu1 %v7020_v32 }
 0x287   :  { %5722 = vmatprep.subr.bf16.mxu1 %v7024_v47 }
 0x28a   :  { %5723 = vmatpush3.bf16.msra.mxu1 %v7024_v47 }
 0x2c7   :  { %v1068_v36 = vpop.permute.xlu1 %1067 }
 0x2c8   :  { %v1090_v45 = vsel %vm775_vm0, %v1068_v36, 0 }
 0x2cb   :  { %v1066_v2 = vpop.permute.xlu1 %1065 }
 0x2cc   :  { %v1087_v41 = vsel %vm775_vm0, %v1066_v2, 0 }
 0x2cf   :  { %v1064_v13 = vpop.permute.xlu1 %1063 }
 0x2d0   :  { %v1070_v33 = vpop.permute.xlu0 %1069  ;;  %v1084_v34 = vsel %vm775_vm0, %v1064_v13, 0 }
 0x2d1   :  { %6056 = vmatprep.subr.msk.bf16.mxu0 %vm775_vm0, %v1070_v33  ;;  %v1093_v35 = vsel %vm775_vm0, %v1070_v33, 0 }
 0x2d2   :  { %5733 = vmatpush3.bf16.xpose.msra.mxu0 %v1093_v35 }
 0x2d3   :  { %6057 = vmatprep.subr.msk.bf16.mxu0 %vm775_vm0, %v1068_v36  ;;  %v1054_v62 = vpop.permute.xlu1 %1053 }
 0x2d4   :  { %v1052_v37 = vpop.permute.xlu0 %1051 }
 0x2d5   :  { %5740 = vmatprep.mubr.msk.bf16.mxu0 %vm775_vm0, %v1052_v37 }
 0x2d7   :  { %v1058_v22 = vpop.permute.xlu1 %1057 }
 0x2d8   :  { %v1056_v1 = vpop.permute.xlu0 %1055 }
 0x2da   :  { %5735 = vmatpush3.bf16.xpose.msra.mxu0 %v1090_v45 }
 0x2db   :  { %6058 = vmatprep.subr.msk.bf16.mxu0 %vm775_vm0, %v1066_v2  ;;  %v735_v2 = vadd.s32 48, %v7075_v16 }
 0x2dc   :  { %v592_v31 = vpop.f32.mrf.mxu0 }
 0x2dd   :  { %vm7121_vm6 = vcmp.ge.s32.totalorder %v735_v2, %v738_v21 }
 0x2de   :  { %v7037_v40 = vpop.f32.mrf.mxu0 }
 0x2e0   :  { %v596_v59 = vpop.f32.mrf.mxu0 }
 0x2e1   :  { %v7040_v12 = vpack.c.bf16 %v596_v59, %v592_v31  ;;  %v5694_v38 = vpop.f32.mrf.mxu1 }
 0x2e2   :  { %5737 = vmatpush3.bf16.xpose.msra.mxu0 %v1087_v41  ;;  %v7042_v60 = vpop.f32.mrf.mxu0 }
 0x2e3   :  { %6059 = vmatprep.subr.msk.bf16.mxu0 %vm775_vm0, %v1064_v13  ;;  %v7045_v42 = vpop.f32.mrf.mxu1 }
 0x2e4   :  { %8622 = vst [vmem:[#allocation16_spill] sm:$0xff] %v7045_v42  ;;  %v602_v46 = vpop.f32.mrf.mxu0 }
 0x2e5   :  { %v5695_v48 = vpop.f32.mrf.mxu1 }
 0x2e6   :  { %v7047_v51 = vpop.f32.mrf.mxu0  ;;  %v7049_v52 = vpack.c.bf16 %v5695_v48, %v5694_v38  ;;  %v736_v38 = vadd.s32 56, %v7075_v16 }
 0x2e7   :  { %v7051_v53 = vpop.f32.mrf.mxu1 }
 0x2e8   :  { %8623 = vst [vmem:[#allocation17_spill] sm:$0xff] %v7049_v52  ;;  %8624 = vst [vmem:[#allocation18_spill] sm:$0xff] %v7051_v53  ;;  %v606_v29 = vpop.f32.mrf.mxu0  ;;  %vm7131_vm7 = vcmp.ge.s32.totalorder %v736_v38, %v738_v21 }
 0x2e9   :  { %v7054_v39 = vpack.c.bf16 %v606_v29, %v602_v46  ;;  %v5698_v0 = vpop.f32.mrf.mxu1 }
 0x2ea   :  { %5739 = vmatpush3.bf16.xpose.msra.mxu0 %v1084_v34  ;;  %v7056_v56 = vpop.f32.mrf.mxu0 }
 0x2eb   :  { %v7058_v43 = vpop.f32.mrf.mxu1 }
 0x2ec   :  { %8625 = vst [vmem:[#allocation19_spill] sm:$0xff] %v7058_v43  ;;  %v612_v44 = vpop.f32.mrf.mxu0 }
 0x2ed   :  { %v5699_v58 = vpop.f32.mrf.mxu1 }
 0x2ee   :  { %v7060_v61 = vpop.f32.mrf.mxu0  ;;  %v7062_v14 = vpack.c.bf16 %v5699_v58, %v5698_v0  ;;  %v733_v0 = vadd.s32 32, %v7075_v16 }
 0x2ef   :  { %v7078_v24 = vpop.f32.mrf.mxu1 }
 0x2f0   :  { %8626 = vst [vmem:[#allocation20_spill] sm:$0xff] %v7062_v14  ;;  %v616_v63 = vpop.f32.mrf.mxu0  ;;  %8628 = vst [vmem:[#allocation22_spill] sm:$0xff] %v7078_v24  ;;  %vm7139_vm8 = vcmp.ge.s32.totalorder %v733_v0, %v738_v21 }
 0x2f1   :  { %5741 = vmatmul.mubr.msk.bf16.vlgmr.msra.gmra.mxu0 %vm775_vm0, %v1054_v62  ;;  %v7065_v3 = vpack.c.bf16 %v616_v63, %v612_v44  ;;  %v734_v44 = vadd.s32 40, %v7075_v16 }
 0x2f2   :  { %5744 = vmatprep.mubr.msk.bf16.mxu0 %vm775_vm0, %v1056_v1  ;;  %v7068_v4 = vpop.f32.mrf.mxu0 }
 0x2f3   :  { %vm7143_vm9 = vcmp.ge.s32.totalorder %v734_v44, %v738_v21 }
 0x2f4   :  { %v622_v7 = vpop.f32.mrf.mxu0 }
 0x2f6   :  { %v7070_v8 = vpop.f32.mrf.mxu0 }
 0x2f8   :  { %v626_v49 = vpop.f32.mrf.mxu0 }
 0x2f9   :  { %5745 = vmatmul.mubr.msk.bf16.gmra.mxu0 %vm775_vm0, %v1058_v22  ;;  %v7073_v15 = vpack.c.bf16 %v626_v49, %v622_v7 }
 0x33d   :  { %v5710_v25 = vpop.f32.mrf.mxu1 }
 0x33e   :  { %v7093_v27 = vsel %vm7080_vm1, %v5710_v25, -1e+30 }
 0x33f   :  { %v834_v33 = vpop.f32.mrf.mxu1  ;;  %v880_v35 = vsel %vm873_vm2, %v7093_v27, -inf }
 0x340   :  { %v7099_v36 = vsel %vm7085_vm3, %v834_v33, -1e+30  ;;  %881 = vmax.xlane.f32.xlu0 %v880_v35 }
 0x341   :  { %v5711_v45 = vpop.f32.mrf.mxu1  ;;  %v874_v41 = vsel %vm873_vm2, %v7099_v36, -inf }
 0x342   :  { %v7115_v13 = vsel %vm7101_vm4, %v5711_v45, -1e+30  ;;  %v7167_v45 = vpop.f32.mrf.mxu0 }
 0x343   :  { %v837_v59 = vpop.f32.mrf.mxu1  ;;  %v883_v62 = vsel %vm873_vm2, %v7115_v13, -inf }
 0x344   :  { %875 = vmax.xlane.f32.xlu0 %v874_v41  ;;  %v7119_v46 = vsel %vm7106_vm5, %v837_v59, -1e+30 }
 0x345   :  { %v5714_v29 = vpop.f32.mrf.mxu1  ;;  %v877_v34 = vsel %vm873_vm2, %v7119_v46, -inf }
 0x346   :  { %878 = vmax.xlane.f32.xlu1 %v877_v34  ;;  %v7137_v1 = vsel %vm7121_vm6, %v5714_v29, -1e+30 }
 0x347   :  { %v850_v58 = vpop.f32.mrf.mxu1  ;;  %v892_v25 = vsel %vm873_vm2, %v7137_v1, -inf }
 0x348   :  { %884 = vmax.xlane.f32.xlu0 %v883_v62  ;;  %v7157_v30 = vsel %vm7139_vm8, %v850_v58, -1e+30 }
 0x349   :  { %v5715_v22 = vpop.f32.mrf.mxu1  ;;  %v886_v33 = vsel %vm873_vm2, %v7157_v30, -inf }
 0x34a   :  { %v7149_v11 = vsel %vm7131_vm7, %v5715_v22, -1e+30 }
 0x34b   :  { %v853_v18 = vpop.f32.mrf.mxu1  ;;  %v895_v55 = vsel %vm873_vm2, %v7149_v11, -inf }
 0x34c   :  { %893 = vmax.xlane.f32.xlu0 %v892_v25  ;;  %896 = vmax.xlane.f32.xlu1 %v895_v55  ;;  %v7161_v21 = vsel %vm7143_vm9, %v853_v18, -1e+30 }
 0x34d   :  { %v889_v35 = vsel %vm873_vm2, %v7161_v21, -inf }
 0x350   :  { %887 = vmax.xlane.f32.xlu0 %v886_v33  ;;  %890 = vmax.xlane.f32.xlu1 %v889_v35 }
 0x3b1   :  { %v5742_v2 = vpop.f32.mrf.mxu0 }
 0x3b2   :  { %v7171_v59 = vsel %vm7080_vm1, %v5742_v2, -1e+30 }
 0x3b3   :  { %v1129_v41 = vpop.f32.mrf.mxu0  ;;  %v1174_v38 = vsel %vm873_vm2, %v7171_v59, -inf }
 0x3b4   :  { %v7177_v29 = vsel %vm7085_vm3, %v1129_v41, -1e+30  ;;  %1175 = vmax.xlane.f32.xlu0 %v1174_v38 }
 0x3b5   :  { %v5743_v34 = vpop.f32.mrf.mxu0  ;;  %v1168_v58 = vsel %vm873_vm2, %v7177_v29, -inf }
 0x3b6   :  { %v7181_v0 = vsel %vm7101_vm4, %v5743_v34, -1e+30 }
 0x3b7   :  { %v1132_v44 = vpop.f32.mrf.mxu0  ;;  %v1177_v62 = vsel %vm873_vm2, %v7181_v0, -inf }
 0x3b8   :  { %1169 = vmax.xlane.f32.xlu0 %v1168_v58  ;;  %1178 = vmax.xlane.f32.xlu1 %v1177_v62  ;;  %v7189_v22 = vsel %vm7106_vm5, %v1132_v44, -1e+30 }
 0x3b9   :  { %v5746_v18 = vpop.f32.mrf.mxu0  ;;  %v1171_v33 = vsel %vm873_vm2, %v7189_v22, -inf }
 0x3ba   :  { %v7193_v25 = vsel %vm7121_vm6, %v5746_v18, -1e+30 }
 0x3bb   :  { %v1145_v55 = vpop.f32.mrf.mxu0  ;;  %v1186_v35 = vsel %vm873_vm2, %v7193_v25, -inf }
 0x3bc   :  { %v7201_v2 = vsel %vm7139_vm8, %v1145_v55, -1e+30  ;;  %1172 = vmax.xlane.f32.xlu1 %v1171_v33  ;;  %1187 = vmax.xlane.f32.xlu0 %v1186_v35 }
 0x3bd   :  { %v5747_v41 = vpop.f32.mrf.mxu0  ;;  %v1180_v44 = vsel %vm873_vm2, %v7201_v2, -inf }
 0x3be   :  { %v7205_v38 = vsel %vm7131_vm7, %v5747_v41, -1e+30 }
 0x3bf   :  { %v1148_v34 = vpop.f32.mrf.mxu0  ;;  %v1189_v58 = vsel %vm873_vm2, %v7205_v38, -inf }
 0x3c0   :  { %1181 = vmax.xlane.f32.xlu0 %v1180_v44  ;;  %1190 = vmax.xlane.f32.xlu1 %v1189_v58  ;;  %v7213_v62 = vsel %vm7143_vm9, %v1148_v34, -1e+30 }
 0x3c1   :  { %v1183_v18 = vsel %vm873_vm2, %v7213_v62, -inf }
 0x3c4   :  { %1184 = vmax.xlane.f32.xlu1 %v1183_v18 }
 0x3c9   :  { %v882_v55 = vpop.xlane.xlu0 %881 }
 0x3ca   :  { %v900_v41 = vsub.f32 %v7093_v27, %v882_v55 }
 0x3cc   :  { %v910_v6 = vmul.f32 1.442695, %v900_v41 }
 0x3cd   :  { %v876_v33 = vpop.xlane.xlu0 %875 }
 0x3ce   :  { %v898_v44 = vsub.f32 %v7099_v36, %v876_v33  ;;  %6253 = vpow2.f32 %v910_v6 }
 0x3cf   :  { %v879_v58 = vpop.xlane.xlu1 %878 }
 0x3d0   :  { %v906_v53 = vmul.f32 1.442695, %v898_v44  ;;  %v899_v18 = vsub.f32 %v7119_v46, %v879_v58 }
 0x3d1   :  { %v885_v35 = vpop.xlane.xlu0 %884 }
 0x3d2   :  { %v901_v16 = vsub.f32 %v7115_v13, %v885_v35  ;;  %6255 = vpow2.f32 %v906_v53  ;;  %v908_v14 = vmul.f32 1.442695, %v899_v18 }
 0x3d4   :  { %v912_v52 = vmul.f32 1.442695, %v901_v16 }
 0x3d5   :  { %1268 = vrot.lane.b32.xlu1 %v7012_v28, %s6707_s5  ;;  %v894_v34 = vpop.xlane.xlu0 %893  ;;  %v897_v42 = vpop.xlane.xlu1 %896 }
 0x3d6   :  { %1270 = vrot.lane.b32.xlu0 %v7007_v26, %s6707_s5  ;;  %v904_v24 = vsub.f32 %v7137_v1, %v894_v34  ;;  %v905_v27 = vsub.f32 %v7149_v11, %v897_v42  ;;  %6257 = vpow2.f32 %v912_v52 }
 0x3d7   :  { %6259 = vpow2.f32 %v908_v14 }
 0x3d8   :  { %v918_v36 = vmul.f32 1.442695, %v904_v24  ;;  %v920_v13 = vmul.f32 1.442695, %v905_v27 }
 0x3d9   :  { %v888_v43 = vpop.xlane.xlu0 %887  ;;  %v891_v33 = vpop.xlane.xlu1 %890 }
 0x3da   :  { %v902_v55 = vsub.f32 %v7157_v30, %v888_v43  ;;  %6261 = vpow2.f32 %v918_v36  ;;  %v903_v46 = vsub.f32 %v7161_v21, %v891_v33 }
 0x3db   :  { %6263 = vpow2.f32 %v920_v13  ;;  %v7229_v16 = vpop.eup %6253 }
 0x3dc   :  { %v914_v35 = vmul.f32 1.442695, %v902_v55  ;;  %v916_v6 = vmul.f32 1.442695, %v903_v46  ;;  %v928_v42 = vsel %vm873_vm2, %v7229_v16, 0.0 }
 0x3de   :  { %6265 = vpow2.f32 %v914_v35 }
 0x3df   :  { %v7231_v53 = vpop.eup %6255  ;;  %6267 = vpow2.f32 %v916_v6 }
 0x3e0   :  { %v922_v14 = vsel %vm873_vm2, %v7231_v53, 0.0 }
 0x3e3   :  { %v7235_v52 = vpop.eup %6257 }
 0x3e4   :  { %v7237_v43 = vpop.eup %6259  ;;  %v931_v24 = vsel %vm873_vm2, %v7235_v52, 0.0 }
 0x3e5   :  { %v925_v30 = vsel %vm873_vm2, %v7237_v43, 0.0 }
 0x3e7   :  { %v7243_v1 = vpop.eup %6261 }
 0x3e8   :  { %v7245_v11 = vpop.eup %6263  ;;  %v940_v21 = vsel %vm873_vm2, %v7243_v1, 0.0 }
 0x3e9   :  { %v943_v44 = vsel %vm873_vm2, %v7245_v11, 0.0 }
 0x3eb   :  { %v7251_v41 = vpop.eup %6265 }
 0x3ec   :  { %v934_v58 = vsel %vm873_vm2, %v7251_v41, 0.0  ;;  %v7257_v34 = vpop.eup %6267 }
 0x3ed   :  { %v937_v18 = vsel %vm873_vm2, %v7257_v34, 0.0 }
 0x3f5   :  { %929 = vadd.xlane.f32.xlu0 %v928_v42 }
 0x3f9   :  { %923 = vadd.xlane.f32.xlu0 %v922_v14  ;;  %932 = vadd.xlane.f32.xlu1 %v931_v24 }
 0x3fd   :  { %926 = vadd.xlane.f32.xlu1 %v925_v30  ;;  %941 = vadd.xlane.f32.xlu0 %v940_v21 }
 0x401   :  { %944 = vadd.xlane.f32.xlu1 %v943_v44  ;;  %935 = vadd.xlane.f32.xlu0 %v934_v58 }
 0x405   :  { %938 = vadd.xlane.f32.xlu1 %v937_v18 }
 0x43d   :  { %v1176_v27 = vpop.xlane.xlu0 %1175 }
 0x43e   :  { %v1194_v36 = vsub.f32 %v7171_v59, %v1176_v27 }
 0x440   :  { %v1204_v55 = vmul.f32 1.442695, %v1194_v36 }
 0x441   :  { %v1179_v33 = vpop.xlane.xlu1 %1178  ;;  %v1170_v13 = vpop.xlane.xlu0 %1169 }
 0x442   :  { %6269 = vpow2.f32 %v1204_v55  ;;  %v1195_v46 = vsub.f32 %v7181_v0, %v1179_v33  ;;  %v1192_v35 = vsub.f32 %v7177_v29, %v1170_v13 }
 0x444   :  { %v1206_v6 = vmul.f32 1.442695, %v1195_v46  ;;  %v1200_v42 = vmul.f32 1.442695, %v1192_v35 }
 0x445   :  { %v1173_v14 = vpop.xlane.xlu1 %1172  ;;  %v1188_v24 = vpop.xlane.xlu0 %1187 }
 0x446   :  { %6271 = vpow2.f32 %v1206_v6  ;;  %v1193_v30 = vsub.f32 %v7189_v22, %v1173_v14  ;;  %v1198_v44 = vsub.f32 %v7193_v25, %v1188_v24 }
 0x447   :  { %6273 = vpow2.f32 %v1200_v42 }
 0x448   :  { %v1202_v21 = vmul.f32 1.442695, %v1193_v30  ;;  %v1212_v0 = vmul.f32 1.442695, %v1198_v44 }
 0x449   :  { %v1191_v59 = vpop.xlane.xlu1 %1190  ;;  %v1182_v58 = vpop.xlane.xlu0 %1181 }
 0x44a   :  { %6275 = vpow2.f32 %v1202_v21  ;;  %v1196_v18 = vsub.f32 %v7201_v2, %v1182_v58  ;;  %v1199_v29 = vsub.f32 %v7205_v38, %v1191_v59 }
 0x44c   :  { %v1208_v27 = vmul.f32 1.442695, %v1196_v18  ;;  %v1214_v2 = vmul.f32 1.442695, %v1199_v29 }
 0x44d   :  { %v1185_v36 = vpop.xlane.xlu1 %1184  ;;  %v7268_v55 = vpop.permute.xlu0 %1270 }
 0x44e   :  { %v1197_v33 = vsub.f32 %v7213_v62, %v1185_v36  ;;  %5748 = vmatprep.subr.bf16.mxu1 %v7268_v55  ;;  %6277 = vpow2.f32 %v1208_v27  ;;  %v6133_v27 = vld [vmem:[#allocation7 + $0x18] sm:$0xff]  }
 0x44f   :  { %v7272_v22 = vpop.eup %6269  ;;  %6279 = vpow2.f32 %v1212_v0  ;;  %5764 = vmatprep.subr.bf16.mxu0 %v6133_v27  ;;  %v6134_v0 = vld [vmem:[#allocation7 + $0x10] sm:$0xff]  }
 0x450   :  { %v1210_v25 = vmul.f32 1.442695, %v1197_v33  ;;  %v1222_v13 = vsel %vm873_vm2, %v7272_v22, 0.0  ;;  %5765 = vmatpush3.bf16.msra.mxu0 %v6133_v27 }
 0x451   :  { %1223 = vadd.xlane.f32.xlu0 %v1222_v13  ;;  %5766 = vmatprep.subr.bf16.mxu0 %v6134_v0  ;;  %v1269_v29 = vpop.permute.xlu1 %1268 }
 0x452   :  { %6281 = vpow2.f32 %v1210_v25 }
 0x453   :  { %v7276_v46 = vpop.eup %6271  ;;  %6283 = vpow2.f32 %v1214_v2 }
 0x454   :  { %v7278_v38 = vpop.eup %6273  ;;  %v1225_v62 = vsel %vm873_vm2, %v7276_v46, 0.0  ;;  %5767 = vmatpush3.bf16.msra.mxu0 %v6134_v0 }
 0x455   :  { %1226 = vadd.xlane.f32.xlu1 %v1225_v62  ;;  %v1216_v35 = vsel %vm873_vm2, %v7278_v38, 0.0 }
 0x456   :  { %1217 = vadd.xlane.f32.xlu0 %v1216_v35 }
 0x457   :  { %v7284_v6 = vpop.eup %6275 }
 0x458   :  { %v1219_v42 = vsel %vm873_vm2, %v7284_v6, 0.0 }
 0x459   :  { %1220 = vadd.xlane.f32.xlu1 %v1219_v42 }
 0x45b   :  { %v7288_v14 = vpop.eup %6277 }
 0x45c   :  { %v1228_v24 = vsel %vm873_vm2, %v7288_v14, 0.0  ;;  %v7292_v30 = vpop.eup %6279 }
 0x45d   :  { %1229 = vadd.xlane.f32.xlu1 %v1228_v24  ;;  %v1234_v59 = vsel %vm873_vm2, %v7292_v30, 0.0 }
 0x45f   :  { %v7294_v21 = vpop.eup %6281 }
 0x460   :  { %v1231_v44 = vsel %vm873_vm2, %v7294_v21, 0.0  ;;  %v7300_v58 = vpop.eup %6283 }
 0x461   :  { %1232 = vadd.xlane.f32.xlu0 %v1231_v44  ;;  %1235 = vadd.xlane.f32.xlu1 %v1234_v59  ;;  %v1237_v18 = vsel %vm873_vm2, %v7300_v58, 0.0 }
 0x465   :  { %1238 = vadd.xlane.f32.xlu1 %v1237_v18 }
 0x476   :  { %1264 = vrot.lane.b32.xlu1 %v7024_v47, %s6707_s5 }
 0x477   :  { %1266 = vrot.lane.b32.xlu0 %v7020_v32, %s6707_s5 }
 0x47a   :  { %1547 = vrot.lane.b32.xlu1 %v6963_v5, %s6703_s25 }
 0x47b   :  { %1549 = vrot.lane.b32.xlu0 %v6973_v50, %s6703_s25 }
 0x47e   :  { %v930_v36 = vpop.xlane.xlu0 %929  ;;  %1543 = vrot.lane.b32.xlu1 %v6971_v10, %s6703_s25 }
 0x47f   :  { %1545 = vrot.lane.b32.xlu0 %v6967_v9, %s6703_s25 }
 0x482   :  { %v933_v33 = vpop.xlane.xlu1 %932  ;;  %v924_v25 = vpop.xlane.xlu0 %923  ;;  %1537 = vrot.lane.b32.xlu1 %v6983_v17, %s6703_s25 }
 0x483   :  { %1535 = vrot.lane.b32.xlu0 %v6959_v57, %s6703_s25  ;;  %6285 = vrcp.f32 %v933_v33 }
 0x484   :  { %6287 = vrcp.f32 %v924_v25 }
 0x485   :  { %6289 = vrcp.f32 %v930_v36 }
 0x486   :  { %v927_v13 = vpop.xlane.xlu1 %926  ;;  %v942_v2 = vpop.xlane.xlu0 %941  ;;  %1541 = vrot.lane.b32.xlu1 %v6991_v19, %s6703_s25 }
 0x487   :  { %6291 = vrcp.f32 %v927_v13  ;;  %1539 = vrot.lane.b32.xlu0 %v6993_v20, %s6703_s25 }
 0x48a   :  { %v945_v62 = vpop.xlane.xlu1 %944  ;;  %v936_v35 = vpop.xlane.xlu0 %935  ;;  %1942 = vrot.lane.b32.xlu1 %v6963_v5, %s6708_s16 }
 0x48b   :  { %1944 = vrot.lane.b32.xlu0 %v6973_v50, %s6708_s16  ;;  %6293 = vrcp.f32 %v945_v62 }
 0x48c   :  { %6295 = vrcp.f32 %v936_v35 }
 0x48d   :  { %6297 = vrcp.f32 %v942_v2 }
 0x48e   :  { %v939_v42 = vpop.xlane.xlu1 %938  ;;  %1938 = vrot.lane.b32.xlu1 %v6971_v10, %s6708_s16 }
 0x48f   :  { %6299 = vrcp.f32 %v939_v42  ;;  %1940 = vrot.lane.b32.xlu0 %v6967_v9, %s6708_s16 }
 0x490   :  { %v6286_v24 = vpop.eup %6285 }
 0x491   :  { %v6288_v44 = vpop.eup %6287  ;;  %v957_v50 = vmul.f32 %v6286_v24, %v7235_v52 }
 0x492   :  { %v6290_v59 = vpop.eup %6289  ;;  %1932 = vrot.lane.b32.xlu1 %v6983_v17, %s6708_s16  ;;  %v954_v18 = vmul.f32 %v6288_v44, %v7231_v53 }
 0x493   :  { %1930 = vrot.lane.b32.xlu0 %v6959_v57, %s6708_s16  ;;  %v956_v10 = vmul.f32 %v6290_v59, %v7229_v16 }
 0x494   :  { %v6292_v5 = vpop.eup %6291 }
 0x495   :  { %v955_v27 = vmul.f32 %v6292_v5, %v7237_v43  ;;  %v963_v17 = vpack.c.bf16 %v957_v50, %v956_v10 }
 0x496   :  { %1936 = vrot.lane.b32.xlu1 %v6991_v19, %s6708_s16 }
 0x497   :  { %1934 = vrot.lane.b32.xlu0 %v6993_v20, %s6708_s16  ;;  %v962_v9 = vpack.c.bf16 %v955_v27, %v954_v18  ;;  %v6135_v18 = vld [vmem:[#allocation7 + $0x8] sm:$0xff]  }
 0x498   :  { %v6294_v0 = vpop.eup %6293 }
 0x499   :  { %5724 = vmatprep.mubr.msk.bf16.mxu1 %vm873_vm2, %v962_v9  ;;  %v6296_v57 = vpop.eup %6295  ;;  %v961_v16 = vmul.f32 %v6294_v0, %v7245_v11 }
 0x49a   :  { %5725 = vmatmul.mubr.msk.bf16.vlgmr.msra.gmra.mxu1 %vm873_vm2, %v963_v17  ;;  %v6298_v52 = vpop.eup %6297  ;;  %v958_v19 = vmul.f32 %v6296_v57, %v7251_v41 }
 0x49b   :  { %5749 = vmatpush3.bf16.msra.mxu1 %v7268_v55  ;;  %v960_v20 = vmul.f32 %v6298_v52, %v7243_v1 }
 0x49c   :  { %v6300_v53 = vpop.eup %6299  ;;  %5750 = vmatprep.subr.bf16.mxu1 %v1269_v29 }
 0x49d   :  { %v959_v43 = vmul.f32 %v6300_v53, %v7257_v34  ;;  %v965_v33 = vpack.c.bf16 %v961_v16, %v960_v20 }
 0x49f   :  { %5751 = vmatpush3.bf16.msra.mxu1 %v1269_v29  ;;  %v964_v36 = vpack.c.bf16 %v959_v43, %v958_v19 }
 0x4a1   :  { %5728 = vmatprep.mubr.msk.bf16.mxu1 %vm873_vm2, %v964_v36 }
 0x4a2   :  { %5729 = vmatmul.mubr.msk.bf16.gmra.mxu1 %vm873_vm2, %v965_v33 }
 0x4da   :  { %v1224_v25 = vpop.xlane.xlu0 %1223 }
 0x4de   :  { %v1227_v13 = vpop.xlane.xlu1 %1226 }
 0x4df   :  { %v1218_v55 = vpop.xlane.xlu0 %1217 }
 0x4e0   :  { %6301 = vrcp.f32 %v1218_v55 }
 0x4e1   :  { %6303 = vrcp.f32 %v1227_v13 }
 0x4e2   :  { %v1221_v2 = vpop.xlane.xlu1 %1220 }
 0x4e3   :  { %6305 = vrcp.f32 %v1221_v2 }
 0x4e4   :  { %6307 = vrcp.f32 %v1224_v25 }
 0x4e6   :  { %v1230_v11 = vpop.xlane.xlu1 %1229 }
 0x4e7   :  { %6309 = vrcp.f32 %v1230_v11 }
 0x4ea   :  { %v1233_v41 = vpop.xlane.xlu0 %1232  ;;  %v1236_v34 = vpop.xlane.xlu1 %1235 }
 0x4eb   :  { %6311 = vrcp.f32 %v1233_v41 }
 0x4ec   :  { %6313 = vrcp.f32 %v1236_v34 }
 0x4ed   :  { %v6302_v1 = vpop.eup %6301 }
 0x4ee   :  { %v1267_v29 = vpop.permute.xlu0 %1266  ;;  %v6304_v62 = vpop.eup %6303  ;;  %v1248_v44 = vmul.f32 %v6302_v1, %v7278_v38  ;;  %v6136_v38 = vld [vmem:[#allocation7] sm:$0xff]  }
 0x4ef   :  { %v1239_v35 = vpop.xlane.xlu1 %1238  ;;  %5752 = vmatprep.subr.bf16.mxu1 %v1267_v29  ;;  %v1251_v5 = vmul.f32 %v6304_v62, %v7276_v46 }
 0x4f0   :  { %v6306_v42 = vpop.eup %6305  ;;  %6315 = vrcp.f32 %v1239_v35  ;;  %5753 = vmatpush3.bf16.msra.mxu1 %v1267_v29 }
 0x4f1   :  { %v6308_v24 = vpop.eup %6307  ;;  %v1249_v59 = vmul.f32 %v6306_v42, %v7284_v6 }
 0x4f2   :  { %v1550_v50 = vpop.permute.xlu0 %1549  ;;  %v1250_v9 = vmul.f32 %v6308_v24, %v7272_v22 }
 0x4f3   :  { %v1265_v27 = vpop.permute.xlu1 %1264  ;;  %6060 = vmatprep.subr.msk.bf16.mxu0 %vm775_vm0, %v1550_v50  ;;  %v1256_v10 = vpack.c.bf16 %v1249_v59, %v1248_v44  ;;  %v1573_v24 = vsel %vm775_vm0, %v1550_v50, 0 }
 0x4f4   :  { %5754 = vmatprep.subr.bf16.mxu1 %v1265_v27  ;;  %v6310_v17 = vpop.eup %6309  ;;  %v1257_v0 = vpack.c.bf16 %v1251_v5, %v1250_v9 }
 0x4f5   :  { %5755 = vmatpush3.bf16.msra.mxu1 %v1265_v27  ;;  %5756 = vmatprep.mubr.msk.bf16.mxu1 %vm873_vm2, %v1256_v10  ;;  %v1252_v46 = vmul.f32 %v6310_v17, %v7288_v14 }
 0x4f6   :  { %5776 = vmatprep.subr.bf16.mxu1 %v6135_v18  ;;  %v1546_v5 = vpop.permute.xlu0 %1545 }
 0x4f7   :  { %v1548_v44 = vpop.permute.xlu1 %1547 }
 0x4f8   :  { %v6312_v57 = vpop.eup %6311  ;;  %5757 = vmatmul.mubr.msk.bf16.vlgmr.msra.gmra.mxu1 %vm873_vm2, %v1257_v0  ;;  %v1570_v17 = vsel %vm775_vm0, %v1548_v44, 0 }
 0x4f9   :  { %v1253_v6 = vmul.f32 %v6312_v57, %v7294_v21  ;;  %5777 = vmatpush3.bf16.msra.mxu1 %v6135_v18  ;;  %v6314_v52 = vpop.eup %6313 }
 0x4fa   :  { %5778 = vmatprep.subr.bf16.mxu1 %v6136_v38  ;;  %v1254_v16 = vmul.f32 %v6314_v52, %v7292_v30  ;;  %v1536_v0 = vpop.permute.xlu0 %1535 }
 0x4fb   :  { %v1258_v53 = vpack.c.bf16 %v1253_v6, %v1252_v46  ;;  %v1544_v50 = vpop.permute.xlu1 %1543 }
 0x4fc   :  { %v1564_v6 = vsel %vm775_vm0, %v1544_v50, 0 }
 0x4fd   :  { %v6316_v22 = vpop.eup %6315  ;;  %5760 = vmatprep.mubr.msk.bf16.mxu1 %vm873_vm2, %v1258_v53  ;;  %5779 = vmatpush3.bf16.msra.mxu1 %v6136_v38  ;;  %v1567_v38 = vsel %vm775_vm0, %v1546_v5, 0 }
 0x4fe   :  { %v1255_v19 = vmul.f32 %v6316_v22, %v7300_v58  ;;  %v1540_v57 = vpop.permute.xlu0 %1539 }
 0x4ff   :  { %v1538_v46 = vpop.permute.xlu1 %1537 }
 0x500   :  { %v1259_v43 = vpack.c.bf16 %v1255_v19, %v1254_v16 }
 0x502   :  { %5761 = vmatmul.mubr.msk.bf16.gmra.mxu1 %vm873_vm2, %v1259_v43  ;;  %v1945_v52 = vpop.permute.xlu0 %1944 }
 0x503   :  { %v1542_v53 = vpop.permute.xlu1 %1541  ;;  %v1968_v22 = vsel %vm775_vm0, %v1945_v52, 0 }
 0x506   :  { %v1941_v19 = vpop.permute.xlu0 %1940 }
 0x507   :  { %v1943_v16 = vpop.permute.xlu1 %1942 }
 0x50a   :  { %v1931_v43 = vpop.permute.xlu0 %1930 }
 0x55a   :  { %v5726_v20 = vpop.f32.mrf.mxu1 }
 0x55c   :  { %v1012_v36 = vpop.f32.mrf.mxu1 }
 0x55e   :  { %v5727_v14 = vpop.f32.mrf.mxu1 }
 0x55f   :  { %v1044_v25 = vpack.c.bf16 %v5727_v14, %v5726_v20  ;;  %v1965_v20 = vsel %vm775_vm0, %v1943_v16, 0  ;;  %v1939_v14 = vpop.permute.xlu1 %1938 }
 0x560   :  { %v1015_v33 = vpop.f32.mrf.mxu1 }
 0x561   :  { %v1043_v21 = vpack.c.bf16 %v1015_v33, %v1012_v36  ;;  %v1962_v36 = vsel %vm775_vm0, %v1941_v19, 0  ;;  %v7395_v33 = vpack.c.bf16 %v7167_v45, %v7070_v8  ;;  %v7412_v45 = vpack.c.bf16 %v7056_v56, %v7047_v51 }
 0x562   :  { %v5730_v13 = vpop.f32.mrf.mxu1 }
 0x563   :  { %5780 = vmatprep.mubr.msk.bf16.mxu1 %vm775_vm0, %v1043_v21  ;;  %v1959_v21 = vsel %vm775_vm0, %v1939_v14, 0  ;;  %v2353_v51 = vsel %vm775_vm0, %v7412_v45, 0 }
 0x564   :  { %v1028_v55 = vpop.f32.mrf.mxu1  ;;  %5781 = vmatmul.mubr.msk.bf16.vlgmr.msra.gmra.mxu1 %vm775_vm0, %v1044_v25  ;;  %v1933_v25 = vpop.permute.xlu1 %1932 }
 0x566   :  { %v5731_v2 = vpop.f32.mrf.mxu1 }
 0x567   :  { %v1046_v41 = vpack.c.bf16 %v5731_v2, %v5730_v13  ;;  %v7402_v13 = vpack.c.bf16 %v7068_v4, %v7060_v61  ;;  %v2359_v2 = vsel %vm775_vm0, %v7395_v33, 0  ;;  %v7423_v4 = vpack.c.bf16 %v7042_v60, %v7037_v40 }
 0x568   :  { %v1031_v11 = vpop.f32.mrf.mxu1  ;;  %v1937_v8 = vpop.permute.xlu1 %1936 }
 0x569   :  { %v1045_v30 = vpack.c.bf16 %v1031_v11, %v1028_v55  ;;  %v1935_v55 = vpop.permute.xlu0 %1934  ;;  %v2356_v61 = vsel %vm775_vm0, %v7402_v13, 0  ;;  %v2350_v56 = vsel %vm775_vm0, %v7423_v4, 0 }
 0x56b   :  { %5784 = vmatprep.mubr.msk.bf16.mxu1 %vm775_vm0, %v1045_v30 }
 0x56c   :  { %5785 = vmatmul.mubr.msk.bf16.gmra.mxu1 %vm775_vm0, %v1046_v41 }
 0x5b8   :  { %v5758_v58 = vpop.f32.mrf.mxu1 }
 0x5ba   :  { %v1322_v34 = vpop.f32.mrf.mxu1 }
 0x5bc   :  { %v5759_v1 = vpop.f32.mrf.mxu1 }
 0x5bd   :  { %v1354_v35 = vpack.c.bf16 %v5759_v1, %v5758_v58 }
 0x5be   :  { %v1325_v29 = vpop.f32.mrf.mxu1 }
 0x5bf   :  { %v1353_v62 = vpack.c.bf16 %v1325_v29, %v1322_v34 }
 0x5c1   :  { %5768 = vmatprep.mubr.msk.bf16.mxu0 %vm775_vm0, %v1353_v62 }
 0x5c2   :  { %v5762_v42 = vpop.f32.mrf.mxu1  ;;  %5769 = vmatmul.mubr.msk.bf16.vlgmr.msra.gmra.mxu0 %vm775_vm0, %v1354_v35 }
 0x5c3   :  { %5789 = vmatpush3.bf16.xpose.msra.mxu0 %v1573_v24 }
 0x5c4   :  { %6061 = vmatprep.subr.msk.bf16.mxu0 %vm775_vm0, %v1548_v44  ;;  %v1338_v59 = vpop.f32.mrf.mxu1 }
 0x5c6   :  { %v5763_v18 = vpop.f32.mrf.mxu1 }
 0x5c7   :  { %v1356_v9 = vpack.c.bf16 %v5763_v18, %v5762_v42 }
 0x5c8   :  { %v1341_v27 = vpop.f32.mrf.mxu1 }
 0x5c9   :  { %v1355_v10 = vpack.c.bf16 %v1341_v27, %v1338_v59 }
 0x5cb   :  { %5791 = vmatpush3.bf16.xpose.msra.mxu0 %v1570_v17  ;;  %5772 = vmatprep.mubr.msk.bf16.mxu0 %vm775_vm0, %v1355_v10 }
 0x5cc   :  { %6062 = vmatprep.subr.msk.bf16.mxu0 %vm775_vm0, %v1546_v5  ;;  %5773 = vmatmul.mubr.msk.bf16.gmra.mxu0 %vm775_vm0, %v1356_v9 }
 0x5cd   :  { %5796 = vmatprep.mubr.msk.bf16.mxu0 %vm775_vm0, %v1536_v0 }
 0x5d3   :  { %5793 = vmatpush3.bf16.xpose.msra.mxu0 %v1567_v38 }
 0x5d4   :  { %6063 = vmatprep.subr.msk.bf16.mxu0 %vm775_vm0, %v1544_v50 }
 0x5db   :  { %5795 = vmatpush3.bf16.xpose.msra.mxu0 %v1564_v6 }
 0x5dc   :  { %6064 = vmatprep.subr.msk.bf16.mxu0 %vm775_vm0, %v1945_v52 }
 0x5e2   :  { %5797 = vmatmul.mubr.msk.bf16.vlgmr.msra.gmra.mxu0 %vm775_vm0, %v1538_v46 }
 0x5e3   :  { %5800 = vmatprep.mubr.msk.bf16.mxu0 %vm775_vm0, %v1540_v57  ;;  %5833 = vmatpush3.bf16.xpose.msra.mxu0 %v1968_v22 }
 0x5e4   :  { %6065 = vmatprep.subr.msk.bf16.mxu0 %vm775_vm0, %v1943_v16 }
 0x5ea   :  { %5801 = vmatmul.mubr.msk.bf16.gmra.mxu0 %vm775_vm0, %v1542_v53 }
 0x5eb   :  { %5835 = vmatpush3.bf16.xpose.msra.mxu0 %v1965_v20  ;;  %5840 = vmatprep.mubr.msk.bf16.mxu0 %vm775_vm0, %v1931_v43 }
 0x5ec   :  { %6066 = vmatprep.subr.msk.bf16.mxu0 %vm775_vm0, %v1941_v19 }
 0x5f3   :  { %5837 = vmatpush3.bf16.xpose.msra.mxu0 %v1962_v36 }
 0x5f4   :  { %6067 = vmatprep.subr.msk.bf16.mxu0 %vm775_vm0, %v1939_v14 }
 0x5fb   :  { %5839 = vmatpush3.bf16.xpose.msra.mxu0 %v1959_v21 }
 0x5fc   :  { %6068 = vmatprep.subr.msk.bf16.mxu0 %vm775_vm0, %v7395_v33 }
 0x602   :  { %5841 = vmatmul.mubr.msk.bf16.vlgmr.msra.gmra.mxu0 %vm775_vm0, %v1933_v25 }
 0x603   :  { %5844 = vmatprep.mubr.msk.bf16.mxu0 %vm775_vm0, %v1935_v55  ;;  %5877 = vmatpush3.bf16.xpose.msra.mxu0 %v2359_v2 }
 0x604   :  { %6069 = vmatprep.subr.msk.bf16.mxu0 %vm775_vm0, %v7402_v13 }
 0x60a   :  { %5845 = vmatmul.mubr.msk.bf16.gmra.mxu0 %vm775_vm0, %v1937_v8 }
 0x60b   :  { %5879 = vmatpush3.bf16.xpose.msra.mxu0 %v2356_v61  ;;  %5884 = vmatprep.mubr.msk.bf16.mxu0 %vm775_vm0, %v7040_v12 }
 0x60c   :  { %6070 = vmatprep.subr.msk.bf16.mxu0 %vm775_vm0, %v7412_v45 }
 0x613   :  { %5881 = vmatpush3.bf16.xpose.msra.mxu0 %v2353_v51 }
 0x614   :  { %6071 = vmatprep.subr.msk.bf16.mxu0 %vm775_vm0, %v7423_v4 }
 0x61b   :  { %5883 = vmatpush3.bf16.xpose.msra.mxu0 %v2350_v56 }
 0x622   :  { %5885 = vmatmul.mubr.msk.bf16.vlgmr.msra.gmra.mxu0 %vm775_vm0, %v7054_v39 }
 0x623   :  { %5888 = vmatprep.mubr.msk.bf16.mxu0 %vm775_vm0, %v7065_v3 }
 0x62a   :  { %5889 = vmatmul.mubr.msk.bf16.gmra.mxu0 %vm775_vm0, %v7073_v15 }
 0x682   :  { %v7437_v40 = vpop.f32.mrf.mxu0 }
 0x684   :  { %v7439_v60 = vpop.f32.mrf.mxu0 }
 0x686   :  { %v7441_v11 = vpop.f32.mrf.mxu0 }
 0x688   :  { %v7443_v30 = vpop.f32.mrf.mxu0 }
 0x689   :  { %8645 = vst [vmem:[#allocation23_spill] sm:$0xff] %v7443_v30 }
 0x68c   :  { %v7445_v41 = vpop.f32.mrf.mxu0 }
 0x68e   :  { %v7447_v58 = vpop.f32.mrf.mxu0 }
 0x690   :  { %v7449_v34 = vpop.f32.mrf.mxu0 }
 0x692   :  { %v7451_v1 = vpop.f32.mrf.mxu0 }
 0x693   :  { %8646 = vst [vmem:[#allocation24_spill] sm:$0xff] %v7451_v1 }
 0x6a2   :  { %v5798_v29 = vpop.f32.mrf.mxu0 }
 0x6a3   :  { %v1642_v44 = vsel %vm7080_vm1, %v5798_v29, -1e+30 }
 0x6a4   :  { %v1609_v62 = vpop.f32.mrf.mxu0  ;;  %v1654_v27 = vsel %vm873_vm2, %v1642_v44, -inf }
 0x6a5   :  { %v1640_v35 = vsel %vm7085_vm3, %v1609_v62, -1e+30 }
 0x6a6   :  { %v5799_v42 = vpop.f32.mrf.mxu0  ;;  %v1648_v24 = vsel %vm873_vm2, %v1640_v35, -inf }
 0x6a7   :  { %1649 = vmax.xlane.f32.xlu0 %v1648_v24  ;;  %v1643_v9 = vsel %vm7101_vm4, %v5799_v42, -1e+30 }
 0x6a8   :  { %v1612_v59 = vpop.f32.mrf.mxu0  ;;  %v1657_v50 = vsel %vm873_vm2, %v1643_v9, -inf }
 0x6a9   :  { %v1641_v5 = vsel %vm7106_vm5, %v1612_v59, -1e+30 }
 0x6aa   :  { %v5802_v18 = vpop.f32.mrf.mxu0  ;;  %v1651_v10 = vsel %vm873_vm2, %v1641_v5, -inf }
 0x6ab   :  { %1655 = vmax.xlane.f32.xlu0 %v1654_v27  ;;  %1652 = vmax.xlane.f32.xlu1 %v1651_v10  ;;  %v1646_v53 = vsel %vm7121_vm6, %v5802_v18, -1e+30 }
 0x6ac   :  { %v1625_v17 = vpop.f32.mrf.mxu0  ;;  %v1666_v16 = vsel %vm873_vm2, %v1646_v53, -inf }
 0x6ad   :  { %v1644_v38 = vsel %vm7139_vm8, %v1625_v17, -1e+30 }
 0x6ae   :  { %v5803_v0 = vpop.f32.mrf.mxu0  ;;  %v1660_v6 = vsel %vm873_vm2, %v1644_v38, -inf }
 0x6af   :  { %1658 = vmax.xlane.f32.xlu0 %v1657_v50  ;;  %v1647_v22 = vsel %vm7131_vm7, %v5803_v0, -1e+30 }
 0x6b0   :  { %v1628_v57 = vpop.f32.mrf.mxu0  ;;  %v1669_v19 = vsel %vm873_vm2, %v1647_v22, -inf }
 0x6b1   :  { %v1645_v46 = vsel %vm7143_vm9, %v1628_v57, -1e+30 }
 0x6b2   :  { %v1663_v52 = vsel %vm873_vm2, %v1645_v46, -inf }
 0x6b3   :  { %1661 = vmax.xlane.f32.xlu0 %v1660_v6  ;;  %1664 = vmax.xlane.f32.xlu1 %v1663_v52 }
 0x6b7   :  { %1667 = vmax.xlane.f32.xlu0 %v1666_v16  ;;  %1670 = vmax.xlane.f32.xlu1 %v1669_v19 }
 0x730   :  { %v1650_v43 = vpop.xlane.xlu0 %1649 }
 0x731   :  { %v1672_v20 = vsub.f32 %v1640_v35, %v1650_v43 }
 0x733   :  { %v1680_v2 = vmul.f32 1.442695, %v1672_v20 }
 0x734   :  { %v1653_v36 = vpop.xlane.xlu1 %1652  ;;  %v1656_v14 = vpop.xlane.xlu0 %1655 }
 0x735   :  { %v1674_v21 = vsub.f32 %v1642_v44, %v1656_v14  ;;  %v1673_v25 = vsub.f32 %v1641_v5, %v1653_v36  ;;  %v5842_v36 = vpop.f32.mrf.mxu0 }
 0x737   :  { %v1684_v55 = vmul.f32 1.442695, %v1674_v21  ;;  %v1682_v51 = vmul.f32 1.442695, %v1673_v25  ;;  %v2004_v14 = vpop.f32.mrf.mxu0 }
 0x738   :  { %v1659_v8 = vpop.xlane.xlu0 %1658 }
 0x739   :  { %v1675_v61 = vsub.f32 %v1643_v9, %v1659_v8  ;;  %6317 = vpow2.f32 %v1684_v55  ;;  %v5843_v25 = vpop.f32.mrf.mxu0  ;;  %v7515_v8 = vsel %vm7085_vm3, %v2004_v14, -1e+30 }
 0x73a   :  { %6319 = vpow2.f32 %v1680_v2 }
 0x73b   :  { %v1686_v56 = vmul.f32 1.442695, %v1675_v61  ;;  %v2043_v61 = vsel %vm873_vm2, %v7515_v8, -inf }
 0x73c   :  { %v1662_v29 = vpop.xlane.xlu0 %1661  ;;  %v1665_v52 = vpop.xlane.xlu1 %1664 }
 0x73d   :  { %6321 = vpow2.f32 %v1686_v56  ;;  %v1676_v62 = vsub.f32 %v1644_v38, %v1662_v29  ;;  %v1677_v19 = vsub.f32 %v1645_v46, %v1665_v52  ;;  %v2007_v46 = vpop.f32.mrf.mxu0 }
 0x73e   :  { %6323 = vpow2.f32 %v1682_v51  ;;  %v7523_v51 = vsel %vm7080_vm1, %v5842_v36, -1e+30 }
 0x73f   :  { %v1688_v35 = vmul.f32 1.442695, %v1676_v62  ;;  %v1690_v20 = vmul.f32 1.442695, %v1677_v19  ;;  %v5846_v56 = vpop.f32.mrf.mxu0  ;;  %v2049_v29 = vsel %vm873_vm2, %v7523_v51, -inf }
 0x740   :  { %v1668_v42 = vpop.xlane.xlu0 %1667  ;;  %v7529_v62 = vsel %vm7101_vm4, %v5843_v25, -1e+30 }
 0x741   :  { %v1678_v24 = vsub.f32 %v1646_v53, %v1668_v42  ;;  %v1671_v53 = vpop.xlane.xlu1 %1670  ;;  %v2020_v42 = vpop.f32.mrf.mxu0 }
 0x742   :  { %v1679_v16 = vsub.f32 %v1647_v22, %v1671_v53 }
 0x743   :  { %v1692_v59 = vmul.f32 1.442695, %v1678_v24  ;;  %v2052_v24 = vsel %vm873_vm2, %v7529_v62, -inf }
 0x744   :  { %v1694_v43 = vmul.f32 1.442695, %v1679_v16 }
 0x745   :  { %6325 = vpow2.f32 %v1692_v59  ;;  %v7535_v59 = vsel %vm7139_vm8, %v2020_v42, -1e+30 }
 0x746   :  { %v7477_v18 = vpop.eup %6317  ;;  %6327 = vpow2.f32 %v1688_v35  ;;  %v2055_v35 = vsel %vm873_vm2, %v7535_v59, -inf }
 0x747   :  { %v1702_v44 = vsel %vm873_vm2, %v7477_v18, 0.0  ;;  %v7481_v5 = vpop.eup %6319  ;;  %6329 = vpow2.f32 %v1694_v43 }
 0x748   :  { %1703 = vadd.xlane.f32.xlu0 %v1702_v44  ;;  %v1696_v17 = vsel %vm873_vm2, %v7481_v5, 0.0  ;;  %6331 = vpow2.f32 %v1690_v20  ;;  %v7541_v44 = vsel %vm7121_vm6, %v5846_v56, -1e+30 }
 0x74a   :  { %v7483_v27 = vpop.eup %6321 }
 0x74b   :  { %v1705_v10 = vsel %vm873_vm2, %v7483_v27, 0.0  ;;  %v7487_v9 = vpop.eup %6323 }
 0x74c   :  { %1706 = vadd.xlane.f32.xlu1 %v1705_v10  ;;  %1697 = vadd.xlane.f32.xlu0 %v1696_v17  ;;  %v1699_v0 = vsel %vm873_vm2, %v7487_v9, 0.0  ;;  %v2061_v10 = vsel %vm873_vm2, %v7541_v44, -inf  ;;  %v5847_v17 = vpop.f32.mrf.mxu0 }
 0x74d   :  { %v7561_v16 = vsel %vm7131_vm7, %v5847_v17, -1e+30 }
 0x74e   :  { %v2064_v19 = vsel %vm873_vm2, %v7561_v16, -inf }
 0x750   :  { %1700 = vadd.xlane.f32.xlu1 %v1699_v0  ;;  %v7549_v0 = vsel %vm7106_vm5, %v2007_v46, -1e+30 }
 0x752   :  { %v7493_v50 = vpop.eup %6325 }
 0x753   :  { %v1714_v38 = vsel %vm873_vm2, %v7493_v50, 0.0  ;;  %v7497_v57 = vpop.eup %6327 }
 0x754   :  { %1715 = vadd.xlane.f32.xlu0 %v1714_v38  ;;  %v1708_v6 = vsel %vm873_vm2, %v7497_v57, 0.0  ;;  %v7507_v21 = vpop.eup %6329  ;;  %v2023_v38 = vpop.f32.mrf.mxu0 }
 0x755   :  { %v1717_v55 = vsel %vm873_vm2, %v7507_v21, 0.0  ;;  %v7511_v2 = vpop.eup %6331  ;;  %v7555_v52 = vsel %vm7143_vm9, %v2023_v38, -1e+30 }
 0x756   :  { %v1711_v22 = vsel %vm873_vm2, %v7511_v2, 0.0  ;;  %v2058_v53 = vsel %vm873_vm2, %v7555_v52, -inf }
 0x758   :  { %1709 = vadd.xlane.f32.xlu0 %v1708_v6  ;;  %v2046_v6 = vsel %vm873_vm2, %v7549_v0, -inf }
 0x761   :  { %1744 = vrot.lane.b32.xlu1 %v7012_v28, %s6703_s25 }
 0x765   :  { %1742 = vrot.lane.b32.xlu1 %v7020_v32, %s6703_s25 }
 0x76e   :  { %1746 = vrot.lane.b32.xlu0 %v7007_v26, %s6703_s25 }
 0x789   :  { %1718 = vadd.xlane.f32.xlu1 %v1717_v55 }
 0x78d   :  { %1712 = vadd.xlane.f32.xlu1 %v1711_v22  ;;  %2044 = vmax.xlane.f32.xlu0 %v2043_v61 }
 0x791   :  { %2050 = vmax.xlane.f32.xlu0 %v2049_v29 }
 0x795   :  { %2053 = vmax.xlane.f32.xlu0 %v2052_v24 }
 0x799   :  { %2056 = vmax.xlane.f32.xlu0 %v2055_v35 }
 0x79d   :  { %2062 = vmax.xlane.f32.xlu0 %v2061_v10 }
 0x79e   :  { %1740 = vrot.lane.b32.xlu1 %v7024_v47, %s6703_s25 }
 0x7c2   :  { %2047 = vmax.xlane.f32.xlu1 %v2046_v6 }
 0x7c6   :  { %2059 = vmax.xlane.f32.xlu1 %v2058_v53 }
 0x7ca   :  { %2065 = vmax.xlane.f32.xlu1 %v2064_v19 }
 0x7d1   :  { %v1704_v43 = vpop.xlane.xlu0 %1703 }
 0x7d5   :  { %v1707_v20 = vpop.xlane.xlu1 %1706  ;;  %v1698_v36 = vpop.xlane.xlu0 %1697 }
 0x7d6   :  { %6333 = vrcp.f32 %v1698_v36 }
 0x7d9   :  { %v1701_v14 = vpop.xlane.xlu1 %1700 }
 0x7da   :  { %6335 = vrcp.f32 %v1701_v14 }
 0x7db   :  { %6337 = vrcp.f32 %v1707_v20 }
 0x7dc   :  { %6339 = vrcp.f32 %v1704_v43 }
 0x7dd   :  { %v1716_v25 = vpop.xlane.xlu0 %1715  ;;  %v1745_v22 = vpop.permute.xlu1 %1744 }
 0x7e1   :  { %v1710_v55 = vpop.xlane.xlu0 %1709  ;;  %v1743_v35 = vpop.permute.xlu1 %1742 }
 0x7e3   :  { %v6334_v46 = vpop.eup %6333 }
 0x7e4   :  { %v1728_v29 = vmul.f32 %v6334_v46, %v7481_v5 }
 0x7e5   :  { %v1747_v61 = vpop.permute.xlu0 %1746 }
 0x7e6   :  { %5804 = vmatprep.subr.bf16.mxu1 %v1747_v61 }
 0x7e7   :  { %v6336_v56 = vpop.eup %6335  ;;  %5805 = vmatpush3.bf16.msra.mxu1 %v1747_v61 }
 0x7e8   :  { %v1729_v42 = vmul.f32 %v6336_v56, %v7487_v9  ;;  %5806 = vmatprep.subr.bf16.mxu1 %v1745_v22  ;;  %v6338_v17 = vpop.eup %6337 }
 0x7e9   :  { %v6340_v6 = vpop.eup %6339  ;;  %v1731_v9 = vmul.f32 %v6338_v17, %v7483_v27 }
 0x7ea   :  { %v1736_v24 = vpack.c.bf16 %v1729_v42, %v1728_v29  ;;  %v1730_v36 = vmul.f32 %v6340_v6, %v7477_v18 }
 0x7eb   :  { %5807 = vmatpush3.bf16.msra.mxu1 %v1745_v22 }
 0x7ec   :  { %5812 = vmatprep.mubr.msk.bf16.mxu1 %vm873_vm2, %v1736_v24  ;;  %5808 = vmatprep.subr.bf16.mxu1 %v1743_v35  ;;  %v1737_v20 = vpack.c.bf16 %v1731_v9, %v1730_v36 }
 0x7ef   :  { %5809 = vmatpush3.bf16.msra.mxu1 %v1743_v35 }
 0x812   :  { %v1719_v10 = vpop.xlane.xlu1 %1718 }
 0x813   :  { %6341 = vrcp.f32 %v1719_v10 }
 0x814   :  { %6343 = vrcp.f32 %v1710_v55 }
 0x815   :  { %6345 = vrcp.f32 %v1716_v25 }
 0x816   :  { %v1713_v38 = vpop.xlane.xlu1 %1712  ;;  %v2045_v5 = vpop.xlane.xlu0 %2044 }
 0x817   :  { %6347 = vrcp.f32 %v1713_v38  ;;  %v2067_v53 = vsub.f32 %v7515_v8, %v2045_v5 }
 0x819   :  { %v2075_v55 = vmul.f32 1.442695, %v2067_v53 }
 0x81a   :  { %v1741_v19 = vpop.permute.xlu1 %1740  ;;  %v2051_v14 = vpop.xlane.xlu0 %2050 }
 0x81b   :  { %5810 = vmatprep.subr.bf16.mxu1 %v1741_v19  ;;  %v2069_v43 = vsub.f32 %v7523_v51, %v2051_v14 }
 0x81c   :  { %5811 = vmatpush3.bf16.msra.mxu1 %v1741_v19 }
 0x81d   :  { %v2079_v46 = vmul.f32 1.442695, %v2069_v43  ;;  %v6137_v43 = vld [vmem:[#allocation7 + $0x28] sm:$0xff]  }
 0x81e   :  { %v2054_v25 = vpop.xlane.xlu0 %2053  ;;  %5820 = vmatprep.subr.bf16.mxu1 %v6137_v43 }
 0x81f   :  { %5813 = vmatmul.mubr.msk.bf16.vlgmr.msra.gmra.mxu1 %vm873_vm2, %v1737_v20  ;;  %6349 = vpow2.f32 %v2079_v46  ;;  %v2070_v22 = vsub.f32 %v7529_v62, %v2054_v25  ;;  %v6138_v20 = vld [vmem:[#allocation7 + $0x20] sm:$0xff]  }
 0x820   :  { %v6342_v27 = vpop.eup %6341  ;;  %6351 = vpow2.f32 %v2075_v55  ;;  %5821 = vmatpush3.bf16.msra.mxu1 %v6137_v43 }
 0x821   :  { %v6344_v61 = vpop.eup %6343  ;;  %v2081_v8 = vmul.f32 1.442695, %v2070_v22  ;;  %v1735_v51 = vmul.f32 %v6342_v27, %v7507_v21  ;;  %5822 = vmatprep.subr.bf16.mxu1 %v6138_v20 }
 0x822   :  { %v6346_v56 = vpop.eup %6345  ;;  %v2057_v18 = vpop.xlane.xlu0 %2056  ;;  %v1732_v42 = vmul.f32 %v6344_v61, %v7497_v57 }
 0x823   :  { %6353 = vpow2.f32 %v2081_v8  ;;  %v2071_v35 = vsub.f32 %v7535_v59, %v2057_v18  ;;  %v1734_v10 = vmul.f32 %v6346_v56, %v7493_v50  ;;  %v5886_v61 = vpop.f32.mrf.mxu0 }
 0x824   :  { %v6348_v29 = vpop.eup %6347  ;;  %5823 = vmatpush3.bf16.msra.mxu1 %v6138_v20  ;;  %v7657_v20 = vpop.f32.mrf.mxu1 }
 0x825   :  { %v1733_v24 = vmul.f32 %v6348_v29, %v7511_v2  ;;  %v1739_v5 = vpack.c.bf16 %v1735_v51, %v1734_v10  ;;  %v2083_v6 = vmul.f32 1.442695, %v2071_v35  ;;  %v2395_v8 = vpop.f32.mrf.mxu0  ;;  %v7619_v29 = vsel %vm7080_vm1, %v5886_v61, -1e+30 }
 0x826   :  { %v2063_v17 = vpop.xlane.xlu0 %2062  ;;  %v7611_v18 = vsel %vm7085_vm3, %v2395_v8, -1e+30 }
 0x827   :  { %v1738_v62 = vpack.c.bf16 %v1733_v24, %v1732_v42  ;;  %v2073_v38 = vsub.f32 %v7541_v44, %v2063_v17  ;;  %v5887_v56 = vpop.f32.mrf.mxu0  ;;  %v2440_v24 = vsel %vm873_vm2, %v7619_v29, -inf }
 0x829   :  { %5816 = vmatprep.mubr.msk.bf16.mxu1 %vm873_vm2, %v1738_v62  ;;  %v2087_v9 = vmul.f32 1.442695, %v2073_v38 }
 0x82a   :  { %5817 = vmatmul.mubr.msk.bf16.gmra.mxu1 %vm873_vm2, %v1739_v5 }
 0x82b   :  { %6355 = vpow2.f32 %v2087_v9 }
 0x82c   :  { %v7582_v21 = vpop.eup %6349  ;;  %6357 = vpow2.f32 %v2083_v6 }
 0x82d   :  { %v2097_v57 = vsel %vm873_vm2, %v7582_v21, 0.0  ;;  %v7586_v2 = vpop.eup %6351 }
 0x82e   :  { %2098 = vadd.xlane.f32.xlu0 %v2097_v57  ;;  %v2091_v59 = vsel %vm873_vm2, %v7586_v2, 0.0 }
 0x830   :  { %v7588_v50 = vpop.eup %6353 }
 0x831   :  { %v2100_v44 = vsel %vm873_vm2, %v7588_v50, 0.0 }
 0x832   :  { %2092 = vadd.xlane.f32.xlu0 %v2091_v59  ;;  %2101 = vadd.xlane.f32.xlu1 %v2100_v44 }
 0x838   :  { %v7594_v53 = vpop.eup %6355 }
 0x839   :  { %v2109_v19 = vsel %vm873_vm2, %v7594_v53, 0.0  ;;  %v7598_v36 = vpop.eup %6357 }
 0x83a   :  { %2110 = vadd.xlane.f32.xlu0 %v2109_v19  ;;  %v2103_v14 = vsel %vm873_vm2, %v7598_v36, 0.0 }
 0x83e   :  { %2104 = vadd.xlane.f32.xlu0 %v2103_v14 }
 0x84b   :  { %v2048_v55 = vpop.xlane.xlu1 %2047 }
 0x84c   :  { %v2068_v46 = vsub.f32 %v7549_v0, %v2048_v55  ;;  %v2398_v0 = vpop.f32.mrf.mxu0 }
 0x84e   :  { %v2077_v25 = vmul.f32 1.442695, %v2068_v46  ;;  %v5890_v51 = vpop.f32.mrf.mxu0  ;;  %v7661_v46 = vpop.f32.mrf.mxu1 }
 0x84f   :  { %v2060_v42 = vpop.xlane.xlu1 %2059  ;;  %v7640_v5 = vsel %vm7121_vm6, %v5890_v51, -1e+30 }
 0x850   :  { %6359 = vpow2.f32 %v2077_v25  ;;  %v2411_v35 = vpop.f32.mrf.mxu0  ;;  %v2452_v6 = vsel %vm873_vm2, %v7640_v5, -inf  ;;  %v2072_v9 = vsub.f32 %v7555_v52, %v2060_v42 }
 0x851   :  { %v7633_v17 = vsel %vm7139_vm8, %v2411_v35, -1e+30 }
 0x852   :  { %v2085_v59 = vmul.f32 1.442695, %v2072_v9  ;;  %v5891_v61 = vpop.f32.mrf.mxu0 }
 0x853   :  { %v2066_v62 = vpop.xlane.xlu1 %2065 }
 0x854   :  { %2141 = vrot.lane.b32.xlu0 %v7007_v26, %s6708_s16  ;;  %v2434_v26 = vsel %vm873_vm2, %v7611_v18, -inf  ;;  %v2074_v38 = vsub.f32 %v7561_v16, %v2066_v62 }
 0x856   :  { %v2089_v57 = vmul.f32 1.442695, %v2074_v38 }
 0x858   :  { %6361 = vpow2.f32 %v2089_v57 }
 0x859   :  { %6363 = vpow2.f32 %v2085_v59 }
 0x85d   :  { %v7605_v22 = vpop.eup %6359 }
 0x85e   :  { %v2094_v27 = vsel %vm873_vm2, %v7605_v22, 0.0 }
 0x85f   :  { %2095 = vadd.xlane.f32.xlu1 %v2094_v27  ;;  %v7665_v27 = vpop.f32.mrf.mxu1 }
 0x865   :  { %v7645_v44 = vpop.eup %6361 }
 0x866   :  { %v2112_v16 = vsel %vm873_vm2, %v7645_v44, 0.0  ;;  %v7649_v19 = vpop.eup %6363 }
 0x867   :  { %v2106_v14 = vsel %vm873_vm2, %v7649_v19, 0.0 }
 0x870   :  { %2139 = vrot.lane.b32.xlu1 %v7012_v28, %s6708_s16  ;;  %v7627_v28 = vsel %vm7101_vm4, %v5887_v56, -1e+30  ;;  %v7667_v56 = vpop.f32.mrf.mxu1 }
 0x871   :  { %v2443_v10 = vsel %vm873_vm2, %v7627_v28, -inf  ;;  %8647 = vst [vmem:[#allocation25_spill] sm:$0xff] %v7667_v56 }
 0x872   :  { %v7675_v42 = vpop.f32.mrf.mxu1 }
 0x873   :  { %2435 = vmax.xlane.f32.xlu0 %v2434_v26  ;;  %v2414_v26 = vpop.f32.mrf.mxu0 }
 0x874   :  { %2137 = vrot.lane.b32.xlu1 %v7020_v32, %s6708_s16  ;;  %v2446_v32 = vsel %vm873_vm2, %v7633_v17, -inf }
 0x877   :  { %2441 = vmax.xlane.f32.xlu0 %v2440_v24  ;;  %v7679_v24 = vsel %vm7143_vm9, %v2414_v26, -1e+30 }
 0x878   :  { %v2449_v35 = vsel %vm873_vm2, %v7679_v24, -inf }
 0x87b   :  { %2444 = vmax.xlane.f32.xlu0 %v2443_v10  ;;  %v7683_v10 = vpop.f32.mrf.mxu1 }
 0x87f   :  { %2447 = vmax.xlane.f32.xlu0 %v2446_v32  ;;  %v7691_v32 = vpop.f32.mrf.mxu1 }
 0x881   :  { %v7693_v38 = vpop.f32.mrf.mxu1 }
 0x882   :  { %8648 = vst [vmem:[#allocation26_spill] sm:$0xff] %v7693_v38 }
 0x883   :  { %2453 = vmax.xlane.f32.xlu0 %v2452_v6 }
 0x898   :  { %2113 = vadd.xlane.f32.xlu1 %v2112_v16 }
 0x89c   :  { %2107 = vadd.xlane.f32.xlu1 %v2106_v14 }
 0x8ad   :  { %2135 = vrot.lane.b32.xlu1 %v7024_v47, %s6708_s16  ;;  %v7671_v47 = vsel %vm7106_vm5, %v2398_v0, -1e+30  ;;  %v7687_v0 = vsel %vm7131_vm7, %v5891_v61, -1e+30 }
 0x8ae   :  { %v2437_v51 = vsel %vm873_vm2, %v7671_v47, -inf  ;;  %v2455_v62 = vsel %vm873_vm2, %v7687_v0, -inf }
 0x8b7   :  { %v7655_v52 = vpop.xlane.xlu0 %2098 }
 0x8bb   :  { %v2093_v43 = vpop.xlane.xlu0 %2092  ;;  %v2102_v59 = vpop.xlane.xlu1 %2101 }
 0x8bc   :  { %6365 = vrcp.f32 %v2093_v43 }
 0x8c3   :  { %v7659_v55 = vpop.xlane.xlu0 %2110 }
 0x8c7   :  { %v7663_v25 = vpop.xlane.xlu0 %2104 }
 0x8c9   :  { %v6366_v43 = vpop.eup %6365 }
 0x8cb   :  { %v2142_v8 = vpop.permute.xlu0 %2141 }
 0x8cc   :  { %5848 = vmatprep.subr.bf16.mxu1 %v2142_v8 }
 0x8d1   :  { %2438 = vmax.xlane.f32.xlu1 %v2437_v51 }
 0x8d5   :  { %2450 = vmax.xlane.f32.xlu1 %v2449_v35 }
 0x8d9   :  { %2456 = vmax.xlane.f32.xlu1 %v2455_v62 }
 0x8df   :  { %v5814_v6 = vpop.f32.mrf.mxu1 }
 0x8e1   :  { %v1798_v9 = vpop.f32.mrf.mxu1 }
 0x8e3   :  { %v5815_v57 = vpop.f32.mrf.mxu1 }
 0x8e4   :  { %v1830_v26 = vpack.c.bf16 %v5815_v57, %v5814_v6 }
 0x8e5   :  { %v1801_v16 = vpop.f32.mrf.mxu1 }
 0x8e6   :  { %v1829_v14 = vpack.c.bf16 %v1801_v16, %v1798_v9 }
 0x8e8   :  { %5824 = vmatprep.mubr.msk.bf16.mxu1 %vm775_vm0, %v1829_v14  ;;  %v2096_v61 = vpop.xlane.xlu1 %2095 }
 0x8e9   :  { %6367 = vrcp.f32 %v2096_v61  ;;  %5825 = vmatmul.mubr.msk.bf16.vlgmr.msra.gmra.mxu1 %vm775_vm0, %v1830_v26 }
 0x8ea   :  { %5849 = vmatpush3.bf16.msra.mxu1 %v2142_v8  ;;  %v5818_v51 = vpop.f32.mrf.mxu1  ;;  %v2123_v8 = vmul.f32 %v6366_v43, %v7586_v2 }
 0x8ec   :  { %v1814_v35 = vpop.f32.mrf.mxu1  ;;  %v2140_v62 = vpop.permute.xlu1 %2139 }
 0x8ed   :  { %5850 = vmatprep.subr.bf16.mxu1 %v2140_v62 }
 0x8ee   :  { %v5819_v38 = vpop.f32.mrf.mxu1  ;;  %5851 = vmatpush3.bf16.msra.mxu1 %v2140_v62 }
 0x8ef   :  { %v1832_v9 = vpack.c.bf16 %v5819_v38, %v5818_v51 }
 0x8f0   :  { %v1817_v1 = vpop.f32.mrf.mxu1  ;;  %v2138_v56 = vpop.permute.xlu1 %2137 }
 0x8f1   :  { %v1831_v30 = vpack.c.bf16 %v1817_v1, %v1814_v35  ;;  %5852 = vmatprep.subr.bf16.mxu1 %v2138_v56 }
 0x8f2   :  { %5853 = vmatpush3.bf16.msra.mxu1 %v2138_v56 }
 0x8f3   :  { %5828 = vmatprep.mubr.msk.bf16.mxu1 %vm775_vm0, %v1831_v30 }
 0x8f4   :  { %5829 = vmatmul.mubr.msk.bf16.gmra.mxu1 %vm775_vm0, %v1832_v9 }
 0x8f6   :  { %v6368_v6 = vpop.eup %6367 }
 0x8f7   :  { %v2124_v57 = vmul.f32 %v6368_v6, %v7605_v22 }
 0x8f9   :  { %v2131_v16 = vpack.c.bf16 %v2124_v57, %v2123_v8 }
 0x8fb   :  { %5856 = vmatprep.mubr.msk.bf16.mxu1 %vm873_vm2, %v2131_v16 }
 0x8fc   :  { %v2436_v14 = vpop.xlane.xlu0 %2435 }
 0x8fd   :  { %v2458_v26 = vsub.f32 %v7611_v18, %v2436_v14 }
 0x8ff   :  { %v2466_v56 = vmul.f32 1.442695, %v2458_v26 }
 0x900   :  { %v2442_v1 = vpop.xlane.xlu0 %2441 }
 0x901   :  { %v2460_v38 = vsub.f32 %v7619_v29, %v2442_v1 }
 0x903   :  { %v2470_v61 = vmul.f32 1.442695, %v2460_v38 }
 0x904   :  { %v2445_v30 = vpop.xlane.xlu0 %2444 }
 0x905   :  { %6369 = vpow2.f32 %v2470_v61  ;;  %v2461_v51 = vsub.f32 %v7627_v28, %v2445_v30  ;;  %v6139_v61 = vld [vmem:[#allocation7 + $0x38] sm:$0xff]  }
 0x906   :  { %6371 = vpow2.f32 %v2466_v56 }
 0x907   :  { %v2472_v35 = vmul.f32 1.442695, %v2461_v51 }
 0x908   :  { %v2448_v2 = vpop.xlane.xlu0 %2447 }
 0x909   :  { %6373 = vpow2.f32 %v2472_v35  ;;  %v2462_v22 = vsub.f32 %v7633_v17, %v2448_v2 }
 0x90b   :  { %v2474_v43 = vmul.f32 1.442695, %v2462_v22 }
 0x90c   :  { %v2454_v62 = vpop.xlane.xlu0 %2453 }
 0x90d   :  { %v2464_v9 = vsub.f32 %v7640_v5, %v2454_v62 }
 0x90f   :  { %v2478_v18 = vmul.f32 1.442695, %v2464_v9  ;;  %v8649_v9 = vld [vmem:[#allocation20_spill] sm:$0xff] }
 0x911   :  { %6375 = vpow2.f32 %v2478_v18 }
 0x912   :  { %v7707_v6 = vpop.eup %6369  ;;  %6377 = vpow2.f32 %v2474_v43 }
 0x913   :  { %v2488_v29 = vsel %vm873_vm2, %v7707_v6, 0.0  ;;  %v7711_v8 = vpop.eup %6371  ;;  %6379 = vrcp.f32 %v2102_v59 }
 0x914   :  { %2489 = vadd.xlane.f32.xlu0 %v2488_v29  ;;  %v2482_v17 = vsel %vm873_vm2, %v7711_v8, 0.0  ;;  %6381 = vrcp.f32 %v7655_v52 }
 0x916   :  { %v7713_v28 = vpop.eup %6373 }
 0x917   :  { %v2491_v5 = vsel %vm873_vm2, %v7713_v28, 0.0 }
 0x918   :  { %2483 = vadd.xlane.f32.xlu0 %v2482_v17  ;;  %2492 = vadd.xlane.f32.xlu1 %v2491_v5 }
 0x91e   :  { %v7720_v57 = vpop.eup %6375 }
 0x91f   :  { %v2500_v16 = vsel %vm873_vm2, %v7720_v57, 0.0  ;;  %v7724_v14 = vpop.eup %6377 }
 0x920   :  { %2501 = vadd.xlane.f32.xlu0 %v2500_v16  ;;  %v2494_v59 = vsel %vm873_vm2, %v7724_v14, 0.0  ;;  %v6380_v1 = vpop.eup %6379 }
 0x921   :  { %v2114_v26 = vpop.xlane.xlu1 %2113  ;;  %v6382_v38 = vpop.eup %6381  ;;  %v2126_v56 = vmul.f32 %v6380_v1, %v7588_v50 }
 0x922   :  { %6383 = vrcp.f32 %v2114_v26  ;;  %v2125_v51 = vmul.f32 %v6382_v38, %v7582_v21 }
 0x923   :  { %6385 = vrcp.f32 %v7663_v25  ;;  %v6140_v25 = vld [vmem:[#allocation7 + $0x30] sm:$0xff]  }
 0x924   :  { %6387 = vrcp.f32 %v7659_v55  ;;  %2495 = vadd.xlane.f32.xlu0 %v2494_v59  ;;  %v2132_v35 = vpack.c.bf16 %v2126_v56, %v2125_v51 }
 0x925   :  { %v2108_v52 = vpop.xlane.xlu1 %2107 }
 0x926   :  { %6389 = vrcp.f32 %v2108_v52 }
 0x929   :  { %v2136_v30 = vpop.permute.xlu1 %2135 }
 0x92a   :  { %5854 = vmatprep.subr.bf16.mxu1 %v2136_v30 }
 0x92b   :  { %5855 = vmatpush3.bf16.msra.mxu1 %v2136_v30  ;;  %v1513_v30 = vadd.f32 %v7657_v20, %v7437_v40 }
 0x92c   :  { %5864 = vmatprep.subr.bf16.mxu1 %v6139_v61 }
 0x92e   :  { %5857 = vmatmul.mubr.msk.bf16.vlgmr.msra.gmra.mxu1 %vm873_vm2, %v2132_v35 }
 0x92f   :  { %5865 = vmatpush3.bf16.msra.mxu1 %v6139_v61  ;;  %v6384_v2 = vpop.eup %6383 }
 0x930   :  { %5866 = vmatprep.subr.bf16.mxu1 %v6140_v25  ;;  %v6386_v55 = vpop.eup %6385  ;;  %v2130_v50 = vmul.f32 %v6384_v2, %v7645_v44  ;;  %v1516_v2 = vadd.f32 %v7665_v27, %v7441_v11  ;;  %v1532_v11 = vadd.f32 %v7691_v32, %v7449_v34 }
 0x931   :  { %v6388_v22 = vpop.eup %6387  ;;  %v2127_v21 = vmul.f32 %v6386_v55, %v7598_v36 }
 0x932   :  { %v2129_v18 = vmul.f32 %v6388_v22, %v7594_v53 }
 0x933   :  { %v6390_v62 = vpop.eup %6389  ;;  %5867 = vmatpush3.bf16.msra.mxu1 %v6140_v25 }
 0x934   :  { %5892 = vmatprep.subr.bf16.mxu1 %v8649_v9  ;;  %v2128_v43 = vmul.f32 %v6390_v62, %v7649_v19  ;;  %v2134_v17 = vpack.c.bf16 %v2130_v50, %v2129_v18 }
 0x936   :  { %v2133_v29 = vpack.c.bf16 %v2128_v43, %v2127_v21 }
 0x938   :  { %5860 = vmatprep.mubr.msk.bf16.mxu1 %vm873_vm2, %v2133_v29 }
 0x939   :  { %5861 = vmatmul.mubr.msk.bf16.gmra.mxu1 %vm873_vm2, %v2134_v17 }
 0x93a   :  { %2629 = vrot.lane.b32.xlu0 %v7395_v33, %s6707_s5 }
 0x93e   :  { %2611 = vrot.lane.b32.xlu0 %v7040_v12, %s6707_s5 }
 0x942   :  { %2615 = vrot.lane.b32.xlu0 %v7065_v3, %s6707_s5 }
 0x95a   :  { %v2439_v36 = vpop.xlane.xlu1 %2438 }
 0x95b   :  { %v2459_v44 = vsub.f32 %v7671_v47, %v2439_v36 }
 0x95d   :  { %v2468_v19 = vmul.f32 1.442695, %v2459_v44 }
 0x95e   :  { %v2451_v16 = vpop.xlane.xlu1 %2450 }
 0x95f   :  { %6391 = vpow2.f32 %v2468_v19  ;;  %v2463_v47 = vsub.f32 %v7679_v24, %v2451_v16  ;;  %v8651_v16 = vld [vmem:[#allocation22_spill] sm:$0xff] }
 0x961   :  { %v2476_v52 = vmul.f32 1.442695, %v2463_v47 }
 0x962   :  { %v2457_v26 = vpop.xlane.xlu1 %2456 }
 0x963   :  { %v2465_v59 = vsub.f32 %v7687_v0, %v2457_v26  ;;  %v1505_v0 = vadd.f32 %v7661_v46, %v7439_v60  ;;  %v1529_v60 = vadd.f32 %v7675_v42, %v7445_v41  ;;  %v1521_v46 = vadd.f32 %v7683_v10, %v7447_v58 }
 0x965   :  { %v2480_v1 = vmul.f32 1.442695, %v2465_v59 }
 0x967   :  { %6393 = vpow2.f32 %v2480_v1 }
 0x968   :  { %6395 = vpow2.f32 %v2476_v52 }
 0x96c   :  { %v7747_v53 = vpop.eup %6391 }
 0x96d   :  { %v2485_v5 = vsel %vm873_vm2, %v7747_v53, 0.0 }
 0x96e   :  { %2486 = vadd.xlane.f32.xlu1 %v2485_v5  ;;  %v8650_v5 = vld [vmem:[#allocation19_spill] sm:$0xff] }
 0x96f   :  { %v7802_v26 = vpack.c.bf16 %v8651_v16, %v8650_v5  ;;  %v6541_v5 = vld [vmem:[#allocation7 + $0x8] sm:$0xff]  }
 0x974   :  { %v7757_v38 = vpop.eup %6393 }
 0x975   :  { %v2503_v56 = vsel %vm873_vm2, %v7757_v38, 0.0  ;;  %v7761_v61 = vpop.eup %6395 }
 0x976   :  { %v2497_v35 = vsel %vm873_vm2, %v7761_v61, 0.0 }
 0x97f   :  { %2627 = vrot.lane.b32.xlu1 %v7402_v13, %s6707_s5 }
 0x983   :  { %2625 = vrot.lane.b32.xlu1 %v7412_v45, %s6707_s5 }
 0x99d   :  { %v2490_v58 = vpop.xlane.xlu0 %2489 }
 0x9a1   :  { %v2493_v34 = vpop.xlane.xlu1 %2492  ;;  %v2484_v29 = vpop.xlane.xlu0 %2483 }
 0x9a2   :  { %6397 = vrcp.f32 %v2493_v34 }
 0x9a3   :  { %6399 = vrcp.f32 %v2484_v29 }
 0x9a4   :  { %6401 = vrcp.f32 %v2490_v58 }
 0x9a7   :  { %2504 = vadd.xlane.f32.xlu1 %v2503_v56  ;;  %v8652_v56 = vld [vmem:[#allocation17_spill] sm:$0xff] }
 0x9a9   :  { %v5826_v51 = vpop.f32.mrf.mxu1  ;;  %v2502_v59 = vpop.xlane.xlu0 %2501 }
 0x9aa   :  { %v7767_v24 = vadd.f32 %v5826_v51, %v1513_v30 }
 0x9ab   :  { %v1891_v25 = vpop.f32.mrf.mxu1  ;;  %2498 = vadd.xlane.f32.xlu1 %v2497_v35  ;;  %v8654_v35 = vld [vmem:[#allocation18_spill] sm:$0xff] }
 0x9ac   :  { %v7773_v55 = vadd.f32 %v1891_v25, %v1505_v0  ;;  %v8653_v0 = vld [vmem:[#allocation16_spill] sm:$0xff] }
 0x9ad   :  { %v5827_v22 = vpop.f32.mrf.mxu1  ;;  %v2496_v30 = vpop.xlane.xlu0 %2495  ;;  %v7811_v25 = vpack.c.bf16 %v8654_v35, %v8653_v0 }
 0x9ae   :  { %v7775_v62 = vadd.f32 %v5827_v22, %v1516_v2 }
 0x9af   :  { %v7777_v40 = vpop.f32.mrf.mxu1 }
 0x9b4   :  { %v5830_v20 = vpop.f32.mrf.mxu1 }
 0x9b5   :  { %v7783_v50 = vadd.f32 %v5830_v20, %v1529_v60  ;;  %v6398_v60 = vpop.eup %6397 }
 0x9b6   :  { %v1907_v21 = vpop.f32.mrf.mxu1  ;;  %v6400_v20 = vpop.eup %6399 }
 0x9b7   :  { %v7787_v27 = vadd.f32 %v1907_v21, %v1521_v46  ;;  %v6402_v46 = vpop.eup %6401  ;;  %v2514_v58 = vmul.f32 %v6400_v20, %v7711_v8 }
 0x9b8   :  { %v5831_v43 = vpop.f32.mrf.mxu1 }
 0x9b9   :  { %v7789_v18 = vadd.f32 %v5831_v43, %v1532_v11  ;;  %v2517_v11 = vmul.f32 %v6398_v60, %v7713_v28  ;;  %v2630_v43 = vpop.permute.xlu0 %2629 }
 0x9ba   :  { %v7797_v41 = vpop.f32.mrf.mxu1  ;;  %v2653_v29 = vsel %vm775_vm0, %v2630_v43, 0 }
 0x9bc   :  { %2623 = vrot.lane.b32.xlu1 %v7423_v4, %s6707_s5 }
 0x9c0   :  { %2613 = vrot.lane.b32.xlu1 %v7054_v39, %s6707_s5 }
 0x9c4   :  { %2617 = vrot.lane.b32.xlu1 %v7073_v15, %s6707_s5 }
 0x9ee   :  { %v5858_v42 = vpop.f32.mrf.mxu1 }
 0x9f0   :  { %v2193_v10 = vpop.f32.mrf.mxu1 }
 0x9f2   :  { %v5859_v32 = vpop.f32.mrf.mxu1 }
 0x9f3   :  { %v2225_v44 = vpack.c.bf16 %v5859_v32, %v5858_v42 }
 0x9f4   :  { %v2196_v17 = vpop.f32.mrf.mxu1 }
 0x9f5   :  { %v2224_v36 = vpack.c.bf16 %v2196_v17, %v2193_v10  ;;  %v2516_v10 = vmul.f32 %v6402_v46, %v7707_v6 }
 0x9f7   :  { %5868 = vmatprep.mubr.msk.bf16.mxu1 %vm775_vm0, %v2224_v36  ;;  %v2487_v19 = vpop.xlane.xlu1 %2486  ;;  %v2523_v32 = vpack.c.bf16 %v2517_v11, %v2516_v10 }
 0x9f8   :  { %6403 = vrcp.f32 %v2487_v19  ;;  %5869 = vmatmul.mubr.msk.bf16.vlgmr.msra.gmra.mxu1 %vm775_vm0, %v2225_v44 }
 0x9f9   :  { %5893 = vmatpush3.bf16.msra.mxu1 %v8649_v9  ;;  %v5862_v47 = vpop.f32.mrf.mxu1 }
 0x9fa   :  { %5894 = vmatprep.subr.bf16.mxu1 %v7802_v26 }
 0x9fb   :  { %v2209_v1 = vpop.f32.mrf.mxu1  ;;  %v2628_v28 = vpop.permute.xlu1 %2627 }
 0x9fc   :  { %v2650_v17 = vsel %vm775_vm0, %v2628_v28, 0 }
 0x9fd   :  { %5895 = vmatpush3.bf16.msra.mxu1 %v7802_v26  ;;  %v5863_v52 = vpop.f32.mrf.mxu1 }
 0x9fe   :  { %5896 = vmatprep.subr.bf16.mxu1 %v8652_v56  ;;  %v2227_v22 = vpack.c.bf16 %v5863_v52, %v5862_v47 }
 0x9ff   :  { %v2212_v51 = vpop.f32.mrf.mxu1  ;;  %v2626_v36 = vpop.permute.xlu1 %2625 }
 0xa00   :  { %v2226_v2 = vpack.c.bf16 %v2212_v51, %v2209_v1  ;;  %v2647_v6 = vsel %vm775_vm0, %v2626_v36, 0 }
 0xa01   :  { %5897 = vmatpush3.bf16.msra.mxu1 %v8652_v56 }
 0xa02   :  { %5898 = vmatprep.subr.bf16.mxu1 %v7811_v25  ;;  %5872 = vmatprep.mubr.msk.bf16.mxu1 %vm775_vm0, %v2226_v2 }
 0xa03   :  { %5873 = vmatmul.mubr.msk.bf16.gmra.mxu1 %vm775_vm0, %v2227_v22  ;;  %v2612_v22 = vpop.permute.xlu0 %2611 }
 0xa05   :  { %v6404_v21 = vpop.eup %6403  ;;  %5899 = vmatpush3.bf16.msra.mxu1 %v7811_v25 }
 0xa06   :  { %6072 = vmatprep.subr.msk.bf16.mxu1 %vm775_vm0, %v2630_v43  ;;  %v2515_v42 = vmul.f32 %v6404_v21, %v7747_v53 }
 0xa07   :  { %v2616_v20 = vpop.permute.xlu0 %2615 }
 0xa08   :  { %v2522_v34 = vpack.c.bf16 %v2515_v42, %v2514_v58 }
 0xa0a   :  { %5900 = vmatprep.mubr.msk.bf16.mxu1 %vm873_vm2, %v2522_v34 }
 0xa0b   :  { %5901 = vmatmul.mubr.msk.bf16.vlgmr.msra.gmra.mxu1 %vm873_vm2, %v2523_v32 }
 0xa0c   :  { %5909 = vmatpush3.bf16.xpose.msra.mxu1 %v2653_v29 }
 0xa0d   :  { %6073 = vmatprep.subr.msk.bf16.mxu1 %vm775_vm0, %v2628_v28 }
 0xa14   :  { %5911 = vmatpush3.bf16.xpose.msra.mxu1 %v2650_v17 }
 0xa15   :  { %6074 = vmatprep.subr.msk.bf16.mxu1 %vm775_vm0, %v2626_v36 }
 0xa1c   :  { %5913 = vmatpush3.bf16.xpose.msra.mxu1 %v2647_v6 }
 0xa30   :  { %v2505_v8 = vpop.xlane.xlu1 %2504 }
 0xa31   :  { %6405 = vrcp.f32 %v2505_v8 }
 0xa32   :  { %6407 = vrcp.f32 %v2496_v30 }
 0xa33   :  { %6409 = vrcp.f32 %v2502_v59 }
 0xa34   :  { %v2499_v53 = vpop.xlane.xlu1 %2498 }
 0xa35   :  { %6411 = vrcp.f32 %v2499_v53 }
 0xa38   :  { %v2624_v44 = vpop.permute.xlu1 %2623 }
 0xa39   :  { %6075 = vmatprep.subr.msk.bf16.mxu1 %vm775_vm0, %v2624_v44  ;;  %v2644_v19 = vsel %vm775_vm0, %v2624_v44, 0 }
 0xa3a   :  { %5915 = vmatpush3.bf16.xpose.msra.mxu1 %v2644_v19 }
 0xa3b   :  { %5952 = vmatprep.subr.bf16.mxu1 %v6541_v5 }
 0xa3c   :  { %v2614_v60 = vpop.permute.xlu1 %2613 }
 0xa3e   :  { %v6406_v16 = vpop.eup %6405 }
 0xa3f   :  { %v6408_v47 = vpop.eup %6407  ;;  %v2521_v51 = vmul.f32 %v6406_v16, %v7757_v38 }
 0xa40   :  { %v6410_v1 = vpop.eup %6409  ;;  %v2518_v0 = vmul.f32 %v6408_v47, %v7724_v14  ;;  %v6542_v14 = vld [vmem:[#allocation7] sm:$0xff]  }
 0xa41   :  { %v2520_v30 = vmul.f32 %v6410_v1, %v7720_v57  ;;  %v2618_v57 = vpop.permute.xlu1 %2617 }
 0xa42   :  { %v6412_v52 = vpop.eup %6411 }
 0xa43   :  { %v2519_v59 = vmul.f32 %v6412_v52, %v7761_v61  ;;  %v2525_v2 = vpack.c.bf16 %v2521_v51, %v2520_v30 }
 0xa45   :  { %v2524_v35 = vpack.c.bf16 %v2519_v59, %v2518_v0 }
 0xa47   :  { %5904 = vmatprep.mubr.msk.bf16.mxu1 %vm873_vm2, %v2524_v35 }
 0xa48   :  { %5905 = vmatmul.mubr.msk.bf16.gmra.mxu1 %vm873_vm2, %v2525_v2 }
 0xa49   :  { %5916 = vmatprep.mubr.msk.bf16.mxu1 %vm775_vm0, %v2612_v22 }
 0xa50   :  { %5917 = vmatmul.mubr.msk.bf16.vlgmr.msra.gmra.mxu1 %vm775_vm0, %v2614_v60 }
 0xa51   :  { %5920 = vmatprep.mubr.msk.bf16.mxu1 %vm775_vm0, %v2616_v20  ;;  %5953 = vmatpush3.bf16.msra.mxu1 %v6541_v5 }
 0xa52   :  { %5954 = vmatprep.subr.bf16.mxu1 %v6542_v14 }
 0xa55   :  { %5955 = vmatpush3.bf16.msra.mxu1 %v6542_v14 }
 0xa58   :  { %5921 = vmatmul.mubr.msk.bf16.gmra.mxu1 %vm775_vm0, %v2618_v57 }
 0xab8   :  { %v5870_v38 = vpop.f32.mrf.mxu1 }
 0xab9   :  { %v7843_v61 = vadd.f32 %v5870_v38, %v7767_v24 }
 0xaba   :  { %v2286_v46 = vpop.f32.mrf.mxu1 }
 0xabb   :  { %v7846_v21 = vadd.f32 %v2286_v46, %v7773_v55 }
 0xabc   :  { %v5871_v11 = vpop.f32.mrf.mxu1 }
 0xabd   :  { %v7849_v43 = vadd.f32 %v5871_v11, %v7775_v62 }
 0xabe   :  { %v7851_v58 = vpop.f32.mrf.mxu1 }
 0xac3   :  { %v5874_v42 = vpop.f32.mrf.mxu1 }
 0xac4   :  { %v7854_v10 = vadd.f32 %v5874_v42, %v7783_v50 }
 0xac5   :  { %v2302_v34 = vpop.f32.mrf.mxu1 }
 0xac6   :  { %v7857_v32 = vadd.f32 %v2302_v34, %v7787_v27 }
 0xac7   :  { %v5875_v24 = vpop.f32.mrf.mxu1 }
 0xac8   :  { %v7860_v29 = vadd.f32 %v5875_v24, %v7789_v18 }
 0xac9   :  { %v7862_v55 = vpop.f32.mrf.mxu1 }
 0xacb   :  { %v5902_v28 = vpop.f32.mrf.mxu1 }
 0xacd   :  { %v2572_v17 = vpop.f32.mrf.mxu1 }
 0xacf   :  { %v5903_v62 = vpop.f32.mrf.mxu1 }
 0xad0   :  { %v2604_v8 = vpack.c.bf16 %v5903_v62, %v5902_v28 }
 0xad1   :  { %v2575_v36 = vpop.f32.mrf.mxu1 }
 0xad2   :  { %v2603_v6 = vpack.c.bf16 %v2575_v36, %v2572_v17 }
 0xad4   :  { %5956 = vmatprep.mubr.msk.bf16.mxu1 %vm775_vm0, %v2603_v6 }
 0xad5   :  { %5957 = vmatmul.mubr.msk.bf16.vlgmr.msra.gmra.mxu1 %vm775_vm0, %v2604_v8 }
 0xb08   :  { %v5906_v50 = vpop.f32.mrf.mxu1 }
 0xb0a   :  { %v2588_v53 = vpop.f32.mrf.mxu1 }
 0xb0c   :  { %v5907_v27 = vpop.f32.mrf.mxu1 }
 0xb0d   :  { %v2606_v5 = vpack.c.bf16 %v5907_v27, %v5906_v50 }
 0xb0e   :  { %v2591_v44 = vpop.f32.mrf.mxu1 }
 0xb0f   :  { %v2605_v19 = vpack.c.bf16 %v2591_v44, %v2588_v53 }
 0xb10   :  { %v5918_v18 = vpop.f32.mrf.mxu1 }
 0xb11   :  { %5960 = vmatprep.mubr.msk.bf16.mxu1 %vm775_vm0, %v2605_v19  ;;  %v2722_v51 = vsel %vm7080_vm1, %v5918_v18, -1e+30 }
 0xb12   :  { %v2689_v16 = vpop.f32.mrf.mxu1  ;;  %5961 = vmatmul.mubr.msk.bf16.gmra.mxu1 %vm775_vm0, %v2606_v5  ;;  %v2734_v30 = vsel %vm873_vm2, %v2722_v51, -inf }
 0xb13   :  { %v2720_v47 = vsel %vm7085_vm3, %v2689_v16, -1e+30 }
 0xb14   :  { %v2728_v1 = vsel %vm873_vm2, %v2720_v47, -inf  ;;  %v5919_v52 = vpop.f32.mrf.mxu1 }
 0xb15   :  { %2729 = vmax.xlane.f32.xlu0 %v2728_v1  ;;  %v2723_v22 = vsel %vm7101_vm4, %v5919_v52, -1e+30 }
 0xb16   :  { %v2692_v0 = vpop.f32.mrf.mxu1  ;;  %v2737_v20 = vsel %vm873_vm2, %v2723_v22, -inf }
 0xb17   :  { %v2721_v59 = vsel %vm7106_vm5, %v2692_v0, -1e+30 }
 0xb18   :  { %v2731_v35 = vsel %vm873_vm2, %v2721_v59, -inf  ;;  %v5922_v2 = vpop.f32.mrf.mxu1 }
 0xb19   :  { %2735 = vmax.xlane.f32.xlu0 %v2734_v30  ;;  %2732 = vmax.xlane.f32.xlu1 %v2731_v35  ;;  %v2726_v57 = vsel %vm7121_vm6, %v5922_v2, -1e+30 }
 0xb1a   :  { %v2705_v60 = vpop.f32.mrf.mxu1  ;;  %v2746_v34 = vsel %vm873_vm2, %v2726_v57, -inf }
 0xb1b   :  { %v2724_v24 = vsel %vm7139_vm8, %v2705_v60, -1e+30 }
 0xb1c   :  { %v5923_v14 = vpop.f32.mrf.mxu1  ;;  %v2740_v17 = vsel %vm873_vm2, %v2724_v24, -inf }
 0xb1d   :  { %v2727_v38 = vsel %vm7131_vm7, %v5923_v14, -1e+30  ;;  %2738 = vmax.xlane.f32.xlu0 %v2737_v20 }
 0xb1e   :  { %v2749_v46 = vsel %vm873_vm2, %v2727_v38, -inf  ;;  %v2708_v11 = vpop.f32.mrf.mxu1 }
 0xb1f   :  { %v2725_v42 = vsel %vm7143_vm9, %v2708_v11, -1e+30  ;;  %2750 = vmax.xlane.f32.xlu1 %v2749_v46 }
 0xb20   :  { %v2743_v28 = vsel %vm873_vm2, %v2725_v42, -inf }
 0xb21   :  { %2747 = vmax.xlane.f32.xlu0 %v2746_v34 }
 0xb23   :  { %2744 = vmax.xlane.f32.xlu1 %v2743_v28 }
 0xb25   :  { %2741 = vmax.xlane.f32.xlu0 %v2740_v17 }
 0xb34   :  { %2828 = vrot.lane.b32.xlu1 %v7802_v26, %s6707_s5 }
 0xb3b   :  { %2830 = vrot.lane.b32.xlu0 %v8649_v9, %s6707_s5 }
 0xb9e   :  { %v2730_v62 = vpop.xlane.xlu0 %2729 }
 0xb9f   :  { %v2752_v36 = vsub.f32 %v2720_v47, %v2730_v62 }
 0xba1   :  { %v2760_v44 = vmul.f32 1.442695, %v2752_v36 }
 0xba2   :  { %v2733_v6 = vpop.xlane.xlu1 %2732  ;;  %v2736_v8 = vpop.xlane.xlu0 %2735 }
 0xba3   :  { %v2754_v50 = vsub.f32 %v2722_v51, %v2736_v8  ;;  %v2753_v53 = vsub.f32 %v2721_v59, %v2733_v6 }
 0xba5   :  { %v2764_v27 = vmul.f32 1.442695, %v2754_v50  ;;  %v2762_v16 = vmul.f32 1.442695, %v2753_v53 }
 0xba6   :  { %v2739_v19 = vpop.xlane.xlu0 %2738 }
 0xba7   :  { %v2755_v5 = vsub.f32 %v2723_v22, %v2739_v19  ;;  %6413 = vpow2.f32 %v2764_v27 }
 0xba8   :  { %v2751_v18 = vpop.xlane.xlu1 %2750  ;;  %6415 = vpow2.f32 %v2760_v44 }
 0xba9   :  { %v2766_v1 = vmul.f32 1.442695, %v2755_v5  ;;  %v2759_v51 = vsub.f32 %v2727_v38, %v2751_v18 }
 0xbaa   :  { %v2748_v52 = vpop.xlane.xlu0 %2747 }
 0xbab   :  { %6417 = vpow2.f32 %v2766_v1  ;;  %v2758_v30 = vsub.f32 %v2726_v57, %v2748_v52  ;;  %v2774_v11 = vmul.f32 1.442695, %v2759_v51 }
 0xbac   :  { %v2745_v0 = vpop.xlane.xlu1 %2744  ;;  %6419 = vpow2.f32 %v2762_v16 }
 0xbad   :  { %v2757_v35 = vsub.f32 %v2725_v42, %v2745_v0  ;;  %v2772_v59 = vmul.f32 1.442695, %v2758_v30 }
 0xbae   :  { %v2742_v47 = vpop.xlane.xlu0 %2741 }
 0xbaf   :  { %v2770_v2 = vmul.f32 1.442695, %v2757_v35  ;;  %v2756_v60 = vsub.f32 %v2724_v24, %v2742_v47 }
 0xbb0   :  { %v2829_v22 = vpop.permute.xlu1 %2828 }
 0xbb1   :  { %6421 = vpow2.f32 %v2770_v2  ;;  %v2768_v20 = vmul.f32 1.442695, %v2756_v60 }
 0xbb2   :  { %v2831_v14 = vpop.permute.xlu0 %2830 }
 0xbb3   :  { %6423 = vpow2.f32 %v2768_v20  ;;  %5924 = vmatprep.subr.bf16.mxu0 %v2831_v14  ;;  %v6543_v20 = vld [vmem:[#allocation7 + $0x18] sm:$0xff]  }
 0xbb4   :  { %5925 = vmatpush3.bf16.msra.mxu0 %v2831_v14  ;;  %v7896_v46 = vpop.eup %6413  ;;  %6425 = vpow2.f32 %v2772_v59 }
 0xbb5   :  { %5926 = vmatprep.subr.bf16.mxu0 %v2829_v22  ;;  %v2782_v57 = vsel %vm873_vm2, %v7896_v46, 0.0  ;;  %v7900_v42 = vpop.eup %6415  ;;  %6427 = vpow2.f32 %v2774_v11 }
 0xbb6   :  { %2783 = vadd.xlane.f32.xlu0 %v2782_v57  ;;  %v2776_v28 = vsel %vm873_vm2, %v7900_v42, 0.0 }
 0xbb8   :  { %v7902_v38 = vpop.eup %6417  ;;  %5927 = vmatpush3.bf16.msra.mxu0 %v2829_v22 }
 0xbb9   :  { %v2785_v34 = vsel %vm873_vm2, %v7902_v38, 0.0  ;;  %v6420_v24 = vpop.eup %6419 }
 0xbba   :  { %2786 = vadd.xlane.f32.xlu1 %v2785_v34  ;;  %2777 = vadd.xlane.f32.xlu0 %v2776_v28  ;;  %v2779_v17 = vsel %vm873_vm2, %v6420_v24, 0.0 }
 0xbbe   :  { %v7909_v62 = vpop.eup %6421  ;;  %2780 = vadd.xlane.f32.xlu1 %v2779_v17 }
 0xbbf   :  { %v2791_v36 = vsel %vm873_vm2, %v7909_v62, 0.0 }
 0xbc0   :  { %v7913_v6 = vpop.eup %6423  ;;  %2792 = vadd.xlane.f32.xlu0 %v2791_v36 }
 0xbc1   :  { %v2788_v8 = vsel %vm873_vm2, %v7913_v6, 0.0  ;;  %v7917_v50 = vpop.eup %6425 }
 0xbc2   :  { %2789 = vadd.xlane.f32.xlu1 %v2788_v8  ;;  %v2794_v53 = vsel %vm873_vm2, %v7917_v50, 0.0  ;;  %v7921_v27 = vpop.eup %6427 }
 0xbc3   :  { %v2797_v44 = vsel %vm873_vm2, %v7921_v27, 0.0 }
 0xbc6   :  { %2795 = vadd.xlane.f32.xlu1 %v2794_v53 }
 0xbca   :  { %2798 = vadd.xlane.f32.xlu1 %v2797_v44 }
 0xbd6   :  { %2826 = vrot.lane.b32.xlu0 %v8652_v56, %s6707_s5 }
 0xbda   :  { %3085 = vrot.lane.b32.xlu0 %v7395_v33, %s6703_s25 }
 0xbdb   :  { %2824 = vrot.lane.b32.xlu1 %v7811_v25, %s6707_s5 }
 0xbde   :  { %3081 = vrot.lane.b32.xlu0 %v7412_v45, %s6703_s25 }
 0xbdf   :  { %3083 = vrot.lane.b32.xlu1 %v7402_v13, %s6703_s25 }
 0xbe2   :  { %3071 = vrot.lane.b32.xlu0 %v7040_v12, %s6703_s25 }
 0xbe3   :  { %3079 = vrot.lane.b32.xlu1 %v7423_v4, %s6703_s25 }
 0xbe6   :  { %3075 = vrot.lane.b32.xlu0 %v7065_v3, %s6703_s25 }
 0xbe7   :  { %3073 = vrot.lane.b32.xlu1 %v7054_v39, %s6703_s25 }
 0xbea   :  { %3468 = vrot.lane.b32.xlu0 %v7395_v33, %s6708_s16 }
 0xbeb   :  { %3077 = vrot.lane.b32.xlu1 %v7073_v15, %s6703_s25 }
 0xbee   :  { %3464 = vrot.lane.b32.xlu0 %v7412_v45, %s6708_s16 }
 0xbef   :  { %3466 = vrot.lane.b32.xlu1 %v7402_v13, %s6708_s16 }
 0xbf2   :  { %3454 = vrot.lane.b32.xlu0 %v7040_v12, %s6708_s16 }
 0xbf3   :  { %3462 = vrot.lane.b32.xlu1 %v7423_v4, %s6708_s16 }
 0xbf6   :  { %3458 = vrot.lane.b32.xlu0 %v7065_v3, %s6708_s16 }
 0xbf7   :  { %3456 = vrot.lane.b32.xlu1 %v7054_v39, %s6708_s16 }
 0xbfb   :  { %3460 = vrot.lane.b32.xlu1 %v7073_v15, %s6708_s16 }
 0xc3f   :  { %v2784_v33 = vpop.xlane.xlu0 %2783 }
 0xc43   :  { %v2787_v45 = vpop.xlane.xlu1 %2786  ;;  %v2778_v19 = vpop.xlane.xlu0 %2777 }
 0xc44   :  { %6429 = vrcp.f32 %v2787_v45 }
 0xc45   :  { %6431 = vrcp.f32 %v2778_v19 }
 0xc46   :  { %6433 = vrcp.f32 %v2784_v33 }
 0xc47   :  { %v2781_v13 = vpop.xlane.xlu1 %2780 }
 0xc48   :  { %6435 = vrcp.f32 %v2781_v13 }
 0xc49   :  { %v2793_v12 = vpop.xlane.xlu0 %2792 }
 0xc4a   :  { %6437 = vrcp.f32 %v2793_v12 }
 0xc4b   :  { %v2790_v4 = vpop.xlane.xlu1 %2789 }
 0xc4c   :  { %6439 = vrcp.f32 %v2790_v4 }
 0xc4d   :  { %v2827_v5 = vpop.permute.xlu0 %2826 }
 0xc4e   :  { %5928 = vmatprep.subr.bf16.mxu0 %v2827_v5 }
 0xc4f   :  { %v2796_v3 = vpop.xlane.xlu1 %2795  ;;  %5929 = vmatpush3.bf16.msra.mxu0 %v2827_v5 }
 0xc50   :  { %6441 = vrcp.f32 %v2796_v3 }
 0xc51   :  { %v6430_v39 = vpop.eup %6429 }
 0xc52   :  { %v6432_v18 = vpop.eup %6431  ;;  %v2811_v52 = vmul.f32 %v6430_v39, %v7902_v38  ;;  %v3086_v38 = vpop.permute.xlu0 %3085 }
 0xc53   :  { %v2799_v15 = vpop.xlane.xlu1 %2798  ;;  %v6434_v16 = vpop.eup %6433  ;;  %v2808_v0 = vmul.f32 %v6432_v18, %v7900_v42  ;;  %v3109_v44 = vsel %vm775_vm0, %v3086_v38, 0 }
 0xc54   :  { %6443 = vrcp.f32 %v2799_v15  ;;  %v2810_v2 = vmul.f32 %v6434_v16, %v7896_v46  ;;  %v6544_v46 = vld [vmem:[#allocation7 + $0x10] sm:$0xff]  }
 0xc55   :  { %v6436_v1 = vpop.eup %6435 }
 0xc56   :  { %v2809_v30 = vmul.f32 %v6436_v1, %v6420_v24  ;;  %v2817_v59 = vpack.c.bf16 %v2811_v52, %v2810_v2 }
 0xc57   :  { %v6438_v35 = vpop.eup %6437  ;;  %v2825_v47 = vpop.permute.xlu1 %2824 }
 0xc58   :  { %5930 = vmatprep.subr.bf16.mxu0 %v2825_v47  ;;  %v2816_v60 = vpack.c.bf16 %v2809_v30, %v2808_v0  ;;  %v2813_v22 = vmul.f32 %v6438_v35, %v7909_v62 }
 0xc59   :  { %v6440_v51 = vpop.eup %6439  ;;  %5931 = vmatpush3.bf16.msra.mxu0 %v2825_v47 }
 0xc5a   :  { %5932 = vmatprep.mubr.msk.bf16.mxu0 %vm873_vm2, %v2816_v60  ;;  %5940 = vmatprep.subr.bf16.mxu0 %v6543_v20  ;;  %v2812_v14 = vmul.f32 %v6440_v51, %v7913_v6 }
 0xc5b   :  { %v3084_v45 = vpop.permute.xlu1 %3083 }
 0xc5c   :  { %5933 = vmatmul.mubr.msk.bf16.vlgmr.msra.gmra.mxu0 %vm873_vm2, %v2817_v59  ;;  %v2818_v11 = vpack.c.bf16 %v2813_v22, %v2812_v14  ;;  %v3106_v4 = vsel %vm775_vm0, %v3084_v45, 0 }
 0xc5d   :  { %5941 = vmatpush3.bf16.msra.mxu0 %v6543_v20  ;;  %v6442_v57 = vpop.eup %6441 }
 0xc5e   :  { %5936 = vmatprep.mubr.msk.bf16.mxu0 %vm873_vm2, %v2818_v11  ;;  %5942 = vmatprep.subr.bf16.mxu0 %v6544_v46  ;;  %v2814_v34 = vmul.f32 %v6442_v57, %v7917_v50 }
 0xc5f   :  { %v3080_v39 = vpop.permute.xlu1 %3079 }
 0xc60   :  { %v3100_v1 = vsel %vm775_vm0, %v3080_v39, 0 }
 0xc61   :  { %v6444_v42 = vpop.eup %6443  ;;  %5943 = vmatpush3.bf16.msra.mxu0 %v6544_v46  ;;  %v8655_v46 = vmov 0  }
 0xc62   :  { %6076 = vmatprep.subr.msk.bf16.mxu0 %vm775_vm0, %v3086_v38  ;;  %v2815_v24 = vmul.f32 %v6444_v42, %v7921_v27  ;;  %v3082_v27 = vpop.permute.xlu0 %3081 }
 0xc63   :  { %v3103_v18 = vsel %vm775_vm0, %v3082_v27, 0  ;;  %v3074_v16 = vpop.permute.xlu1 %3073 }
 0xc64   :  { %v2819_v28 = vpack.c.bf16 %v2815_v24, %v2814_v34 }
 0xc66   :  { %5937 = vmatmul.mubr.msk.bf16.gmra.mxu0 %vm873_vm2, %v2819_v28  ;;  %v3072_v3 = vpop.permute.xlu0 %3071 }
 0xc67   :  { %v3078_v0 = vpop.permute.xlu1 %3077 }
 0xc6a   :  { %v3076_v15 = vpop.permute.xlu0 %3075 }
 0xc6b   :  { %v3467_v35 = vpop.permute.xlu1 %3466 }
 0xc6c   :  { %v3489_v60 = vsel %vm775_vm0, %v3467_v35, 0 }
 0xc6e   :  { %v3469_v52 = vpop.permute.xlu0 %3468 }
 0xc6f   :  { %v3492_v30 = vsel %vm775_vm0, %v3469_v52, 0  ;;  %v3463_v59 = vpop.permute.xlu1 %3462 }
 0xc70   :  { %v3483_v20 = vsel %vm775_vm0, %v3463_v59, 0 }
 0xc72   :  { %v3465_v47 = vpop.permute.xlu0 %3464 }
 0xc73   :  { %v3486_v51 = vsel %vm775_vm0, %v3465_v47, 0  ;;  %v3457_v14 = vpop.permute.xlu1 %3456 }
 0xc76   :  { %v3455_v2 = vpop.permute.xlu0 %3454 }
 0xc77   :  { %v3461_v11 = vpop.permute.xlu1 %3460 }
 0xc7a   :  { %v3459_v22 = vpop.permute.xlu0 %3458 }
 0xd1c   :  { %v5934_v17 = vpop.f32.mrf.mxu0 }
 0xd1e   :  { %v2882_v62 = vpop.f32.mrf.mxu0 }
 0xd20   :  { %v5935_v36 = vpop.f32.mrf.mxu0 }
 0xd21   :  { %v2914_v53 = vpack.c.bf16 %v5935_v36, %v5934_v17 }
 0xd22   :  { %v2885_v6 = vpop.f32.mrf.mxu0 }
 0xd23   :  { %v2913_v8 = vpack.c.bf16 %v2885_v6, %v2882_v62 }
 0xd25   :  { %5944 = vmatprep.mubr.msk.bf16.mxu0 %vm775_vm0, %v2913_v8 }
 0xd26   :  { %v5938_v33 = vpop.f32.mrf.mxu0  ;;  %5945 = vmatmul.mubr.msk.bf16.vlgmr.msra.gmra.mxu0 %vm775_vm0, %v2914_v53 }
 0xd27   :  { %5965 = vmatpush3.bf16.xpose.msra.mxu0 %v3109_v44 }
 0xd28   :  { %6077 = vmatprep.subr.msk.bf16.mxu0 %vm775_vm0, %v3084_v45  ;;  %v2898_v50 = vpop.f32.mrf.mxu0 }
 0xd2a   :  { %v5939_v19 = vpop.f32.mrf.mxu0 }
 0xd2b   :  { %v2916_v5 = vpack.c.bf16 %v5939_v19, %v5938_v33 }
 0xd2c   :  { %v2901_v13 = vpop.f32.mrf.mxu0 }
 0xd2d   :  { %v2915_v12 = vpack.c.bf16 %v2901_v13, %v2898_v50 }
 0xd2f   :  { %5967 = vmatpush3.bf16.xpose.msra.mxu0 %v3106_v4  ;;  %5948 = vmatprep.mubr.msk.bf16.mxu0 %vm775_vm0, %v2915_v12 }
 0xd30   :  { %6078 = vmatprep.subr.msk.bf16.mxu0 %vm775_vm0, %v3082_v27  ;;  %5949 = vmatmul.mubr.msk.bf16.gmra.mxu0 %vm775_vm0, %v2916_v5 }
 0xd31   :  { %5972 = vmatprep.mubr.msk.bf16.mxu0 %vm775_vm0, %v3072_v3 }
 0xd37   :  { %5969 = vmatpush3.bf16.xpose.msra.mxu0 %v3103_v18 }
 0xd38   :  { %6079 = vmatprep.subr.msk.bf16.mxu0 %vm775_vm0, %v3080_v39 }
 0xd3f   :  { %5971 = vmatpush3.bf16.xpose.msra.mxu0 %v3100_v1 }
 0xd40   :  { %6080 = vmatprep.subr.msk.bf16.mxu0 %vm775_vm0, %v3469_v52 }
 0xd46   :  { %5973 = vmatmul.mubr.msk.bf16.vlgmr.msra.gmra.mxu0 %vm775_vm0, %v3074_v16 }
 0xd47   :  { %5976 = vmatprep.mubr.msk.bf16.mxu0 %vm775_vm0, %v3076_v15  ;;  %6009 = vmatpush3.bf16.xpose.msra.mxu0 %v3492_v30 }
 0xd48   :  { %6081 = vmatprep.subr.msk.bf16.mxu0 %vm775_vm0, %v3467_v35 }
 0xd4e   :  { %5977 = vmatmul.mubr.msk.bf16.gmra.mxu0 %vm775_vm0, %v3078_v0 }
 0xd4f   :  { %6011 = vmatpush3.bf16.xpose.msra.mxu0 %v3489_v60  ;;  %6016 = vmatprep.mubr.msk.bf16.mxu0 %vm775_vm0, %v3455_v2 }
 0xd50   :  { %6082 = vmatprep.subr.msk.bf16.mxu0 %vm775_vm0, %v3465_v47 }
 0xd57   :  { %6013 = vmatpush3.bf16.xpose.msra.mxu0 %v3486_v51 }
 0xd58   :  { %6083 = vmatprep.subr.msk.bf16.mxu0 %vm775_vm0, %v3463_v59 }
 0xd5f   :  { %6015 = vmatpush3.bf16.xpose.msra.mxu0 %v3483_v20 }
 0xd66   :  { %6017 = vmatmul.mubr.msk.bf16.vlgmr.msra.gmra.mxu0 %vm775_vm0, %v3457_v14 }
 0xd67   :  { %6020 = vmatprep.mubr.msk.bf16.mxu0 %vm775_vm0, %v3459_v22 }
 0xd6e   :  { %6021 = vmatmul.mubr.msk.bf16.gmra.mxu0 %vm775_vm0, %v3461_v11 }
 0xd6f   :  { %4352 = vmatprep.mubr.bf16.mxu0 %v8655_v46 }
 0xde6   :  { %v8001_v57 = vpop.f32.mrf.mxu0 }
 0xde8   :  { %v8003_v42 = vpop.f32.mrf.mxu0 }
 0xdea   :  { %v8005_v38 = vpop.f32.mrf.mxu0 }
 0xdec   :  { %v8007_v34 = vpop.f32.mrf.mxu0 }
 0xdf0   :  { %v8009_v24 = vpop.f32.mrf.mxu0 }
 0xdf2   :  { %v8011_v28 = vpop.f32.mrf.mxu0 }
 0xdf4   :  { %v8013_v17 = vpop.f32.mrf.mxu0 }
 0xdf6   :  { %v8015_v62 = vpop.f32.mrf.mxu0 }
 0xe06   :  { %v5974_v36 = vpop.f32.mrf.mxu0 }
 0xe07   :  { %v3178_v33 = vsel %vm7080_vm1, %v5974_v36, -1e+30 }
 0xe08   :  { %v3145_v6 = vpop.f32.mrf.mxu0  ;;  %v3190_v27 = vsel %vm873_vm2, %v3178_v33, -inf }
 0xe09   :  { %v3176_v8 = vsel %vm7085_vm3, %v3145_v6, -1e+30 }
 0xe0a   :  { %v3184_v53 = vsel %vm873_vm2, %v3176_v8, -inf  ;;  %v5975_v44 = vpop.f32.mrf.mxu0 }
 0xe0b   :  { %3185 = vmax.xlane.f32.xlu0 %v3184_v53  ;;  %v3179_v12 = vsel %vm7101_vm4, %v5975_v44, -1e+30 }
 0xe0c   :  { %v3148_v45 = vpop.f32.mrf.mxu0  ;;  %v3193_v5 = vsel %vm873_vm2, %v3179_v12, -inf }
 0xe0d   :  { %v3177_v50 = vsel %vm7106_vm5, %v3148_v45, -1e+30 }
 0xe0e   :  { %v3187_v19 = vsel %vm873_vm2, %v3177_v50, -inf  ;;  %v5978_v13 = vpop.f32.mrf.mxu0 }
 0xe0f   :  { %3191 = vmax.xlane.f32.xlu0 %v3190_v27  ;;  %3188 = vmax.xlane.f32.xlu1 %v3187_v19  ;;  %v3182_v52 = vsel %vm7121_vm6, %v5978_v13, -1e+30 }
 0xe10   :  { %v3161_v4 = vpop.f32.mrf.mxu0  ;;  %v3202_v30 = vsel %vm873_vm2, %v3182_v52, -inf }
 0xe11   :  { %v3180_v39 = vsel %vm7139_vm8, %v3161_v4, -1e+30 }
 0xe12   :  { %v5979_v3 = vpop.f32.mrf.mxu0  ;;  %v3196_v16 = vsel %vm873_vm2, %v3180_v39, -inf }
 0xe13   :  { %3194 = vmax.xlane.f32.xlu0 %v3193_v5  ;;  %v3183_v0 = vsel %vm7131_vm7, %v5979_v3, -1e+30 }
 0xe14   :  { %v3164_v18 = vpop.f32.mrf.mxu0  ;;  %v3205_v35 = vsel %vm873_vm2, %v3183_v0, -inf }
 0xe15   :  { %v3181_v15 = vsel %vm7143_vm9, %v3164_v18, -1e+30 }
 0xe16   :  { %v3199_v1 = vsel %vm873_vm2, %v3181_v15, -inf }
 0xe17   :  { %3197 = vmax.xlane.f32.xlu0 %v3196_v16  ;;  %3200 = vmax.xlane.f32.xlu1 %v3199_v1 }
 0xe1b   :  { %3203 = vmax.xlane.f32.xlu0 %v3202_v30  ;;  %3206 = vmax.xlane.f32.xlu1 %v3205_v35 }
 0xe94   :  { %v3186_v47 = vpop.xlane.xlu0 %3185 }
 0xe95   :  { %v3208_v2 = vsub.f32 %v3176_v8, %v3186_v47 }
 0xe97   :  { %v3216_v22 = vmul.f32 1.442695, %v3208_v2 }
 0xe98   :  { %v3189_v60 = vpop.xlane.xlu1 %3188  ;;  %v3192_v51 = vpop.xlane.xlu0 %3191 }
 0xe99   :  { %v3210_v59 = vsub.f32 %v3178_v33, %v3192_v51  ;;  %v3209_v20 = vsub.f32 %v3177_v50, %v3189_v60 }
 0xe9b   :  { %v3220_v14 = vmul.f32 1.442695, %v3210_v59  ;;  %v3218_v6 = vmul.f32 1.442695, %v3209_v20  ;;  %v6018_v20 = vpop.f32.mrf.mxu0 }
 0xe9c   :  { %v3195_v11 = vpop.xlane.xlu0 %3194 }
 0xe9d   :  { %v3211_v36 = vsub.f32 %v3179_v12, %v3195_v11  ;;  %6445 = vpow2.f32 %v3220_v14  ;;  %v3528_v14 = vpop.f32.mrf.mxu0 }
 0xe9e   :  { %6447 = vpow2.f32 %v3216_v22 }
 0xe9f   :  { %v3222_v53 = vmul.f32 1.442695, %v3211_v36  ;;  %v6019_v11 = vpop.f32.mrf.mxu0 }
 0xea0   :  { %v3198_v44 = vpop.xlane.xlu0 %3197  ;;  %v3201_v35 = vpop.xlane.xlu1 %3200  ;;  %v8093_v54 = vsel %vm7101_vm4, %v6019_v11, -1e+30 }
 0xea1   :  { %6449 = vpow2.f32 %v3222_v53  ;;  %v3212_v45 = vsub.f32 %v3180_v39, %v3198_v44  ;;  %v3213_v60 = vsub.f32 %v3181_v15, %v3201_v35  ;;  %v8079_v53 = vsel %vm7085_vm3, %v3528_v14, -1e+30  ;;  %v3531_v15 = vpop.f32.mrf.mxu0 }
 0xea2   :  { %6451 = vpow2.f32 %v3218_v6  ;;  %v3567_v44 = vsel %vm873_vm2, %v8079_v53, -inf }
 0xea3   :  { %v3224_v8 = vmul.f32 1.442695, %v3212_v45  ;;  %v3226_v59 = vmul.f32 1.442695, %v3213_v60  ;;  %v8087_v45 = vsel %vm7080_vm1, %v6018_v20, -1e+30 }
 0xea4   :  { %v3204_v27 = vpop.xlane.xlu0 %3203  ;;  %v3207_v47 = vpop.xlane.xlu1 %3206 }
 0xea5   :  { %v3214_v19 = vsub.f32 %v3182_v52, %v3204_v27  ;;  %v3215_v2 = vsub.f32 %v3183_v0, %v3207_v47  ;;  %v6022_v27 = vpop.f32.mrf.mxu0 }
 0xea7   :  { %v3228_v13 = vmul.f32 1.442695, %v3214_v19  ;;  %v3230_v51 = vmul.f32 1.442695, %v3215_v2  ;;  %v3573_v19 = vsel %vm873_vm2, %v8087_v45, -inf }
 0xea9   :  { %6453 = vpow2.f32 %v3228_v13  ;;  %v3544_v13 = vpop.f32.mrf.mxu0 }
 0xeaa   :  { %v8041_v4 = vpop.eup %6445  ;;  %6455 = vpow2.f32 %v3224_v8  ;;  %v3576_v8 = vsel %vm873_vm2, %v8093_v54, -inf }
 0xeab   :  { %v3238_v33 = vsel %vm873_vm2, %v8041_v4, 0.0  ;;  %v8045_v50 = vpop.eup %6447  ;;  %6457 = vpow2.f32 %v3230_v51  ;;  %v6023_v7 = vpop.f32.mrf.mxu0 }
 0xeac   :  { %3239 = vadd.xlane.f32.xlu0 %v3238_v33  ;;  %v3232_v39 = vsel %vm873_vm2, %v8045_v50, 0.0  ;;  %6459 = vpow2.f32 %v3226_v59  ;;  %v8099_v33 = vsel %vm7139_vm8, %v3544_v13, -1e+30 }
 0xead   :  { %v3579_v23 = vsel %vm873_vm2, %v8099_v33, -inf }
 0xeae   :  { %v8047_v12 = vpop.eup %6449 }
 0xeaf   :  { %v3241_v5 = vsel %vm873_vm2, %v8047_v12, 0.0  ;;  %v8051_v3 = vpop.eup %6451 }
 0xeb0   :  { %3242 = vadd.xlane.f32.xlu1 %v3241_v5  ;;  %3233 = vadd.xlane.f32.xlu0 %v3232_v39  ;;  %v3235_v18 = vsel %vm873_vm2, %v8051_v3, 0.0  ;;  %v8105_v5 = vsel %vm7121_vm6, %v6022_v27, -1e+30  ;;  %v8115_v39 = vsel %vm7106_vm5, %v3531_v15, -1e+30 }
 0xeb1   :  { %v3585_v37 = vsel %vm873_vm2, %v8105_v5, -inf  ;;  %v3570_v48 = vsel %vm873_vm2, %v8115_v39, -inf }
 0xeb4   :  { %3236 = vadd.xlane.f32.xlu1 %v3235_v18  ;;  %v3547_v18 = vpop.f32.mrf.mxu0 }
 0xeb6   :  { %v8057_v16 = vpop.eup %6453 }
 0xeb7   :  { %v3250_v1 = vsel %vm873_vm2, %v8057_v16, 0.0  ;;  %v8061_v52 = vpop.eup %6455 }
 0xeb8   :  { %3251 = vadd.xlane.f32.xlu0 %v3250_v1  ;;  %v3244_v30 = vsel %vm873_vm2, %v8061_v52, 0.0  ;;  %v8071_v22 = vpop.eup %6457  ;;  %v8121_v1 = vsel %vm7143_vm9, %v3547_v18, -1e+30 }
 0xeb9   :  { %v3253_v36 = vsel %vm873_vm2, %v8071_v22, 0.0  ;;  %v8075_v6 = vpop.eup %6459 }
 0xeba   :  { %v3247_v0 = vsel %vm873_vm2, %v8075_v6, 0.0 }
 0xebc   :  { %3245 = vadd.xlane.f32.xlu0 %v3244_v30  ;;  %v3582_v30 = vsel %vm873_vm2, %v8121_v1, -inf }
 0xec5   :  { %3280 = vrot.lane.b32.xlu1 %v7802_v26, %s6703_s25 }
 0xec9   :  { %3278 = vrot.lane.b32.xlu1 %v8652_v56, %s6703_s25 }
 0xed2   :  { %3282 = vrot.lane.b32.xlu0 %v8649_v9, %s6703_s25 }
 0xeed   :  { %3254 = vadd.xlane.f32.xlu1 %v3253_v36 }
 0xef1   :  { %3248 = vadd.xlane.f32.xlu1 %v3247_v0  ;;  %3568 = vmax.xlane.f32.xlu0 %v3567_v44 }
 0xef5   :  { %3574 = vmax.xlane.f32.xlu0 %v3573_v19 }
 0xef9   :  { %3577 = vmax.xlane.f32.xlu0 %v3576_v8 }
 0xefd   :  { %3580 = vmax.xlane.f32.xlu0 %v3579_v23 }
 0xf01   :  { %3586 = vmax.xlane.f32.xlu0 %v3585_v37 }
 0xf02   :  { %3276 = vrot.lane.b32.xlu1 %v7811_v25, %s6703_s25 }
 0xf17   :  { %3665 = vrot.lane.b32.xlu0 %v8649_v9, %s6708_s16  ;;  %v8127_v9 = vsel %vm7131_vm7, %v6023_v7, -1e+30 }
 0xf18   :  { %v3588_v31 = vsel %vm873_vm2, %v8127_v9, -inf }
 0xf26   :  { %3571 = vmax.xlane.f32.xlu1 %v3570_v48 }
 0xf2a   :  { %3583 = vmax.xlane.f32.xlu1 %v3582_v30  ;;  %v6545_v30 = vld [vmem:[#allocation7 + $0x28] sm:$0xff]  }
 0xf2e   :  { %3589 = vmax.xlane.f32.xlu1 %v3588_v31 }
 0xf35   :  { %v3240_v35 = vpop.xlane.xlu0 %3239 }
 0xf39   :  { %v3243_v47 = vpop.xlane.xlu1 %3242  ;;  %v3234_v2 = vpop.xlane.xlu0 %3233 }
 0xf3a   :  { %6461 = vrcp.f32 %v3234_v2  ;;  %v6546_v2 = vld [vmem:[#allocation7 + $0x20] sm:$0xff]  }
 0xf3d   :  { %v3237_v49 = vpop.xlane.xlu1 %3236 }
 0xf3e   :  { %6463 = vrcp.f32 %v3237_v49 }
 0xf3f   :  { %6465 = vrcp.f32 %v3243_v47 }
 0xf40   :  { %6467 = vrcp.f32 %v3240_v35 }
 0xf41   :  { %v3252_v60 = vpop.xlane.xlu0 %3251  ;;  %v3281_v20 = vpop.permute.xlu1 %3280 }
 0xf45   :  { %v3246_v51 = vpop.xlane.xlu0 %3245  ;;  %v3279_v0 = vpop.permute.xlu1 %3278 }
 0xf47   :  { %v6462_v59 = vpop.eup %6461 }
 0xf48   :  { %v3264_v63 = vmul.f32 %v6462_v59, %v8045_v50 }
 0xf49   :  { %v3283_v14 = vpop.permute.xlu0 %3282 }
 0xf4a   :  { %5980 = vmatprep.subr.bf16.mxu1 %v3283_v14 }
 0xf4b   :  { %v6464_v11 = vpop.eup %6463  ;;  %5981 = vmatpush3.bf16.msra.mxu1 %v3283_v14 }
 0xf4c   :  { %v3265_v36 = vmul.f32 %v6464_v11, %v8051_v3  ;;  %5982 = vmatprep.subr.bf16.mxu1 %v3281_v20  ;;  %v6466_v27 = vpop.eup %6465 }
 0xf4d   :  { %v6468_v13 = vpop.eup %6467  ;;  %v3267_v3 = vmul.f32 %v6466_v27, %v8047_v12 }
 0xf4e   :  { %v3272_v15 = vpack.c.bf16 %v3265_v36, %v3264_v63  ;;  %v3266_v37 = vmul.f32 %v6468_v13, %v8041_v4 }
 0xf4f   :  { %5983 = vmatpush3.bf16.msra.mxu1 %v3281_v20 }
 0xf50   :  { %5988 = vmatprep.mubr.msk.bf16.mxu1 %vm873_vm2, %v3272_v15  ;;  %5984 = vmatprep.subr.bf16.mxu1 %v3279_v0  ;;  %v3273_v48 = vpack.c.bf16 %v3267_v3, %v3266_v37 }
 0xf53   :  { %5985 = vmatpush3.bf16.msra.mxu1 %v3279_v0 }
 0xf76   :  { %v3255_v44 = vpop.xlane.xlu1 %3254 }
 0xf77   :  { %6469 = vrcp.f32 %v3255_v44 }
 0xf78   :  { %6471 = vrcp.f32 %v3246_v51 }
 0xf79   :  { %6473 = vrcp.f32 %v3252_v60 }
 0xf7a   :  { %v3249_v19 = vpop.xlane.xlu1 %3248  ;;  %v3569_v50 = vpop.xlane.xlu0 %3568 }
 0xf7b   :  { %6475 = vrcp.f32 %v3249_v19  ;;  %v3591_v8 = vsub.f32 %v8079_v53, %v3569_v50 }
 0xf7d   :  { %v3599_v31 = vmul.f32 1.442695, %v3591_v8 }
 0xf7e   :  { %v3277_v23 = vpop.permute.xlu1 %3276  ;;  %v3575_v7 = vpop.xlane.xlu0 %3574 }
 0xf7f   :  { %5986 = vmatprep.subr.bf16.mxu1 %v3277_v23  ;;  %v3593_v18 = vsub.f32 %v8087_v45, %v3575_v7 }
 0xf80   :  { %5987 = vmatpush3.bf16.msra.mxu1 %v3277_v23 }
 0xf81   :  { %5996 = vmatprep.subr.bf16.mxu1 %v6545_v30  ;;  %v3603_v35 = vmul.f32 1.442695, %v3593_v18 }
 0xf82   :  { %v3578_v47 = vpop.xlane.xlu0 %3577 }
 0xf83   :  { %5989 = vmatmul.mubr.msk.bf16.vlgmr.msra.gmra.mxu1 %vm873_vm2, %v3273_v48  ;;  %6477 = vpow2.f32 %v3603_v35  ;;  %v3594_v12 = vsub.f32 %v8093_v54, %v3578_v47 }
 0xf84   :  { %5997 = vmatpush3.bf16.msra.mxu1 %v6545_v30  ;;  %v6470_v53 = vpop.eup %6469  ;;  %6479 = vpow2.f32 %v3599_v31 }
 0xf85   :  { %5998 = vmatprep.subr.bf16.mxu1 %v6546_v2  ;;  %v6472_v4 = vpop.eup %6471  ;;  %v3605_v49 = vmul.f32 1.442695, %v3594_v12  ;;  %v3271_v59 = vmul.f32 %v6470_v53, %v8071_v22  ;;  %v8188_v12 = vld [vmem:[%s8606_s3] ss:$0 sm:$0xff]  ;;  %v6548_v53 = vld [vmem:[#allocation2 + $0x10] sm:$0xff] }
 0xf86   :  { %v6474_v45 = vpop.eup %6473  ;;  %v3581_v60 = vpop.xlane.xlu0 %3580  ;;  %v3268_v20 = vmul.f32 %v6472_v4, %v8061_v52 }
 0xf87   :  { %6481 = vpow2.f32 %v3605_v49  ;;  %v3270_v54 = vmul.f32 %v6474_v45, %v8057_v16  ;;  %v3595_v13 = vsub.f32 %v8099_v33, %v3581_v60  ;;  %v6549_v45 = vld [vmem:[#allocation2 + $0x18] sm:$0xff] }
 0xf88   :  { %v6476_v51 = vpop.eup %6475  ;;  %5999 = vmatpush3.bf16.msra.mxu1 %v6546_v2  ;;  %v3839_v2 = vadd.f32 %v6548_v53, %v7843_v61  ;;  %v3840_v60 = vadd.f32 %v6549_v45, %v7849_v43 }
 0xf89   :  { %v3269_v14 = vmul.f32 %v6476_v51, %v8075_v6  ;;  %v3275_v36 = vpack.c.bf16 %v3271_v59, %v3270_v54  ;;  %v3607_v37 = vmul.f32 1.442695, %v3595_v13  ;;  %v6550_v59 = vld [vmem:[#allocation2 + $0x20] sm:$0xff]  ;;  %v6551_v54 = vld [vmem:[#allocation2 + $0x30] sm:$0xff]  ;;  %v6552_v13 = vld [vmem:[#allocation2 + $0x8] sm:$0xff] }
 0xf8a   :  { %v3587_v11 = vpop.xlane.xlu0 %3586  ;;  %v8201_v51 = vadd.f32 %v8188_v12, %v3839_v2  ;;  %v3843_v43 = vadd.f32 %v6551_v54, %v7854_v10  ;;  %v8659_v10 = vld [vmem:[#allocation26_spill] sm:$0xff] }
 0xf8b   :  { %v3274_v63 = vpack.c.bf16 %v3269_v14, %v3268_v20  ;;  %v3597_v27 = vsub.f32 %v8105_v5, %v3587_v11  ;;  %v3841_v20 = vadd.f32 %v6550_v59, %v7857_v32  ;;  %v8208_v14 = vadd.f32 %v8188_v12, %v3840_v60  ;;  %v8656_v32 = vld [vmem:[#allocation23_spill] sm:$0xff] }
 0xf8d   :  { %5992 = vmatprep.mubr.msk.bf16.mxu1 %vm873_vm2, %v3274_v63  ;;  %v3611_v3 = vmul.f32 1.442695, %v3597_v27  ;;  %v8213_v11 = vadd.f32 %v8188_v12, %v3841_v20  ;;  %v8217_v63 = vadd.f32 %v8188_v12, %v3843_v43 }
 0xf8e   :  { %5993 = vmatmul.mubr.msk.bf16.gmra.mxu1 %vm873_vm2, %v3275_v36  ;;  %v8146_v15 = vpop.permute.xlu0 %3665  ;;  %v8657_v36 = vld [vmem:[#allocation25_spill] sm:$0xff] }
 0xf8f   :  { %6024 = vmatprep.subr.bf16.mxu1 %v8146_v15 }
 0xf90   :  { %v8149_v0 = vpop.eup %6477 }
 0xf91   :  { %v3621_v52 = vsel %vm873_vm2, %v8149_v0, 0.0  ;;  %v8153_v22 = vpop.eup %6479 }
 0xf92   :  { %3622 = vadd.xlane.f32.xlu0 %v3621_v52  ;;  %v3615_v6 = vsel %vm873_vm2, %v8153_v22, 0.0  ;;  %v1508_v52 = vadd.f32 %v8657_v36, %v8656_v32 }
 0xf94   :  { %v8155_v16 = vpop.eup %6481 }
 0xf95   :  { %v3624_v44 = vsel %vm873_vm2, %v8155_v16, 0.0 }
 0xf96   :  { %3616 = vadd.xlane.f32.xlu0 %v3615_v6  ;;  %3625 = vadd.xlane.f32.xlu1 %v3624_v44  ;;  %v1923_v6 = vadd.f32 %v7777_v40, %v1508_v52  ;;  %v8658_v44 = vld [vmem:[#allocation24_spill] sm:$0xff] }
 0xf97   :  { %v1524_v27 = vadd.f32 %v8659_v10, %v8658_v44 }
 0xfac   :  { %3661 = vrot.lane.b32.xlu0 %v8652_v56, %s6708_s16 }
 0xfaf   :  { %v3572_v19 = vpop.xlane.xlu1 %3571 }
 0xfb0   :  { %v3592_v50 = vsub.f32 %v8115_v39, %v3572_v19  ;;  %3659 = vrot.lane.b32.xlu0 %v7811_v25, %s6708_s16  ;;  %v2318_v19 = vadd.f32 %v7851_v58, %v1923_v6  ;;  %v8243_v58 = vpop.f32.mrf.mxu1 }
 0xfb2   :  { %v3601_v8 = vmul.f32 1.442695, %v3592_v50  ;;  %v1927_v50 = vadd.f32 %v7797_v41, %v1524_v27 }
 0xfb3   :  { %v3584_v23 = vpop.xlane.xlu1 %3583 }
 0xfb4   :  { %6483 = vpow2.f32 %v3601_v8  ;;  %v3596_v56 = vsub.f32 %v8121_v1, %v3584_v23  ;;  %v2322_v8 = vadd.f32 %v7862_v55, %v1927_v50  ;;  %v6553_v23 = vld [vmem:[#allocation2 + $0x28] sm:$0xff]  ;;  %v8245_v55 = vpop.f32.mrf.mxu1 }
 0xfb5   :  { %6485 = vpow2.f32 %v3611_v3  ;;  %v3838_v3 = vadd.f32 %v6552_v13, %v2318_v19 }
 0xfb6   :  { %6487 = vpow2.f32 %v3607_v37  ;;  %v3609_v48 = vmul.f32 1.442695, %v3596_v56  ;;  %v3842_v37 = vadd.f32 %v6553_v23, %v2322_v8  ;;  %v8247_v56 = vpop.f32.mrf.mxu1 }
 0xfb7   :  { %v3590_v7 = vpop.xlane.xlu1 %3589 }
 0xfb8   :  { %v3598_v18 = vsub.f32 %v8127_v9, %v3590_v7  ;;  %v6547_v9 = vld [vmem:[#allocation2] sm:$0xff]  ;;  %v6554_v7 = vld [vmem:[#allocation2 + $0x38] sm:$0xff] }
 0xfb9   :  { %v3837_v1 = vadd.f32 %v6547_v9, %v7846_v21  ;;  %v3844_v40 = vadd.f32 %v6554_v7, %v7860_v29 }
 0xfba   :  { %v3613_v5 = vmul.f32 1.442695, %v3598_v18  ;;  %v8236_v18 = vadd.f32 %v8188_v12, %v3842_v37 }
 0xfbb   :  { %v8192_v4 = vadd.f32 %v8188_v12, %v3837_v1  ;;  %v8240_v41 = vadd.f32 %v8188_v12, %v3844_v40 }
 0xfbc   :  { %6489 = vpow2.f32 %v3613_v5  ;;  %v8249_v5 = vpop.f32.mrf.mxu1 }
 0xfbd   :  { %6491 = vpow2.f32 %v3609_v48 }
 0xfbe   :  { %v8251_v48 = vpop.f32.mrf.mxu1 }
 0xfc0   :  { %v8253_v29 = vpop.f32.mrf.mxu1 }
 0xfc1   :  { %v8170_v39 = vpop.eup %6483 }
 0xfc2   :  { %v3618_v25 = vsel %vm873_vm2, %v8170_v39, 0.0  ;;  %v8174_v33 = vpop.eup %6485 }
 0xfc3   :  { %3619 = vadd.xlane.f32.xlu1 %v3618_v25  ;;  %v3633_v30 = vsel %vm873_vm2, %v8174_v33, 0.0  ;;  %v8178_v31 = vpop.eup %6487  ;;  %v8255_v25 = vpop.f32.mrf.mxu1 }
 0xfc4   :  { %v3627_v35 = vsel %vm873_vm2, %v8178_v31, 0.0 }
 0xfc7   :  { %3634 = vadd.xlane.f32.xlu1 %v3633_v30  ;;  %v8257_v30 = vpop.f32.mrf.mxu1 }
 0xfc9   :  { %v8183_v47 = vpop.eup %6489 }
 0xfca   :  { %v3636_v21 = vsel %vm873_vm2, %v8183_v47, 0.0  ;;  %v8196_v49 = vpop.eup %6491 }
 0xfcb   :  { %3628 = vadd.xlane.f32.xlu1 %v3627_v35  ;;  %v3630_v61 = vsel %vm873_vm2, %v8196_v49, 0.0 }
 0xfcf   :  { %3637 = vadd.xlane.f32.xlu1 %v3636_v21  ;;  %3878 = vadd.xlane.f32.xlu0 %v8192_v4 }
 0xfd3   :  { %3631 = vadd.xlane.f32.xlu1 %v3630_v61  ;;  %3882 = vadd.xlane.f32.xlu0 %v8201_v51 }
 0xfd7   :  { %3884 = vadd.xlane.f32.xlu0 %v8208_v14 }
 0xfdb   :  { %3886 = vadd.xlane.f32.xlu0 %v8213_v11 }
 0xfdf   :  { %3890 = vadd.xlane.f32.xlu0 %v8217_v63 }
 0xfe4   :  { %3663 = vrot.lane.b32.xlu1 %v7802_v26, %s6708_s16  ;;  %v8231_v26 = vadd.f32 %v8188_v12, %v3838_v3 }
0x1008   :  { %3880 = vadd.xlane.f32.xlu1 %v8231_v26 }
0x100c   :  { %3888 = vadd.xlane.f32.xlu1 %v8236_v18 }
0x1010   :  { %3892 = vadd.xlane.f32.xlu1 %v8240_v41 }
0x101b   :  { %v3623_v9 = vpop.xlane.xlu0 %3622 }
0x101f   :  { %v3626_v2 = vpop.xlane.xlu1 %3625  ;;  %v3617_v21 = vpop.xlane.xlu0 %3616 }
0x1020   :  { %6493 = vrcp.f32 %v3617_v21  ;;  %v6555_v21 = vld [vmem:[#allocation7 + $0x38] sm:$0xff]  }
0x1023   :  { %v3662_v8 = vpop.permute.xlu0 %3661 }
0x1027   :  { %v3660_v40 = vpop.permute.xlu0 %3659 }
0x102d   :  { %v6494_v10 = vpop.eup %6493 }
0x1043   :  { %v5990_v1 = vpop.f32.mrf.mxu1 }
0x1045   :  { %v3334_v35 = vpop.f32.mrf.mxu1 }
0x1047   :  { %v5991_v53 = vpop.f32.mrf.mxu1 }
0x1048   :  { %v3366_v61 = vpack.c.bf16 %v5991_v53, %v5990_v1 }
0x1049   :  { %v3337_v45 = vpop.f32.mrf.mxu1 }
0x104a   :  { %v3365_v60 = vpack.c.bf16 %v3337_v45, %v3334_v35 }
0x104c   :  { %6000 = vmatprep.mubr.msk.bf16.mxu1 %vm775_vm0, %v3365_v60  ;;  %v3620_v59 = vpop.xlane.xlu1 %3619 }
0x104d   :  { %6495 = vrcp.f32 %v3620_v59  ;;  %6001 = vmatmul.mubr.msk.bf16.vlgmr.msra.gmra.mxu1 %vm775_vm0, %v3366_v61 }
0x104e   :  { %6025 = vmatpush3.bf16.msra.mxu1 %v8146_v15  ;;  %v5994_v20 = vpop.f32.mrf.mxu1  ;;  %6497 = vrcp.f32 %v3626_v2  ;;  %v3647_v15 = vmul.f32 %v6494_v10, %v8153_v22 }
0x104f   :  { %6499 = vrcp.f32 %v3623_v9 }
0x1050   :  { %v3350_v54 = vpop.f32.mrf.mxu1  ;;  %v3635_v43 = vpop.xlane.xlu1 %3634 }
0x1052   :  { %v5995_v32 = vpop.f32.mrf.mxu1 }
0x1053   :  { %v3368_v44 = vpack.c.bf16 %v5995_v32, %v5994_v20 }
0x1054   :  { %v3353_v36 = vpop.f32.mrf.mxu1  ;;  %v3629_v52 = vpop.xlane.xlu1 %3628 }
0x1055   :  { %v3367_v6 = vpack.c.bf16 %v3353_v36, %v3350_v54  ;;  %6501 = vrcp.f32 %v3629_v52  ;;  %v3041_v54 = vadd.f32 %v8245_v55, %v8003_v42  ;;  %v3057_v42 = vadd.f32 %v8253_v29, %v8011_v28 }
0x1057   :  { %6004 = vmatprep.mubr.msk.bf16.mxu1 %vm775_vm0, %v3367_v6 }
0x1058   :  { %6005 = vmatmul.mubr.msk.bf16.gmra.mxu1 %vm775_vm0, %v3368_v44  ;;  %v3638_v27 = vpop.xlane.xlu1 %3637 }
0x105a   :  { %v6496_v19 = vpop.eup %6495 }
0x105b   :  { %v3648_v50 = vmul.f32 %v6496_v19, %v8170_v39  ;;  %v6498_v37 = vpop.eup %6497 }
0x105c   :  { %v3632_v13 = vpop.xlane.xlu1 %3631  ;;  %v6500_v7 = vpop.eup %6499  ;;  %v3650_v22 = vmul.f32 %v6498_v37, %v8155_v16 }
0x105d   :  { %6503 = vrcp.f32 %v3632_v13  ;;  %v3655_v3 = vpack.c.bf16 %v3648_v50, %v3647_v15  ;;  %v3649_v9 = vmul.f32 %v6500_v7, %v8149_v0  ;;  %v6556_v0 = vld [vmem:[#allocation7 + $0x30] sm:$0xff]  }
0x105e   :  { %6505 = vrcp.f32 %v3638_v27 }
0x105f   :  { %6032 = vmatprep.mubr.msk.bf16.mxu1 %vm873_vm2, %v3655_v3  ;;  %6507 = vrcp.f32 %v3635_v43  ;;  %v3656_v35 = vpack.c.bf16 %v3650_v22, %v3649_v9 }
0x1060   :  { %v3664_v23 = vpop.permute.xlu1 %3663 }
0x1061   :  { %6026 = vmatprep.subr.bf16.mxu1 %v3664_v23 }
0x1062   :  { %6027 = vmatpush3.bf16.msra.mxu1 %v3664_v23  ;;  %v6502_v39 = vpop.eup %6501 }
0x1063   :  { %6028 = vmatprep.subr.bf16.mxu1 %v3662_v8  ;;  %v3651_v53 = vmul.f32 %v6502_v39, %v8178_v31 }
0x1066   :  { %6029 = vmatpush3.bf16.msra.mxu1 %v3662_v8 }
0x1067   :  { %6030 = vmatprep.subr.bf16.mxu1 %v3660_v40 }
0x106a   :  { %v6504_v1 = vpop.eup %6503  ;;  %6031 = vmatpush3.bf16.msra.mxu1 %v3660_v40 }
0x106b   :  { %v3652_v2 = vmul.f32 %v6504_v1, %v8196_v49  ;;  %6040 = vmatprep.subr.bf16.mxu1 %v6555_v21  ;;  %v6506_v45 = vpop.eup %6505  ;;  %v3049_v49 = vadd.f32 %v8243_v58, %v8001_v57  ;;  %v3065_v57 = vadd.f32 %v8251_v48, %v8009_v24  ;;  %v6557_v1 = vld [vmem:[#allocation2 + $0x40] sm:$0xff] }
0x106c   :  { %v6508_v61 = vpop.eup %6507  ;;  %v3654_v16 = vmul.f32 %v6506_v45, %v8183_v47  ;;  %v3052_v47 = vadd.f32 %v8247_v56, %v8005_v38  ;;  %v3068_v38 = vadd.f32 %v8255_v25, %v8013_v17  ;;  %v6558_v45 = vld [vmem:[#allocation2 + $0x50] sm:$0xff] }
0x106d   :  { %6033 = vmatmul.mubr.msk.bf16.vlgmr.msra.gmra.mxu1 %vm873_vm2, %v3656_v35  ;;  %v3657_v60 = vpack.c.bf16 %v3652_v2, %v3651_v53  ;;  %v3653_v59 = vmul.f32 %v6508_v61, %v8174_v33  ;;  %v3044_v33 = vadd.f32 %v8249_v5, %v8007_v34  ;;  %v3060_v34 = vadd.f32 %v8257_v30, %v8015_v62  ;;  %v3879_v62 = vpop.xlane.xlu0 %3878 }
0x106e   :  { %6041 = vmatpush3.bf16.msra.mxu1 %v6555_v21 }
0x106f   :  { %6036 = vmatprep.mubr.msk.bf16.mxu1 %vm873_vm2, %v3657_v60  ;;  %6042 = vmatprep.subr.bf16.mxu1 %v6556_v0  ;;  %v3658_v31 = vpack.c.bf16 %v3654_v16, %v3653_v59  ;;  %v6559_v59 = vld [vmem:[#allocation2 + $0x48] sm:$0xff] }
0x1071   :  { %v3883_v53 = vpop.xlane.xlu0 %3882 }
0x1072   :  { %6043 = vmatpush3.bf16.msra.mxu1 %v6556_v0 }
0x1075   :  { %6037 = vmatmul.mubr.msk.bf16.gmra.mxu1 %vm873_vm2, %v3658_v31 }
0x110d   :  { %v6002_v20 = vpop.f32.mrf.mxu1 }
0x110e   :  { %v3448_v43 = vadd.f32 %v6002_v20, %v3049_v49  ;;  %v6560_v49 = vld [vmem:[#allocation2 + $0x58] sm:$0xff] }
0x110f   :  { %v3415_v32 = vpop.f32.mrf.mxu1 }
0x1110   :  { %v3446_v36 = vadd.f32 %v3415_v32, %v3041_v54 }
0x1111   :  { %v6003_v52 = vpop.f32.mrf.mxu1 }
0x1112   :  { %v3449_v6 = vadd.f32 %v6003_v52, %v3052_v47  ;;  %v3885_v52 = vpop.xlane.xlu0 %3884 }
0x1113   :  { %v3418_v44 = vpop.f32.mrf.mxu1 }
0x1114   :  { %v3447_v10 = vadd.f32 %v3418_v44, %v3044_v33 }
0x1118   :  { %v6006_v58 = vpop.f32.mrf.mxu1 }
0x1119   :  { %v3452_v55 = vadd.f32 %v6006_v58, %v3065_v57 }
0x111a   :  { %v3431_v27 = vpop.f32.mrf.mxu1 }
0x111b   :  { %v3450_v56 = vadd.f32 %v3431_v27, %v3057_v42  ;;  %v6562_v42 = vld [vmem:[#allocation2 + $0x70] sm:$0xff] }
0x111c   :  { %v6007_v19 = vpop.f32.mrf.mxu1 }
0x111d   :  { %v3453_v5 = vadd.f32 %v6007_v19, %v3068_v38  ;;  %v3881_v19 = vpop.xlane.xlu1 %3880 }
0x111e   :  { %v3434_v15 = vpop.f32.mrf.mxu1 }
0x111f   :  { %v3451_v50 = vadd.f32 %v3434_v15, %v3060_v34  ;;  %v6563_v34 = vld [vmem:[#allocation2 + $0x68] sm:$0xff] }
0x112d   :  { %v6034_v13 = vpop.f32.mrf.mxu1 }
0x112f   :  { %v3717_v3 = vpop.f32.mrf.mxu1 }
0x1131   :  { %v6035_v24 = vpop.f32.mrf.mxu1 }
0x1132   :  { %v3749_v23 = vpack.c.bf16 %v6035_v24, %v6034_v13  ;;  %v3887_v24 = vpop.xlane.xlu0 %3886 }
0x1133   :  { %v3720_v48 = vpop.f32.mrf.mxu1 }
0x1134   :  { %v3748_v8 = vpack.c.bf16 %v3720_v48, %v3717_v3  ;;  %v3912_v3 = vmul.f32 0.0078125, %v3883_v53  ;;  %v3911_v48 = vmul.f32 0.0078125, %v3881_v19  ;;  %v6162_v19 = vld [vmem:[#allocation8 + $0x88] ss:$16 sps:$4 sm:$0xff]  }
0x1135   :  { %v6038_v28 = vpop.f32.mrf.mxu1 }
0x1136   :  { %6044 = vmatprep.mubr.msk.bf16.mxu1 %vm775_vm0, %v3748_v8  ;;  %v6564_v8 = vld [vmem:[#allocation2 + $0x78] sm:$0xff] }
0x1137   :  { %v3733_v29 = vpop.f32.mrf.mxu1  ;;  %6045 = vmatmul.mubr.msk.bf16.vlgmr.msra.gmra.mxu1 %vm775_vm0, %v3749_v23 }
0x1139   :  { %v6039_v17 = vpop.f32.mrf.mxu1 }
0x113a   :  { %v3751_v7 = vpack.c.bf16 %v6039_v17, %v6038_v28  ;;  %v8329_v28 = vsub.f32 %v8201_v51, %v3912_v3  ;;  %v3889_v17 = vpop.xlane.xlu1 %3888  ;;  %v6165_v3 = vld [vmem:[#allocation8 + $0x60] ss:$16 sps:$4 sm:$0xff]  }
0x113b   :  { %v3736_v25 = vpop.f32.mrf.mxu1 }
0x113c   :  { %v3750_v37 = vpack.c.bf16 %v3736_v25, %v3733_v29  ;;  %v3913_v29 = vmul.f32 0.0078125, %v3885_v52  ;;  %v3914_v25 = vmul.f32 0.0078125, %v3887_v24  ;;  %v6147_v52 = vld [vmem:[#allocation8 + $0xc0] ss:$16 sps:$4 sm:$0xff]   ;;  %v6168_v24 = vld [vmem:[#allocation8 + $0x68] ss:$16 sps:$4 sm:$0xff]  }
0x113e   :  { %6048 = vmatprep.mubr.msk.bf16.mxu1 %vm775_vm0, %v3750_v37  ;;  %v8332_v37 = vsub.f32 %v8231_v26, %v3911_v48  ;;  %v6173_v48 = vld [vmem:[#allocation8 + $0x44] ss:$16 sps:$4 sm:$0xff]  }
0x113f   :  { %6049 = vmatmul.mubr.msk.bf16.gmra.mxu1 %vm775_vm0, %v3751_v7 }
0x1140   :  { %4465 = vmatprep.mubr.bf16.mxu1 %v8655_v46 }
0x11f7   :  { %v6046_v30 = vpop.f32.mrf.mxu1 }
0x11f8   :  { %v3831_v22 = vadd.f32 %v6046_v30, %v3448_v43  ;;  %v3891_v30 = vpop.xlane.xlu0 %3890 }
0x11f9   :  { %v3798_v40 = vpop.f32.mrf.mxu1 }
0x11fa   :  { %v3829_v39 = vadd.f32 %v3798_v40, %v3446_v36  ;;  %v3847_v60 = vadd.f32 %v6558_v45, %v3831_v22  ;;  %v8341_v40 = vsub.f32 %v8208_v14, %v3913_v29  ;;  %v3944_v22 = vmul.f32 %v8329_v28, %v8329_v28  ;;  %v6174_v29 = vld [vmem:[#allocation8 + $0x48] ss:$16 sps:$4 sm:$0xff]  }
0x11fb   :  { %v6047_v9 = vpop.f32.mrf.mxu1 }
0x11fc   :  { %v3845_v35 = vadd.f32 %v6557_v1, %v3829_v39  ;;  %v3832_v2 = vadd.f32 %v6047_v9, %v3449_v6  ;;  %v8302_v47 = vadd.f32 %v8188_v12, %v3847_v60  ;;  %v6561_v6 = vld [vmem:[#allocation2 + $0x60] sm:$0xff]  ;;  %v8346_v39 = vsub.f32 %v8213_v11, %v3914_v25 }
0x11fd   :  { %v3801_v21 = vpop.f32.mrf.mxu1  ;;  %v3916_v9 = vmul.f32 0.0078125, %v3891_v30  ;;  %v3915_v1 = vmul.f32 0.0078125, %v3889_v17  ;;  %v3945_v53 = vmul.f32 %v8341_v40, %v8341_v40  ;;  %v6177_v17 = vld [vmem:[#allocation8 + $0x20] ss:$16 sps:$4 sm:$0xff]   ;;  %v6179_v25 = vld [vmem:[#allocation8 + $0x24] ss:$16 sps:$4 sm:$0xff]  }
0x11fe   :  { %v3830_v61 = vadd.f32 %v3801_v21, %v3447_v10  ;;  %v8298_v16 = vadd.f32 %v8188_v12, %v3845_v35  ;;  %v3848_v20 = vadd.f32 %v6560_v49, %v3832_v2  ;;  %v3910_v10 = vmul.f32 0.0078125, %v3879_v62  ;;  %v3893_v35 = vpop.xlane.xlu1 %3892  ;;  %v6182_v30 = vld [vmem:[#allocation8 + $0x2c] ss:$16 sps:$4 sm:$0xff]  }
0x11ff   :  { %v6050_v0 = vpop.f32.mrf.mxu1  ;;  %v8353_v2 = vsub.f32 %v8217_v63, %v3916_v9  ;;  %v8356_v21 = vsub.f32 %v8236_v18, %v3915_v1  ;;  %v3917_v45 = vmul.f32 0.0078125, %v3893_v35  ;;  %v3946_v60 = vmul.f32 %v8346_v39, %v8346_v39  ;;  %v6188_v9 = vld [vmem:[#allocation8 + $0xc] ss:$16 sps:$4 sm:$0xff]   ;;  %v6183_v1 = vld [vmem:[#allocation8] ss:$16 sps:$4 sm:$0xff]  }
0x1200   :  { %v3846_v31 = vadd.f32 %v6559_v59, %v3830_v61  ;;  %3894 = vadd.xlane.f32.xlu0 %v8298_v16  ;;  %v3835_v43 = vadd.f32 %v6050_v0, %v3452_v55  ;;  %v8310_v58 = vadd.f32 %v8188_v12, %v3848_v20  ;;  %v8318_v13 = vsub.f32 %v8192_v4, %v3910_v10  ;;  %v6141_v61 = vld [vmem:[#allocation8 + $0xe0] ss:$16 sps:$4 sm:$0xff]   ;;  %v6143_v0 = vld [vmem:[#allocation8 + $0xe4] ss:$16 sps:$4 sm:$0xff]   ;;  %v6144_v59 = vld [vmem:[#allocation8 + $0xe8] ss:$16 sps:$4 sm:$0xff]  }
0x1201   :  { %v3814_v54 = vpop.f32.mrf.mxu1  ;;  %v8361_v49 = vsub.f32 %v8240_v41, %v3917_v45  ;;  %v3947_v20 = vmul.f32 %v8356_v21, %v8356_v21  ;;  %4320 = vmatprep.subr.bf16.mxu0 %v6143_v0  ;;  %v6158_v10 = vld [vmem:[#allocation8 + $0xac] ss:$16 sps:$4 sm:$0xff]  }
0x1202   :  { %v3833_v32 = vadd.f32 %v3814_v54, %v3450_v56  ;;  %v8305_v36 = vadd.f32 %v8188_v12, %v3846_v31  ;;  %v3851_v55 = vadd.f32 %v6562_v42, %v3835_v43  ;;  %v3942_v62 = vmul.f32 %v8318_v13, %v8318_v13  ;;  %v6146_v31 = vld [vmem:[#allocation8 + $0xec] ss:$16 sps:$4 sm:$0xff]   ;;  %4321 = vmatpush1.bf16.msra.mxu0 %v6141_v61  ;;  %v6149_v43 = vld [vmem:[#allocation8 + $0xc4] ss:$16 sps:$4 sm:$0xff]   ;;  %v6156_v42 = vld [vmem:[#allocation8 + $0xa8] ss:$16 sps:$4 sm:$0xff]  }
0x1203   :  { %v6051_v33 = vpop.f32.mrf.mxu1  ;;  %v3948_v54 = vmul.f32 %v8353_v2, %v8353_v2  ;;  %4433 = vmatprep.subr.bf16.mxu1 %v6146_v31  ;;  %4322 = vmatprep.subr.bf16.mxu0 %v6149_v43 }
0x1204   :  { %v3849_v44 = vadd.f32 %v6561_v6, %v3833_v32  ;;  %3898 = vadd.xlane.f32.xlu0 %v8302_v47  ;;  %3896 = vadd.xlane.f32.xlu1 %v8305_v36  ;;  %v3836_v27 = vadd.f32 %v6051_v33, %v3453_v5  ;;  %v8321_v5 = vadd.f32 %v8188_v12, %v3851_v55  ;;  %v6152_v32 = vld [vmem:[#allocation8 + $0xcc] ss:$16 sps:$4 sm:$0xff]   ;;  %v6150_v33 = vld [vmem:[#allocation8 + $0xc8] ss:$16 sps:$4 sm:$0xff]   ;;  %v6161_v55 = vld [vmem:[#allocation8 + $0x84] ss:$16 sps:$4 sm:$0xff]  }
0x1205   :  { %v3817_v57 = vpop.f32.mrf.mxu1  ;;  %4434 = vmatpush1.bf16.msra.mxu1 %v6144_v59  ;;  %v3949_v6 = vmul.f32 %v8361_v49, %v8361_v49 }
0x1206   :  { %v3834_v38 = vadd.f32 %v3817_v57, %v3451_v50  ;;  %v8313_v56 = vadd.f32 %v8188_v12, %v3849_v44  ;;  %v3852_v23 = vadd.f32 %v6564_v8, %v3836_v27  ;;  %4435 = vmatprep.subr.bf16.mxu1 %v6152_v32  ;;  %4323 = vmatpush1.bf16.msra.mxu0 %v6147_v52  ;;  %v6155_v44 = vld [vmem:[#allocation8 + $0xa4] ss:$16 sps:$4 sm:$0xff]   ;;  %v6153_v57 = vld [vmem:[#allocation8 + $0xa0] ss:$16 sps:$4 sm:$0xff]   ;;  %v6164_v27 = vld [vmem:[#allocation8 + $0x8c] ss:$16 sps:$4 sm:$0xff]  }
0x1207   :  { %4324 = vmatprep.subr.bf16.mxu0 %v6155_v44  ;;  %v6176_v8 = vld [vmem:[#allocation8 + $0x4c] ss:$16 sps:$4 sm:$0xff]  }
0x1208   :  { %v3850_v15 = vadd.f32 %v6563_v34, %v3834_v38  ;;  %3900 = vadd.xlane.f32.xlu1 %v8310_v58  ;;  %3902 = vadd.xlane.f32.xlu0 %v8313_v56  ;;  %v8335_v7 = vadd.f32 %v8188_v12, %v3852_v23  ;;  %v6159_v38 = vld [vmem:[#allocation8 + $0x80] ss:$16 sps:$4 sm:$0xff]   ;;  %v6167_v34 = vld [vmem:[#allocation8 + $0x64] ss:$16 sps:$4 sm:$0xff]  }
0x1209   :  { %4436 = vmatpush1.bf16.msra.mxu1 %v6150_v33  ;;  %v6171_v23 = vld [vmem:[#allocation8 + $0x40] ss:$16 sps:$4 sm:$0xff]  }
0x120a   :  { %v8324_v50 = vadd.f32 %v8188_v12, %v3850_v15  ;;  %v3943_v12 = vmul.f32 %v8332_v37, %v8332_v37  ;;  %4437 = vmatprep.subr.bf16.mxu1 %v6158_v10  ;;  %4325 = vmatpush1.bf16.msra.mxu0 %v6153_v57  ;;  %v6170_v15 = vld [vmem:[#allocation8 + $0x6c] ss:$16 sps:$4 sm:$0xff]  }
0x120b   :  { %4326 = vmatprep.subr.bf16.mxu0 %v6161_v55 }
0x120c   :  { %3906 = vadd.xlane.f32.xlu0 %v8321_v5  ;;  %3904 = vadd.xlane.f32.xlu1 %v8324_v50 }
0x120d   :  { %4438 = vmatpush1.bf16.msra.mxu1 %v6156_v42 }
0x120e   :  { %4439 = vmatprep.subr.bf16.mxu1 %v6164_v27  ;;  %4327 = vmatpush1.bf16.msra.mxu0 %v6159_v38 }
0x120f   :  { %4328 = vmatprep.subr.bf16.mxu0 %v6167_v34 }
0x1210   :  { %3908 = vadd.xlane.f32.xlu1 %v8335_v7  ;;  %3958 = vadd.xlane.f32.xlu0 %v3942_v62  ;;  %v6180_v62 = vld [vmem:[#allocation8 + $0x28] ss:$16 sps:$4 sm:$0xff]  }
0x1211   :  { %4440 = vmatpush1.bf16.msra.mxu1 %v6162_v19 }
0x1212   :  { %4441 = vmatprep.subr.bf16.mxu1 %v6170_v15  ;;  %4329 = vmatpush1.bf16.msra.mxu0 %v6165_v3 }
0x1213   :  { %4330 = vmatprep.subr.bf16.mxu0 %v6173_v48 }
0x1214   :  { %3960 = vadd.xlane.f32.xlu1 %v3943_v12  ;;  %3962 = vadd.xlane.f32.xlu0 %v3944_v22  ;;  %v6185_v22 = vld [vmem:[#allocation8 + $0x4] ss:$16 sps:$4 sm:$0xff]   ;;  %v6186_v12 = vld [vmem:[#allocation8 + $0x8] ss:$16 sps:$4 sm:$0xff]  }
0x1215   :  { %4442 = vmatpush1.bf16.msra.mxu1 %v6168_v24 }
0x1216   :  { %4443 = vmatprep.subr.bf16.mxu1 %v6176_v8  ;;  %4331 = vmatpush1.bf16.msra.mxu0 %v6171_v23 }
0x1217   :  { %4332 = vmatprep.subr.bf16.mxu0 %v6179_v25 }
0x1218   :  { %3964 = vadd.xlane.f32.xlu1 %v3945_v53  ;;  %3966 = vadd.xlane.f32.xlu0 %v3946_v60 }
0x1219   :  { %4444 = vmatpush1.bf16.msra.mxu1 %v6174_v29 }
0x121a   :  { %4445 = vmatprep.subr.bf16.mxu1 %v6182_v30  ;;  %4333 = vmatpush1.bf16.msra.mxu0 %v6177_v17 }
0x121b   :  { %4334 = vmatprep.subr.bf16.mxu0 %v6185_v22 }
0x121c   :  { %3968 = vadd.xlane.f32.xlu1 %v3947_v20  ;;  %3970 = vadd.xlane.f32.xlu0 %v3948_v54 }
0x121d   :  { %4446 = vmatpush1.bf16.msra.mxu1 %v6180_v62 }
0x121e   :  { %4447 = vmatprep.subr.bf16.mxu1 %v6188_v9  ;;  %4335 = vmatpush1.bf16.msra.mxu0 %v6183_v1 }
0x1220   :  { %3972 = vadd.xlane.f32.xlu1 %v3949_v6 }
0x1221   :  { %4448 = vmatpush1.bf16.msra.mxu1 %v6186_v12 }
0x1289   :  { %v3895_v35 = vpop.xlane.xlu0 %3894 }
0x128a   :  { %v3918_v53 = vmul.f32 0.0078125, %v3895_v35 }
0x128c   :  { %v8370_v45 = vsub.f32 %v8298_v16, %v3918_v53 }
0x128d   :  { %v3897_v60 = vpop.xlane.xlu1 %3896  ;;  %v3899_v61 = vpop.xlane.xlu0 %3898 }
0x128e   :  { %v3919_v0 = vmul.f32 0.0078125, %v3897_v60  ;;  %v3920_v59 = vmul.f32 0.0078125, %v3899_v61  ;;  %v3950_v31 = vmul.f32 %v8370_v45, %v8370_v45 }
0x1290   :  { %v8375_v20 = vsub.f32 %v8305_v36, %v3919_v0  ;;  %v8378_v54 = vsub.f32 %v8302_v47, %v3920_v59  ;;  %3974 = vadd.xlane.f32.xlu0 %v3950_v31 }
0x1291   :  { %v3901_v43 = vpop.xlane.xlu1 %3900  ;;  %v3903_v32 = vpop.xlane.xlu0 %3902 }
0x1292   :  { %v3921_v52 = vmul.f32 0.0078125, %v3901_v43  ;;  %v3922_v33 = vmul.f32 0.0078125, %v3903_v32  ;;  %v3951_v6 = vmul.f32 %v8375_v20, %v8375_v20  ;;  %v3952_v44 = vmul.f32 %v8378_v54, %v8378_v54 }
0x1294   :  { %v8385_v10 = vsub.f32 %v8310_v58, %v3921_v52  ;;  %v8388_v57 = vsub.f32 %v8313_v56, %v3922_v33  ;;  %3976 = vadd.xlane.f32.xlu1 %v3951_v6  ;;  %3978 = vadd.xlane.f32.xlu0 %v3952_v44 }
0x1295   :  { %v3905_v42 = vpop.xlane.xlu1 %3904  ;;  %v3907_v55 = vpop.xlane.xlu0 %3906 }
0x1296   :  { %v3923_v27 = vmul.f32 0.0078125, %v3905_v42  ;;  %v3924_v38 = vmul.f32 0.0078125, %v3907_v55  ;;  %v3953_v19 = vmul.f32 %v8385_v10, %v8385_v10  ;;  %v3954_v34 = vmul.f32 %v8388_v57, %v8388_v57 }
0x1298   :  { %v8395_v15 = vsub.f32 %v8324_v50, %v3923_v27  ;;  %v8398_v3 = vsub.f32 %v8321_v5, %v3924_v38  ;;  %3980 = vadd.xlane.f32.xlu1 %v3953_v19  ;;  %3982 = vadd.xlane.f32.xlu0 %v3954_v34  ;;  %v8413_v19 = vld [vmem:[%s8609_s6] ss:$0 sm:$0xff] }
0x1299   :  { %v3909_v24 = vpop.xlane.xlu1 %3908  ;;  %v3959_v48 = vpop.xlane.xlu0 %3958 }
0x129a   :  { %v3925_v8 = vmul.f32 0.0078125, %v3909_v24  ;;  %v3990_v23 = vmul.f32 0.0078125, %v3959_v48  ;;  %v3955_v29 = vmul.f32 %v8395_v15, %v8395_v15  ;;  %v3956_v17 = vmul.f32 %v8398_v3, %v8398_v3 }
0x129c   :  { %v8405_v25 = vsub.f32 %v8335_v7, %v3925_v8  ;;  %v4006_v62 = vadd.f32 1e-05, %v3990_v23  ;;  %3984 = vadd.xlane.f32.xlu1 %v3955_v29  ;;  %3986 = vadd.xlane.f32.xlu0 %v3956_v17  ;;  %v8420_v17 = vld [vmem:[%s8610_s7] ss:$0 sm:$0xff] }
0x129d   :  { %v3961_v30 = vpop.xlane.xlu1 %3960  ;;  %v3963_v22 = vpop.xlane.xlu0 %3962 }
0x129e   :  { %6509 = vrsqrt.f32 %v4006_v62  ;;  %v3991_v9 = vmul.f32 0.0078125, %v3961_v30  ;;  %v3992_v1 = vmul.f32 0.0078125, %v3963_v22  ;;  %v3957_v12 = vmul.f32 %v8405_v25, %v8405_v25 }
0x12a0   :  { %v4007_v35 = vadd.f32 1e-05, %v3991_v9  ;;  %v4008_v53 = vadd.f32 1e-05, %v3992_v1  ;;  %3988 = vadd.xlane.f32.xlu1 %v3957_v12 }
0x12a1   :  { %v3965_v60 = vpop.xlane.xlu1 %3964  ;;  %v3967_v61 = vpop.xlane.xlu0 %3966 }
0x12a2   :  { %6511 = vrsqrt.f32 %v4007_v35  ;;  %v3993_v0 = vmul.f32 0.0078125, %v3965_v60  ;;  %v3994_v31 = vmul.f32 0.0078125, %v3967_v61 }
0x12a3   :  { %6513 = vrsqrt.f32 %v4008_v53 }
0x12a4   :  { %v4009_v59 = vadd.f32 1e-05, %v3993_v0  ;;  %v4010_v52 = vadd.f32 1e-05, %v3994_v31 }
0x12a5   :  { %v3969_v43 = vpop.xlane.xlu1 %3968  ;;  %v3971_v6 = vpop.xlane.xlu0 %3970 }
0x12a6   :  { %6515 = vrsqrt.f32 %v4009_v59  ;;  %v3995_v32 = vmul.f32 0.0078125, %v3969_v43  ;;  %v3996_v27 = vmul.f32 0.0078125, %v3971_v6 }
0x12a8   :  { %v4011_v33 = vadd.f32 1e-05, %v3995_v32  ;;  %v4012_v48 = vadd.f32 1e-05, %v3996_v27 }
0x12a9   :  { %v3973_v44 = vpop.xlane.xlu1 %3972 }
0x12aa   :  { %6517 = vrsqrt.f32 %v4011_v33  ;;  %v3997_v42 = vmul.f32 0.0078125, %v3973_v44 }
0x12ab   :  { %v6510_v55 = vpop.eup %6509  ;;  %6519 = vrsqrt.f32 %v4010_v52 }
0x12ac   :  { %v4038_v38 = vmul.f32 %v6510_v55, %v8318_v13  ;;  %v4013_v34 = vadd.f32 1e-05, %v3997_v42 }
0x12ae   :  { %v4060_v23 = vmul.f32 %v8413_v19, %v4038_v38  ;;  %6521 = vrsqrt.f32 %v4013_v34  ;;  %v6189_v34 = vld [vmem:[#allocation10 + $0x78] sm:$0xff]  }
0x12af   :  { %v6512_v24 = vpop.eup %6511  ;;  %6523 = vrsqrt.f32 %v4012_v48  ;;  %v6192_v48 = vld [vmem:[#allocation10 + $0xb8] sm:$0xff]   ;;  %5540 = vmatprep.subr.bf16.mxu0 %v6189_v34 }
0x12b0   :  { %v4039_v8 = vmul.f32 %v6512_v24, %v8332_v37  ;;  %v6514_v29 = vpop.eup %6513  ;;  %v4082_v30 = vadd.f32 %v8420_v17, %v4060_v23  ;;  %v6191_v24 = vld [vmem:[#allocation10 + $0x38] sm:$0xff]   ;;  %v6194_v23 = vld [vmem:[#allocation10 + $0xf0] sm:$0xff]  }
0x12b1   :  { %v4040_v9 = vmul.f32 %v6514_v29, %v8329_v28  ;;  %v6195_v29 = vld [vmem:[#allocation10 + $0x30] sm:$0xff]  }
0x12b2   :  { %v4061_v13 = vmul.f32 %v8413_v19, %v4039_v8  ;;  %v6193_v8 = vld [vmem:[#allocation10 + $0x70] sm:$0xff]  }
0x12b3   :  { %v6516_v62 = vpop.eup %6515  ;;  %v4062_v53 = vmul.f32 %v8413_v19, %v4040_v9  ;;  %v6200_v9 = vld [vmem:[#allocation10 + $0xa8] sm:$0xff]  }
0x12b4   :  { %v4083_v22 = vadd.f32 %v8420_v17, %v4061_v13  ;;  %v4041_v37 = vmul.f32 %v6516_v62, %v8341_v40  ;;  %v6196_v13 = vld [vmem:[#allocation10 + $0xb0] sm:$0xff]   ;;  %v6197_v62 = vld [vmem:[#allocation10 + $0x68] sm:$0xff]  }
0x12b5   :  { %v4084_v28 = vadd.f32 %v8420_v17, %v4062_v53  ;;  %v6205_v53 = vld [vmem:[#allocation10 + $0x58] sm:$0xff]  }
0x12b6   :  { %v4098_v1 = vpack.c.bf16 %v4083_v22, %v4082_v30  ;;  %v4063_v12 = vmul.f32 %v8413_v19, %v4041_v37  ;;  %v6198_v30 = vld [vmem:[#allocation10 + $0xe8] sm:$0xff]   ;;  %v6201_v37 = vld [vmem:[#allocation10 + $0x60] sm:$0xff]  }
0x12b7   :  { %v6518_v35 = vpop.eup %6517  ;;  %v6199_v22 = vld [vmem:[#allocation10 + $0x28] sm:$0xff]  }
0x12b8   :  { %4353 = vmatmul.mubr.bf16.vlgmr.msra.gmra.mxu0 %v4098_v1  ;;  %4466 = vmatmul.mubr.bf16.vlgmr.msra.gmra.mxu1 %v4098_v1  ;;  %v6520_v60 = vpop.eup %6519  ;;  %v4085_v61 = vadd.f32 %v8420_v17, %v4063_v12  ;;  %v4043_v0 = vmul.f32 %v6518_v35, %v8356_v21  ;;  %v6202_v1 = vld [vmem:[#allocation10 + $0xe0] sm:$0xff]  }
0x12b9   :  { %4362 = vmatprep.mubr.bf16.mxu0 %v8655_v46  ;;  %4475 = vmatprep.mubr.bf16.mxu1 %v8655_v46  ;;  %v4042_v40 = vmul.f32 %v6520_v60, %v8346_v39  ;;  %v6203_v12 = vld [vmem:[#allocation10 + $0x20] sm:$0xff]   ;;  %v6206_v60 = vld [vmem:[#allocation10 + $0xd8] sm:$0xff]  }
0x12ba   :  { %v4099_v59 = vpack.c.bf16 %v4085_v61, %v4084_v28  ;;  %v4065_v31 = vmul.f32 %v8413_v19, %v4043_v0  ;;  %5541 = vmatpush3.bf16.msra.mxu0 %v6191_v24  ;;  %v6204_v35 = vld [vmem:[#allocation10 + $0xa0] sm:$0xff]   ;;  %v6207_v61 = vld [vmem:[#allocation10 + $0x18] sm:$0xff]   ;;  %v6209_v28 = vld [vmem:[#allocation10 + $0x50] sm:$0xff]  }
0x12bb   :  { %v6522_v43 = vpop.eup %6521  ;;  %v4064_v52 = vmul.f32 %v8413_v19, %v4042_v40  ;;  %5542 = vmatprep.subr.bf16.mxu0 %v6193_v8  ;;  %v6208_v0 = vld [vmem:[#allocation10 + $0x98] sm:$0xff]   ;;  %v6210_v40 = vld [vmem:[#allocation10 + $0xd0] sm:$0xff]  }
0x12bc   :  { %v6524_v32 = vpop.eup %6523  ;;  %v4087_v33 = vadd.f32 %v8420_v17, %v4065_v31  ;;  %v4045_v21 = vmul.f32 %v6522_v43, %v8361_v49  ;;  %v6212_v31 = vld [vmem:[#allocation10 + $0x90] sm:$0xff]   ;;  %v6213_v43 = vld [vmem:[#allocation10 + $0x48] sm:$0xff]  }
0x12bd   :  { %v4086_v6 = vadd.f32 %v8420_v17, %v4064_v52  ;;  %v4044_v39 = vmul.f32 %v6524_v32, %v8353_v2  ;;  %v6190_v2 = vld [vmem:[#allocation10 + $0xf8] sm:$0xff]   ;;  %v6214_v32 = vld [vmem:[#allocation10 + $0xc8] sm:$0xff]  }
0x12be   :  { %v4067_v42 = vmul.f32 %v8413_v19, %v4045_v21  ;;  %5604 = vmatprep.subr.bf16.mxu1 %v6190_v2  ;;  %5543 = vmatpush3.bf16.msra.mxu0 %v6195_v29  ;;  %v6215_v52 = vld [vmem:[#allocation10 + $0x8] sm:$0xff]   ;;  %v6217_v21 = vld [vmem:[#allocation10 + $0x40] sm:$0xff]  }
0x12bf   :  { %v4100_v44 = vpack.c.bf16 %v4087_v33, %v4086_v6  ;;  %v4066_v55 = vmul.f32 %v8413_v19, %v4044_v39  ;;  %5605 = vmatpush3.bf16.msra.mxu1 %v6192_v48  ;;  %5544 = vmatprep.subr.bf16.mxu0 %v6197_v62  ;;  %v6216_v33 = vld [vmem:[#allocation10 + $0x88] sm:$0xff]   ;;  %v6218_v6 = vld [vmem:[#allocation10 + $0xc0] sm:$0xff]  }
0x12c0   :  { %4363 = vmatmul.mubr.bf16.gmra.mxu0 %v4099_v59  ;;  %4476 = vmatmul.mubr.bf16.gmra.mxu1 %v4099_v59  ;;  %v4089_v27 = vadd.f32 %v8420_v17, %v4067_v42  ;;  %v6211_v59 = vld [vmem:[#allocation10 + $0x10] sm:$0xff]   ;;  %v6219_v39 = vld [vmem:[#allocation10] sm:$0xff]  }
0x12c1   :  { %4372 = vmatprep.mubr.bf16.mxu0 %v8655_v46  ;;  %4485 = vmatprep.mubr.bf16.mxu1 %v8655_v46  ;;  %v4088_v38 = vadd.f32 %v8420_v17, %v4066_v55 }
0x12c2   :  { %5606 = vmatprep.subr.bf16.mxu1 %v6194_v23  ;;  %5545 = vmatpush3.bf16.msra.mxu0 %v6199_v22 }
0x12c3   :  { %v4101_v49 = vpack.c.bf16 %v4089_v27, %v4088_v38  ;;  %5607 = vmatpush3.bf16.msra.mxu1 %v6196_v13  ;;  %5546 = vmatprep.subr.bf16.mxu0 %v6201_v37 }
0x12c4   :  { %5608 = vmatprep.subr.bf16.mxu1 %v6198_v30 }
0x12c6   :  { %5547 = vmatpush3.bf16.msra.mxu0 %v6203_v12 }
0x12c7   :  { %5609 = vmatpush3.bf16.msra.mxu1 %v6200_v9  ;;  %5548 = vmatprep.subr.bf16.mxu0 %v6205_v53 }
0x12c8   :  { %4373 = vmatmul.mubr.bf16.gmra.mxu0 %v4100_v44  ;;  %4486 = vmatmul.mubr.bf16.gmra.mxu1 %v4100_v44  ;;  %v6220_v44 = vld [vmem:[#allocation10 + $0x80] sm:$0xff]  }
0x12c9   :  { %4382 = vmatprep.mubr.bf16.mxu0 %v8655_v46  ;;  %4495 = vmatprep.mubr.bf16.mxu1 %v8655_v46 }
0x12ca   :  { %5610 = vmatprep.subr.bf16.mxu1 %v6202_v1  ;;  %5549 = vmatpush3.bf16.msra.mxu0 %v6207_v61 }
0x12cb   :  { %5611 = vmatpush3.bf16.msra.mxu1 %v6204_v35  ;;  %5550 = vmatprep.subr.bf16.mxu0 %v6209_v28 }
0x12cc   :  { %5612 = vmatprep.subr.bf16.mxu1 %v6206_v60 }
0x12ce   :  { %5551 = vmatpush3.bf16.msra.mxu0 %v6211_v59 }
0x12cf   :  { %5613 = vmatpush3.bf16.msra.mxu1 %v6208_v0  ;;  %5552 = vmatprep.subr.bf16.mxu0 %v6213_v43 }
0x12d0   :  { %4383 = vmatmul.mubr.bf16.gmra.mxu0 %v4101_v49  ;;  %4496 = vmatmul.mubr.bf16.gmra.mxu1 %v4101_v49 }
0x12d1   :  { %4392 = vmatprep.mubr.bf16.mxu0 %v8655_v46  ;;  %4505 = vmatprep.mubr.bf16.mxu1 %v8655_v46 }
0x12d2   :  { %5614 = vmatprep.subr.bf16.mxu1 %v6210_v40  ;;  %5553 = vmatpush3.bf16.msra.mxu0 %v6215_v52 }
0x12d3   :  { %5615 = vmatpush3.bf16.msra.mxu1 %v6212_v31  ;;  %5554 = vmatprep.subr.bf16.mxu0 %v6217_v21 }
0x12d4   :  { %5616 = vmatprep.subr.bf16.mxu1 %v6214_v32 }
0x12d6   :  { %5555 = vmatpush3.bf16.msra.mxu0 %v6219_v39 }
0x12d7   :  { %5617 = vmatpush3.bf16.msra.mxu1 %v6216_v33 }
0x12d8   :  { %5618 = vmatprep.subr.bf16.mxu1 %v6218_v6 }
0x12db   :  { %5619 = vmatpush3.bf16.msra.mxu1 %v6220_v44 }
0x1319   :  { %v3975_v42 = vpop.xlane.xlu0 %3974 }
0x131a   :  { %v3998_v55 = vmul.f32 0.0078125, %v3975_v42 }
0x131c   :  { %v4014_v27 = vadd.f32 1e-05, %v3998_v55 }
0x131d   :  { %v3977_v38 = vpop.xlane.xlu1 %3976  ;;  %v3979_v49 = vpop.xlane.xlu0 %3978 }
0x131e   :  { %6525 = vrsqrt.f32 %v4014_v27  ;;  %v3999_v34 = vmul.f32 0.0078125, %v3977_v38  ;;  %v4000_v2 = vmul.f32 0.0078125, %v3979_v49 }
0x1320   :  { %v4015_v24 = vadd.f32 1e-05, %v3999_v34  ;;  %v4016_v48 = vadd.f32 1e-05, %v4000_v2 }
0x1321   :  { %v3981_v8 = vpop.xlane.xlu1 %3980  ;;  %v3983_v23 = vpop.xlane.xlu0 %3982 }
0x1322   :  { %6527 = vrsqrt.f32 %v4015_v24  ;;  %v4001_v29 = vmul.f32 0.0078125, %v3981_v8  ;;  %v4002_v62 = vmul.f32 0.0078125, %v3983_v23 }
0x1323   :  { %6529 = vrsqrt.f32 %v4016_v48 }
0x1324   :  { %v4017_v13 = vadd.f32 1e-05, %v4001_v29  ;;  %v4018_v9 = vadd.f32 1e-05, %v4002_v62 }
0x1325   :  { %v3985_v30 = vpop.xlane.xlu1 %3984  ;;  %v3987_v1 = vpop.xlane.xlu0 %3986 }
0x1326   :  { %6531 = vrsqrt.f32 %v4017_v13  ;;  %v4003_v22 = vmul.f32 0.0078125, %v3985_v30  ;;  %v4004_v60 = vmul.f32 0.0078125, %v3987_v1 }
0x1328   :  { %v4019_v37 = vadd.f32 1e-05, %v4003_v22  ;;  %v4020_v40 = vadd.f32 1e-05, %v4004_v60 }
0x1329   :  { %v3989_v12 = vpop.xlane.xlu1 %3988 }
0x132a   :  { %6533 = vrsqrt.f32 %v4019_v37  ;;  %v4005_v35 = vmul.f32 0.0078125, %v3989_v12 }
0x132b   :  { %v6526_v53 = vpop.eup %6525  ;;  %6535 = vrsqrt.f32 %v4018_v9  ;;  %v8660_v9 = vld [vmem:[#allocation21_spill] sm:$0xff] }
0x132c   :  { %v4046_v61 = vmul.f32 %v6526_v53, %v8370_v45  ;;  %v4021_v0 = vadd.f32 1e-05, %v4005_v35  ;;  %v4154_v37 = vsub.s32 3, %v8660_v9  ;;  %v4142_v1 = vsub.s32 0, %v8660_v9 }
0x132d   :  { %v4150_v12 = vsub.s32 2, %v8660_v9 }
0x132e   :  { %v4068_v31 = vmul.f32 %v8413_v19, %v4046_v61  ;;  %6537 = vrsqrt.f32 %v4021_v0 }
0x132f   :  { %v6528_v28 = vpop.eup %6527  ;;  %6539 = vrsqrt.f32 %v4020_v40 }
0x1330   :  { %v4047_v59 = vmul.f32 %v6528_v28, %v8375_v20  ;;  %v6530_v43 = vpop.eup %6529  ;;  %v4090_v33 = vadd.f32 %v8420_v17, %v4068_v31 }
0x1331   :  { %v4048_v6 = vmul.f32 %v6530_v43, %v8378_v54 }
0x1332   :  { %v4069_v32 = vmul.f32 %v8413_v19, %v4047_v59 }
0x1333   :  { %v6532_v52 = vpop.eup %6531  ;;  %v4070_v42 = vmul.f32 %v8413_v19, %v4048_v6 }
0x1334   :  { %v4091_v21 = vadd.f32 %v8420_v17, %v4069_v32  ;;  %v4049_v45 = vmul.f32 %v6532_v52, %v8385_v10 }
0x1335   :  { %v4092_v54 = vadd.f32 %v8420_v17, %v4070_v42 }
0x1336   :  { %v4102_v39 = vpack.c.bf16 %v4091_v21, %v4090_v33  ;;  %v4071_v44 = vmul.f32 %v8413_v19, %v4049_v45 }
0x1337   :  { %v6534_v20 = vpop.eup %6533 }
0x1338   :  { %4393 = vmatmul.mubr.bf16.gmra.mxu0 %v4102_v39  ;;  %4506 = vmatmul.mubr.bf16.gmra.mxu1 %v4102_v39  ;;  %v6536_v55 = vpop.eup %6535  ;;  %v4093_v27 = vadd.f32 %v8420_v17, %v4071_v44  ;;  %v4051_v38 = vmul.f32 %v6534_v20, %v8395_v15 }
0x1339   :  { %4402 = vmatprep.mubr.bf16.mxu0 %v8655_v46  ;;  %4515 = vmatprep.mubr.bf16.mxu1 %v8655_v46  ;;  %v4050_v10 = vmul.f32 %v6536_v55, %v8388_v57 }
0x133a   :  { %v4103_v49 = vpack.c.bf16 %v4093_v27, %v4092_v54  ;;  %v4073_v34 = vmul.f32 %v8413_v19, %v4051_v38 }
0x133b   :  { %v6538_v2 = vpop.eup %6537  ;;  %v4072_v48 = vmul.f32 %v8413_v19, %v4050_v10 }
0x133c   :  { %v6540_v24 = vpop.eup %6539  ;;  %v4095_v8 = vadd.f32 %v8420_v17, %v4073_v34  ;;  %v4053_v15 = vmul.f32 %v6538_v2, %v8405_v25 }
0x133d   :  { %v4094_v23 = vadd.f32 %v8420_v17, %v4072_v48  ;;  %v4052_v57 = vmul.f32 %v6540_v24, %v8398_v3  ;;  %v4146_v3 = vsub.s32 1, %v8660_v9 }
0x133e   :  { %v4075_v13 = vmul.f32 %v8413_v19, %v4053_v15 }
0x133f   :  { %v4104_v29 = vpack.c.bf16 %v4095_v8, %v4094_v23  ;;  %v4074_v62 = vmul.f32 %v8413_v19, %v4052_v57  ;;  %v4138_v19 = vld [vmem:[%s8612_s9] sm:$0xf] }
0x1340   :  { %4403 = vmatmul.mubr.bf16.gmra.mxu0 %v4103_v49  ;;  %4516 = vmatmul.mubr.bf16.gmra.mxu1 %v4103_v49  ;;  %v4097_v30 = vadd.f32 %v8420_v17, %v4075_v13  ;;  %v8488_v53 = vrot.slane %v4138_v19, %v4146_v3  ;;  %v8492_v60 = vrot.slane %v4138_v19, %v4142_v1 }
0x1341   :  { %4412 = vmatprep.mubr.bf16.mxu0 %v8655_v46  ;;  %4525 = vmatprep.mubr.bf16.mxu1 %v8655_v46  ;;  %v4096_v22 = vadd.f32 %v8420_v17, %v4074_v62  ;;  %v8490_v17 = vrot.slane %v4138_v19, %v4154_v37  ;;  %v8494_v61 = vrot.slane %v4138_v19, %v4150_v12 }
0x1343   :  { %v4105_v25 = vpack.c.bf16 %v4097_v30, %v4096_v22 }
0x1348   :  { %4413 = vmatmul.mubr.bf16.gmra.mxu0 %v4104_v29  ;;  %4526 = vmatmul.mubr.bf16.gmra.mxu1 %v4104_v29 }
0x1349   :  { %4422 = vmatprep.mubr.bf16.mxu0 %v8655_v46  ;;  %4535 = vmatprep.mubr.bf16.mxu1 %v8655_v46 }
0x1350   :  { %4423 = vmatmul.mubr.bf16.gmra.mxu0 %v4105_v25  ;;  %4536 = vmatmul.mubr.bf16.gmra.mxu1 %v4105_v25 }
0x1378   :  { %v4354_v46 = vpop.f32.mrf.mxu0  ;;  %v4467_v35 = vpop.f32.mrf.mxu1 }
0x1379   :  { %v4355_v33 = vadd.f32 %v4354_v46, %v8492_v60  ;;  %v4468_v21 = vadd.f32 %v4467_v35, %v8494_v61 }
0x137a   :  { %v4356_v0 = vpop.f32.mrf.mxu0  ;;  %v4469_v28 = vpop.f32.mrf.mxu1 }
0x137b   :  { %v4357_v31 = vadd.f32 %v4356_v0, %v8488_v53  ;;  %v4470_v43 = vadd.f32 %v4469_v28, %v8490_v17  ;;  %v4546_v34 = vmax.f32 %v4355_v33, 0.0  ;;  %v4548_v2 = vmax.f32 %v4468_v21, 0.0 }
0x137c   :  { %v4358_v40 = vpop.f32.mrf.mxu0  ;;  %v4471_v59 = vpop.f32.mrf.mxu1 }
0x137d   :  { %v4359_v32 = vadd.f32 %v4358_v40, %v8492_v60  ;;  %v4472_v52 = vadd.f32 %v4471_v59, %v8494_v61  ;;  %v4547_v38 = vmax.f32 %v4357_v31, 0.0  ;;  %v4549_v54 = vmax.f32 %v4470_v43, 0.0 }
0x137e   :  { %v4360_v6 = vpop.f32.mrf.mxu0  ;;  %v4473_v45 = vpop.f32.mrf.mxu1 }
0x137f   :  { %v4361_v39 = vadd.f32 %v4360_v6, %v8488_v53  ;;  %v4474_v44 = vadd.f32 %v4473_v45, %v8490_v17  ;;  %v4550_v20 = vmax.f32 %v4359_v32, 0.0  ;;  %v4552_v42 = vmax.f32 %v4472_v52, 0.0 }
0x1380   :  { %v4364_v55 = vpop.f32.mrf.mxu0  ;;  %v4477_v27 = vpop.f32.mrf.mxu1 }
0x1381   :  { %v4551_v10 = vmax.f32 %v4361_v39, 0.0  ;;  %v4553_v49 = vmax.f32 %v4474_v44, 0.0  ;;  %v4610_v23 = vpack.c.bf16 %v4550_v20, %v4546_v34  ;;  %v4612_v57 = vpack.c.bf16 %v4552_v42, %v4548_v2 }
0x1382   :  { %v4366_v24 = vpop.f32.mrf.mxu0  ;;  %v4479_v48 = vpop.f32.mrf.mxu1  ;;  %v4365_v9 = vadd.f32 %v4364_v55, %v8492_v60  ;;  %v4478_v3 = vadd.f32 %v4477_v27, %v8494_v61 }
0x1383   :  { %v4611_v8 = vpack.c.bf16 %v4551_v10, %v4547_v38  ;;  %v4613_v15 = vpack.c.bf16 %v4553_v49, %v4549_v54  ;;  %v4367_v29 = vadd.f32 %v4366_v24, %v8488_v53  ;;  %v4480_v30 = vadd.f32 %v4479_v48, %v8490_v17 }
0x1384   :  { %v4368_v13 = vpop.f32.mrf.mxu0  ;;  %v4481_v62 = vpop.f32.mrf.mxu1  ;;  %v4554_v32 = vmax.f32 %v4365_v9, 0.0  ;;  %v4556_v52 = vmax.f32 %v4478_v3, 0.0 }
0x1385   :  { %v4369_v22 = vadd.f32 %v4368_v13, %v8492_v60  ;;  %v4482_v25 = vadd.f32 %v4481_v62, %v8494_v61  ;;  %4937 = vmatprep.mubr.bf16.mxu0 %v4611_v8  ;;  %5034 = vmatprep.mubr.bf16.mxu1 %v4613_v15  ;;  %v4555_v40 = vmax.f32 %v4367_v29, 0.0  ;;  %v4557_v59 = vmax.f32 %v4480_v30, 0.0 }
0x1386   :  { %v4370_v37 = vpop.f32.mrf.mxu0  ;;  %v4483_v1 = vpop.f32.mrf.mxu1  ;;  %4938 = vmatmul.mubr.bf16.vlgmr.msra.gmra.mxu0 %v4610_v23  ;;  %5035 = vmatmul.mubr.bf16.vlgmr.msra.gmra.mxu1 %v4612_v57 }
0x1387   :  { %v4371_v12 = vadd.f32 %v4370_v37, %v8488_v53  ;;  %v4484_v19 = vadd.f32 %v4483_v1, %v8490_v17  ;;  %v4558_v46 = vmax.f32 %v4369_v22, 0.0  ;;  %v4560_v35 = vmax.f32 %v4482_v25, 0.0 }
0x1388   :  { %v4374_v0 = vpop.f32.mrf.mxu0  ;;  %v4487_v28 = vpop.f32.mrf.mxu1 }
0x1389   :  { %v4559_v31 = vmax.f32 %v4371_v12, 0.0  ;;  %v4561_v43 = vmax.f32 %v4484_v19, 0.0  ;;  %v4614_v39 = vpack.c.bf16 %v4558_v46, %v4554_v32  ;;  %v4616_v44 = vpack.c.bf16 %v4560_v35, %v4556_v52 }
0x138a   :  { %v4376_v33 = vpop.f32.mrf.mxu0  ;;  %v4489_v21 = vpop.f32.mrf.mxu1  ;;  %v4375_v10 = vadd.f32 %v4374_v0, %v8492_v60  ;;  %v4488_v49 = vadd.f32 %v4487_v28, %v8494_v61 }
0x138b   :  { %v4615_v6 = vpack.c.bf16 %v4559_v31, %v4555_v40  ;;  %v4617_v45 = vpack.c.bf16 %v4561_v43, %v4557_v59  ;;  %v4377_v20 = vadd.f32 %v4376_v33, %v8488_v53  ;;  %v4490_v27 = vadd.f32 %v4489_v21, %v8490_v17 }
0x138c   :  { %v4378_v42 = vpop.f32.mrf.mxu0  ;;  %v4491_v55 = vpop.f32.mrf.mxu1  ;;  %v4562_v22 = vmax.f32 %v4375_v10, 0.0  ;;  %v4564_v25 = vmax.f32 %v4488_v49, 0.0 }
0x138d   :  { %v4379_v38 = vadd.f32 %v4378_v42, %v8492_v60  ;;  %v4492_v54 = vadd.f32 %v4491_v55, %v8494_v61  ;;  %4945 = vmatprep.mubr.bf16.mxu0 %v4615_v6  ;;  %5042 = vmatprep.mubr.bf16.mxu1 %v4617_v45  ;;  %v4563_v29 = vmax.f32 %v4377_v20, 0.0  ;;  %v4565_v13 = vmax.f32 %v4490_v27, 0.0 }
0x138e   :  { %v4380_v34 = vpop.f32.mrf.mxu0  ;;  %v4493_v2 = vpop.f32.mrf.mxu1  ;;  %4946 = vmatmul.mubr.bf16.gmra.mxu0 %v4614_v39  ;;  %5043 = vmatmul.mubr.bf16.gmra.mxu1 %v4616_v44 }
0x138f   :  { %v4381_v24 = vadd.f32 %v4380_v34, %v8488_v53  ;;  %v4494_v48 = vadd.f32 %v4493_v2, %v8490_v17  ;;  %v4566_v8 = vmax.f32 %v4379_v38, 0.0  ;;  %v4568_v15 = vmax.f32 %v4492_v54, 0.0 }
0x1390   :  { %v4384_v23 = vpop.f32.mrf.mxu0  ;;  %v4497_v57 = vpop.f32.mrf.mxu1 }
0x1391   :  { %v4567_v62 = vmax.f32 %v4381_v24, 0.0  ;;  %v4569_v30 = vmax.f32 %v4494_v48, 0.0  ;;  %v4618_v12 = vpack.c.bf16 %v4566_v8, %v4562_v22  ;;  %v4620_v19 = vpack.c.bf16 %v4568_v15, %v4564_v25 }
0x1392   :  { %v4386_v9 = vpop.f32.mrf.mxu0  ;;  %v4499_v3 = vpop.f32.mrf.mxu1  ;;  %v4385_v31 = vadd.f32 %v4384_v23, %v8492_v60  ;;  %v4498_v43 = vadd.f32 %v4497_v57, %v8494_v61 }
0x1393   :  { %v4619_v37 = vpack.c.bf16 %v4567_v62, %v4563_v29  ;;  %v4621_v1 = vpack.c.bf16 %v4569_v30, %v4565_v13  ;;  %v4387_v46 = vadd.f32 %v4386_v9, %v8488_v53  ;;  %v4500_v28 = vadd.f32 %v4499_v3, %v8490_v17 }
0x1394   :  { %v4388_v35 = vpop.f32.mrf.mxu0  ;;  %v4501_v0 = vpop.f32.mrf.mxu1  ;;  %v4570_v55 = vmax.f32 %v4385_v31, 0.0  ;;  %v4572_v27 = vmax.f32 %v4498_v43, 0.0 }
0x1395   :  { %v4389_v40 = vadd.f32 %v4388_v35, %v8492_v60  ;;  %v4502_v59 = vadd.f32 %v4501_v0, %v8494_v61  ;;  %4953 = vmatprep.mubr.bf16.mxu0 %v4619_v37  ;;  %5050 = vmatprep.mubr.bf16.mxu1 %v4621_v1  ;;  %v4571_v39 = vmax.f32 %v4387_v46, 0.0  ;;  %v4573_v44 = vmax.f32 %v4500_v28, 0.0 }
0x1396   :  { %v4390_v32 = vpop.f32.mrf.mxu0  ;;  %v4503_v52 = vpop.f32.mrf.mxu1  ;;  %4954 = vmatmul.mubr.bf16.gmra.mxu0 %v4618_v12  ;;  %5051 = vmatmul.mubr.bf16.gmra.mxu1 %v4620_v19 }
0x1397   :  { %v4391_v33 = vadd.f32 %v4390_v32, %v8488_v53  ;;  %v4504_v21 = vadd.f32 %v4503_v52, %v8490_v17  ;;  %v4574_v6 = vmax.f32 %v4389_v40, 0.0  ;;  %v4576_v45 = vmax.f32 %v4502_v59, 0.0 }
0x1399   :  { %v4575_v20 = vmax.f32 %v4391_v33, 0.0  ;;  %v4577_v42 = vmax.f32 %v4504_v21, 0.0  ;;  %v4622_v10 = vpack.c.bf16 %v4574_v6, %v4570_v55  ;;  %v4624_v49 = vpack.c.bf16 %v4576_v45, %v4572_v27 }
0x139b   :  { %v4623_v38 = vpack.c.bf16 %v4575_v20, %v4571_v39  ;;  %v4625_v54 = vpack.c.bf16 %v4577_v42, %v4573_v44 }
0x139d   :  { %4961 = vmatprep.mubr.bf16.mxu0 %v4623_v38  ;;  %5058 = vmatprep.mubr.bf16.mxu1 %v4625_v54 }
0x139e   :  { %4962 = vmatmul.mubr.bf16.gmra.mxu0 %v4622_v10  ;;  %5059 = vmatmul.mubr.bf16.gmra.mxu1 %v4624_v49 }
0x13f8   :  { %v4394_v34 = vpop.f32.mrf.mxu0  ;;  %v4507_v2 = vpop.f32.mrf.mxu1 }
0x13f9   :  { %v4395_v62 = vadd.f32 %v4394_v34, %v8492_v60  ;;  %v4508_v30 = vadd.f32 %v4507_v2, %v8494_v61 }
0x13fa   :  { %v4396_v24 = vpop.f32.mrf.mxu0  ;;  %v4509_v48 = vpop.f32.mrf.mxu1 }
0x13fb   :  { %v4397_v23 = vadd.f32 %v4396_v24, %v8488_v53  ;;  %v4510_v57 = vadd.f32 %v4509_v48, %v8490_v17  ;;  %v4578_v40 = vmax.f32 %v4395_v62, 0.0  ;;  %v4580_v59 = vmax.f32 %v4508_v30, 0.0 }
0x13fc   :  { %v4398_v8 = vpop.f32.mrf.mxu0  ;;  %v4511_v15 = vpop.f32.mrf.mxu1 }
0x13fd   :  { %v4399_v29 = vadd.f32 %v4398_v8, %v8492_v60  ;;  %v4512_v13 = vadd.f32 %v4511_v15, %v8494_v61  ;;  %v4579_v46 = vmax.f32 %v4397_v23, 0.0  ;;  %v4581_v35 = vmax.f32 %v4510_v57, 0.0 }
0x13fe   :  { %v4400_v22 = vpop.f32.mrf.mxu0  ;;  %v4513_v25 = vpop.f32.mrf.mxu1 }
0x13ff   :  { %v4401_v9 = vadd.f32 %v4400_v22, %v8488_v53  ;;  %v4514_v3 = vadd.f32 %v4513_v25, %v8490_v17  ;;  %v4582_v37 = vmax.f32 %v4399_v29, 0.0  ;;  %v4584_v1 = vmax.f32 %v4512_v13, 0.0 }
0x1400   :  { %v4404_v12 = vpop.f32.mrf.mxu0  ;;  %v4517_v19 = vpop.f32.mrf.mxu1 }
0x1401   :  { %v4583_v0 = vmax.f32 %v4401_v9, 0.0  ;;  %v4585_v28 = vmax.f32 %v4514_v3, 0.0  ;;  %v4626_v33 = vpack.c.bf16 %v4582_v37, %v4578_v40  ;;  %v4628_v21 = vpack.c.bf16 %v4584_v1, %v4580_v59 }
0x1402   :  { %v4406_v31 = vpop.f32.mrf.mxu0  ;;  %v4519_v43 = vpop.f32.mrf.mxu1  ;;  %v4405_v55 = vadd.f32 %v4404_v12, %v8492_v60  ;;  %v4518_v27 = vadd.f32 %v4517_v19, %v8494_v61 }
0x1403   :  { %v4627_v32 = vpack.c.bf16 %v4583_v0, %v4579_v46  ;;  %v4629_v52 = vpack.c.bf16 %v4585_v28, %v4581_v35  ;;  %v4407_v6 = vadd.f32 %v4406_v31, %v8488_v53  ;;  %v4520_v44 = vadd.f32 %v4519_v43, %v8490_v17 }
0x1404   :  { %v4408_v45 = vpop.f32.mrf.mxu0  ;;  %v4521_v39 = vpop.f32.mrf.mxu1  ;;  %v4586_v29 = vmax.f32 %v4405_v55, 0.0  ;;  %v4588_v13 = vmax.f32 %v4518_v27, 0.0 }
0x1405   :  { %v4409_v20 = vadd.f32 %v4408_v45, %v8492_v60  ;;  %v4522_v42 = vadd.f32 %v4521_v39, %v8494_v61  ;;  %4969 = vmatprep.mubr.bf16.mxu0 %v4627_v32  ;;  %5066 = vmatprep.mubr.bf16.mxu1 %v4629_v52  ;;  %v4587_v8 = vmax.f32 %v4407_v6, 0.0  ;;  %v4589_v15 = vmax.f32 %v4520_v44, 0.0 }
0x1406   :  { %v4410_v38 = vpop.f32.mrf.mxu0  ;;  %v4523_v54 = vpop.f32.mrf.mxu1  ;;  %4970 = vmatmul.mubr.bf16.gmra.mxu0 %v4626_v33  ;;  %5067 = vmatmul.mubr.bf16.gmra.mxu1 %v4628_v21 }
0x1407   :  { %v4411_v10 = vadd.f32 %v4410_v38, %v8488_v53  ;;  %v4524_v49 = vadd.f32 %v4523_v54, %v8490_v17  ;;  %v4590_v34 = vmax.f32 %v4409_v20, 0.0  ;;  %v4592_v2 = vmax.f32 %v4522_v42, 0.0 }
0x1408   :  { %v4414_v24 = vpop.f32.mrf.mxu0  ;;  %v4527_v48 = vpop.f32.mrf.mxu1 }
0x1409   :  { %v4591_v23 = vmax.f32 %v4411_v10, 0.0  ;;  %v4593_v57 = vmax.f32 %v4524_v49, 0.0  ;;  %v4630_v9 = vpack.c.bf16 %v4590_v34, %v4586_v29  ;;  %v4632_v3 = vpack.c.bf16 %v4592_v2, %v4588_v13 }
0x140a   :  { %v4416_v62 = vpop.f32.mrf.mxu0  ;;  %v4529_v30 = vpop.f32.mrf.mxu1  ;;  %v4415_v0 = vadd.f32 %v4414_v24, %v8492_v60  ;;  %v4528_v28 = vadd.f32 %v4527_v48, %v8494_v61 }
0x140b   :  { %v4631_v22 = vpack.c.bf16 %v4591_v23, %v4587_v8  ;;  %v4633_v25 = vpack.c.bf16 %v4593_v57, %v4589_v15  ;;  %v4417_v37 = vadd.f32 %v4416_v62, %v8488_v53  ;;  %v4530_v19 = vadd.f32 %v4529_v30, %v8490_v17 }
0x140c   :  { %v4418_v1 = vpop.f32.mrf.mxu0  ;;  %v4531_v12 = vpop.f32.mrf.mxu1  ;;  %v4594_v20 = vmax.f32 %v4415_v0, 0.0  ;;  %v4596_v42 = vmax.f32 %v4528_v28, 0.0 }
0x140d   :  { %v4419_v46 = vadd.f32 %v4418_v1, %v8492_v60  ;;  %v4532_v35 = vadd.f32 %v4531_v12, %v8494_v61  ;;  %4977 = vmatprep.mubr.bf16.mxu0 %v4631_v22  ;;  %5074 = vmatprep.mubr.bf16.mxu1 %v4633_v25  ;;  %v4595_v6 = vmax.f32 %v4417_v37, 0.0  ;;  %v4597_v45 = vmax.f32 %v4530_v19, 0.0 }
0x140e   :  { %v4420_v40 = vpop.f32.mrf.mxu0  ;;  %v4533_v59 = vpop.f32.mrf.mxu1  ;;  %4978 = vmatmul.mubr.bf16.gmra.mxu0 %v4630_v9  ;;  %5075 = vmatmul.mubr.bf16.gmra.mxu1 %v4632_v3 }
0x140f   :  { %v4421_v31 = vadd.f32 %v4420_v40, %v8488_v53  ;;  %v4534_v43 = vadd.f32 %v4533_v59, %v8490_v17  ;;  %v4598_v32 = vmax.f32 %v4419_v46, 0.0  ;;  %v4600_v52 = vmax.f32 %v4532_v35, 0.0 }
0x1410   :  { %v4424_v33 = vpop.f32.mrf.mxu0  ;;  %v4537_v21 = vpop.f32.mrf.mxu1 }
0x1411   :  { %v4599_v39 = vmax.f32 %v4421_v31, 0.0  ;;  %v4601_v44 = vmax.f32 %v4534_v43, 0.0  ;;  %v4634_v10 = vpack.c.bf16 %v4598_v32, %v4594_v20  ;;  %v4636_v49 = vpack.c.bf16 %v4600_v52, %v4596_v42 }
0x1412   :  { %v4426_v55 = vpop.f32.mrf.mxu0  ;;  %v4539_v27 = vpop.f32.mrf.mxu1  ;;  %v4425_v23 = vadd.f32 %v4424_v33, %v8492_v60  ;;  %v4538_v57 = vadd.f32 %v4537_v21, %v8494_v61 }
0x1413   :  { %v4635_v38 = vpack.c.bf16 %v4599_v39, %v4595_v6  ;;  %v4637_v54 = vpack.c.bf16 %v4601_v44, %v4597_v45  ;;  %v4427_v34 = vadd.f32 %v4426_v55, %v8488_v53  ;;  %v4540_v48 = vadd.f32 %v4539_v27, %v8490_v17 }
0x1414   :  { %v4428_v2 = vpop.f32.mrf.mxu0  ;;  %v4541_v24 = vpop.f32.mrf.mxu1  ;;  %v4602_v12 = vmax.f32 %v4425_v23, 0.0  ;;  %v4604_v19 = vmax.f32 %v4538_v57, 0.0 }
0x1415   :  { %v4429_v8 = vadd.f32 %v4428_v2, %v8492_v60  ;;  %v4542_v15 = vadd.f32 %v4541_v24, %v8494_v61  ;;  %4985 = vmatprep.mubr.bf16.mxu0 %v4635_v38  ;;  %5082 = vmatprep.mubr.bf16.mxu1 %v4637_v54  ;;  %v4603_v9 = vmax.f32 %v4427_v34, 0.0  ;;  %v4605_v3 = vmax.f32 %v4540_v48, 0.0 }
0x1416   :  { %v4430_v29 = vpop.f32.mrf.mxu0  ;;  %v4543_v13 = vpop.f32.mrf.mxu1  ;;  %4986 = vmatmul.mubr.bf16.gmra.mxu0 %v4634_v10  ;;  %5083 = vmatmul.mubr.bf16.gmra.mxu1 %v4636_v49 }
0x1417   :  { %v4431_v62 = vadd.f32 %v4430_v29, %v8488_v53  ;;  %v4544_v30 = vadd.f32 %v4543_v13, %v8490_v17  ;;  %v4606_v22 = vmax.f32 %v4429_v8, 0.0  ;;  %v4608_v25 = vmax.f32 %v4542_v15, 0.0  ;;  %v8563_v17 = vld [vmem:[%s8614_s11] ss:$0 sm:$0xff]  ;;  %s6709_s11 = smov [#allocation11]  }
0x1418   :  { %s5136_s23 = sshll.u32 %s6709_s11, 4  ;;  %s5137_s23 = int_to_ptr.vmem [resolvable:$true] %s5136_s23 }
0x1419   :  { %v4607_v37 = vmax.f32 %v4431_v62, 0.0  ;;  %v4609_v1 = vmax.f32 %v4544_v30, 0.0  ;;  %v4638_v35 = vpack.c.bf16 %v4606_v22, %v4602_v12  ;;  %v4640_v61 = vpack.c.bf16 %v4608_v25, %v4604_v19  ;;  %s6665_s24 = scalar_lea.vmem %s5137_s23, 2048  ;;  %p6670_p12 = scmp.lt.s32.totalorder %s5137_s23, %s5137_s23 }
0x141a   :  { %p6666_p11 = scmp.ne.s32.totalorder %s5137_s23, %s6665_s24  ;;  %p6671_p13 = scmp.lt.s32.totalorder %s6665_s24, %s6665_s24 }
0x141b   :  { %v4639_v46 = vpack.c.bf16 %v4607_v37, %v4603_v9  ;;  %v4641_v60 = vpack.c.bf16 %v4609_v1, %v4605_v3 }
0x141c   :  { %p6672_p0 = por %p6671_p13, %p6670_p12 }
0x141d   :  { %4993 = vmatprep.mubr.bf16.mxu0 %v4639_v46  ;;  %5090 = vmatprep.mubr.bf16.mxu1 %v4641_v60 }
0x141e   :  { %4994 = vmatmul.mubr.bf16.gmra.mxu0 %v4638_v35  ;;  %5091 = vmatmul.mubr.bf16.gmra.mxu1 %v4640_v61  ;;  %p6673_p1 = pnand %p6672_p0, %p6666_p11 }
0x1446   :  { %v5556_v0 = vpop.f32.mrf.mxu0  ;;  %v5620_v53 = vpop.f32.mrf.mxu1 }
0x1448   :  { %v5557_v28 = vpop.f32.mrf.mxu0  ;;  %v5621_v40 = vpop.f32.mrf.mxu1 }
0x1449   :  { %v5558_v59 = vadd.f32 %v5557_v28, %v5556_v0  ;;  %v5622_v52 = vadd.f32 %v5621_v40, %v5620_v53 }
0x144a   :  { %v5559_v31 = vpop.f32.mrf.mxu0  ;;  %v5623_v43 = vpop.f32.mrf.mxu1 }
0x144b   :  { %v4940_v32 = vadd.f32 %v5558_v59, %v8563_v17 }
0x144c   :  { %v5560_v33 = vpop.f32.mrf.mxu0  ;;  %v5624_v21 = vpop.f32.mrf.mxu1 }
0x144d   :  { %v5037_v6 = vadd.f32 %v5622_v52, %v4940_v32  ;;  %v5561_v45 = vadd.f32 %v5560_v33, %v5559_v31  ;;  %v5625_v55 = vadd.f32 %v5624_v21, %v5623_v43 }
0x144e   :  { %v5562_v39 = vpop.f32.mrf.mxu0  ;;  %v5626_v44 = vpop.f32.mrf.mxu1 }
0x144f   :  { %v5099_v20 = vadd.f32 %v5037_v6, %v8192_v4  ;;  %v4943_v42 = vadd.f32 %v5561_v45, %v8563_v17 }
0x1450   :  { %v5563_v27 = vpop.f32.mrf.mxu0  ;;  %v5627_v38 = vpop.f32.mrf.mxu1 }
0x1451   :  { %5115 = vst [vmem:[#allocation11] sm:$0xff] %v5099_v20  ;;  %v5040_v54 = vadd.f32 %v5625_v55, %v4943_v42  ;;  %v5564_v10 = vadd.f32 %v5563_v27, %v5562_v39  ;;  %v5628_v48 = vadd.f32 %v5627_v38, %v5626_v44 }
0x1452   :  { %v5565_v49 = vpop.f32.mrf.mxu0  ;;  %v5629_v34 = vpop.f32.mrf.mxu1 }
0x1453   :  { %v5100_v2 = vadd.f32 %v5040_v54, %v8231_v26  ;;  %v4948_v24 = vadd.f32 %v5564_v10, %v8563_v17 }
0x1454   :  { %v5566_v8 = vpop.f32.mrf.mxu0  ;;  %v5630_v15 = vpop.f32.mrf.mxu1 }
0x1455   :  { %5116 = vst [vmem:[#allocation11 + $0x8] sm:$0xff] %v5100_v2  ;;  %v5045_v23 = vadd.f32 %v5628_v48, %v4948_v24  ;;  %v5567_v4 = vadd.f32 %v5566_v8, %v5565_v49  ;;  %v5631_v30 = vadd.f32 %v5630_v15, %v5629_v34 }
0x1456   :  { %v5568_v57 = vpop.f32.mrf.mxu0  ;;  %v5632_v29 = vpop.f32.mrf.mxu1 }
0x1457   :  { %v5101_v13 = vadd.f32 %v5045_v23, %v8201_v51  ;;  %v4951_v62 = vadd.f32 %v5567_v4, %v8563_v17 }
0x1458   :  { %v5569_v22 = vpop.f32.mrf.mxu0  ;;  %v5633_v25 = vpop.f32.mrf.mxu1 }
0x1459   :  { %5117 = vst [vmem:[#allocation11 + $0x10] sm:$0xff] %v5101_v13  ;;  %v5048_v9 = vadd.f32 %v5631_v30, %v4951_v62  ;;  %v5570_v26 = vadd.f32 %v5569_v22, %v5568_v57  ;;  %v5634_v19 = vadd.f32 %v5633_v25, %v5632_v29 }
0x145a   :  { %v5571_v3 = vpop.f32.mrf.mxu0  ;;  %v5635_v37 = vpop.f32.mrf.mxu1 }
0x145b   :  { %v5102_v1 = vadd.f32 %v5048_v9, %v8208_v14  ;;  %v4956_v12 = vadd.f32 %v5570_v26, %v8563_v17 }
0x145c   :  { %v5572_v46 = vpop.f32.mrf.mxu0  ;;  %v5636_v60 = vpop.f32.mrf.mxu1 }
0x145d   :  { %5118 = vst [vmem:[#allocation11 + $0x18] sm:$0xff] %v5102_v1  ;;  %v5053_v35 = vadd.f32 %v5634_v19, %v4956_v12  ;;  %v5573_v51 = vadd.f32 %v5572_v46, %v5571_v3  ;;  %v5637_v40 = vadd.f32 %v5636_v60, %v5635_v37 }
0x145e   :  { %v5574_v61 = vpop.f32.mrf.mxu0  ;;  %v5638_v0 = vpop.f32.mrf.mxu1 }
0x145f   :  { %v5103_v53 = vadd.f32 %v5053_v35, %v8213_v11  ;;  %v4959_v28 = vadd.f32 %v5573_v51, %v8563_v17 }
0x1460   :  { %v5575_v59 = vpop.f32.mrf.mxu0  ;;  %v5639_v31 = vpop.f32.mrf.mxu1 }
0x1461   :  { %5119 = vst [vmem:[#allocation11 + $0x20] sm:$0xff] %v5103_v53  ;;  %v5056_v43 = vadd.f32 %v5637_v40, %v4959_v28  ;;  %v5576_v14 = vadd.f32 %v5575_v59, %v5574_v61  ;;  %v5640_v6 = vadd.f32 %v5639_v31, %v5638_v0 }
0x1462   :  { %v5577_v32 = vpop.f32.mrf.mxu0  ;;  %v5641_v52 = vpop.f32.mrf.mxu1 }
0x1463   :  { %v5104_v33 = vadd.f32 %v5056_v43, %v8236_v18  ;;  %v4964_v21 = vadd.f32 %v5576_v14, %v8563_v17 }
0x1464   :  { %v5578_v45 = vpop.f32.mrf.mxu0  ;;  %v5642_v39 = vpop.f32.mrf.mxu1 }
0x1465   :  { %5120 = vst [vmem:[#allocation11 + $0x28] sm:$0xff] %v5104_v33  ;;  %v5061_v44 = vadd.f32 %v5640_v6, %v4964_v21  ;;  %v5579_v11 = vadd.f32 %v5578_v45, %v5577_v32  ;;  %v5643_v55 = vadd.f32 %v5642_v39, %v5641_v52 }
0x1467   :  { %v5105_v20 = vadd.f32 %v5061_v44, %v8217_v63  ;;  %v4967_v42 = vadd.f32 %v5579_v11, %v8563_v17 }
0x1469   :  { %5121 = vst [vmem:[#allocation11 + $0x30] sm:$0xff] %v5105_v20  ;;  %v5064_v27 = vadd.f32 %v5643_v55, %v4967_v42 }
0x146b   :  { %v5106_v38 = vadd.f32 %v5064_v27, %v8240_v41 }
0x146d   :  { %5122 = vst [vmem:[#allocation11 + $0x38] sm:$0xff] %v5106_v38 }
0x14c6   :  { %v5580_v54 = vpop.f32.mrf.mxu0  ;;  %v5644_v18 = vpop.f32.mrf.mxu1 }
0x14c8   :  { %v5581_v10 = vpop.f32.mrf.mxu0  ;;  %v5645_v49 = vpop.f32.mrf.mxu1 }
0x14c9   :  { %v5582_v34 = vadd.f32 %v5581_v10, %v5580_v54  ;;  %v5646_v8 = vadd.f32 %v5645_v49, %v5644_v18 }
0x14ca   :  { %v5583_v2 = vpop.f32.mrf.mxu0  ;;  %v5647_v24 = vpop.f32.mrf.mxu1 }
0x14cb   :  { %v4972_v48 = vadd.f32 %v5582_v34, %v8563_v17 }
0x14cc   :  { %v5584_v15 = vpop.f32.mrf.mxu0  ;;  %v5648_v63 = vpop.f32.mrf.mxu1 }
0x14cd   :  { %v5069_v23 = vadd.f32 %v5646_v8, %v4972_v48  ;;  %v5585_v4 = vadd.f32 %v5584_v15, %v5583_v2  ;;  %v5649_v62 = vadd.f32 %v5648_v63, %v5647_v24 }
0x14ce   :  { %v5586_v57 = vpop.f32.mrf.mxu0  ;;  %v5650_v29 = vpop.f32.mrf.mxu1 }
0x14cf   :  { %v5107_v13 = vadd.f32 %v5069_v23, %v8298_v16  ;;  %v4975_v41 = vadd.f32 %v5585_v4, %v8563_v17 }
0x14d0   :  { %v5587_v30 = vpop.f32.mrf.mxu0  ;;  %v5651_v22 = vpop.f32.mrf.mxu1 }
0x14d1   :  { %5123 = vst [vmem:[#allocation11 + $0x40] sm:$0xff] %v5107_v13  ;;  %v5072_v25 = vadd.f32 %v5649_v62, %v4975_v41  ;;  %v5588_v9 = vadd.f32 %v5587_v30, %v5586_v57  ;;  %v5652_v12 = vadd.f32 %v5651_v22, %v5650_v29 }
0x14d2   :  { %v5589_v26 = vpop.f32.mrf.mxu0  ;;  %v5653_v3 = vpop.f32.mrf.mxu1 }
0x14d3   :  { %v5108_v37 = vadd.f32 %v5072_v25, %v8305_v36  ;;  %v4980_v1 = vadd.f32 %v5588_v9, %v8563_v17 }
0x14d4   :  { %v5590_v19 = vpop.f32.mrf.mxu0  ;;  %v5654_v46 = vpop.f32.mrf.mxu1 }
0x14d5   :  { %5124 = vst [vmem:[#allocation11 + $0x48] sm:$0xff] %v5108_v37  ;;  %v5077_v60 = vadd.f32 %v5652_v12, %v4980_v1  ;;  %v5591_v16 = vadd.f32 %v5590_v19, %v5589_v26  ;;  %v5655_v53 = vadd.f32 %v5654_v46, %v5653_v3 }
0x14d6   :  { %v5592_v35 = vpop.f32.mrf.mxu0  ;;  %v5656_v51 = vpop.f32.mrf.mxu1 }
0x14d7   :  { %v5109_v61 = vadd.f32 %v5077_v60, %v8302_v47  ;;  %v4983_v0 = vadd.f32 %v5591_v16, %v8563_v17 }
0x14d8   :  { %v5593_v28 = vpop.f32.mrf.mxu0  ;;  %v5657_v40 = vpop.f32.mrf.mxu1 }
0x14d9   :  { %5125 = vst [vmem:[#allocation11 + $0x50] sm:$0xff] %v5109_v61  ;;  %v5080_v59 = vadd.f32 %v5655_v53, %v4983_v0  ;;  %v5594_v36 = vadd.f32 %v5593_v28, %v5592_v35  ;;  %v5658_v52 = vadd.f32 %v5657_v40, %v5656_v51 }
0x14da   :  { %v5595_v31 = vpop.f32.mrf.mxu0  ;;  %v5659_v43 = vpop.f32.mrf.mxu1 }
0x14db   :  { %v5110_v14 = vadd.f32 %v5080_v59, %v8310_v58  ;;  %v4988_v32 = vadd.f32 %v5594_v36, %v8563_v17 }
0x14dc   :  { %v5596_v33 = vpop.f32.mrf.mxu0  ;;  %v5660_v21 = vpop.f32.mrf.mxu1 }
0x14dd   :  { %5126 = vst [vmem:[#allocation11 + $0x58] sm:$0xff] %v5110_v14  ;;  %v5085_v6 = vadd.f32 %v5658_v52, %v4988_v32  ;;  %v5597_v47 = vadd.f32 %v5596_v33, %v5595_v31  ;;  %v5661_v20 = vadd.f32 %v5660_v21, %v5659_v43 }
0x14de   :  { %v5598_v45 = vpop.f32.mrf.mxu0  ;;  %v5662_v39 = vpop.f32.mrf.mxu1 }
0x14df   :  { %v5111_v44 = vadd.f32 %v5085_v6, %v8313_v56  ;;  %v4991_v11 = vadd.f32 %v5597_v47, %v8563_v17 }
0x14e0   :  { %v5599_v42 = vpop.f32.mrf.mxu0  ;;  %v5663_v55 = vpop.f32.mrf.mxu1 }
0x14e1   :  { %5127 = vst [vmem:[#allocation11 + $0x60] sm:$0xff] %v5111_v44  ;;  %v5088_v27 = vadd.f32 %v5661_v20, %v4991_v11  ;;  %v5600_v58 = vadd.f32 %v5599_v42, %v5598_v45  ;;  %v5664_v49 = vadd.f32 %v5663_v55, %v5662_v39 }
0x14e2   :  { %v5601_v38 = vpop.f32.mrf.mxu0  ;;  %v5665_v54 = vpop.f32.mrf.mxu1 }
0x14e3   :  { %v5112_v18 = vadd.f32 %v5088_v27, %v8324_v50  ;;  %v4996_v10 = vadd.f32 %v5600_v58, %v8563_v17 }
0x14e4   :  { %v5602_v34 = vpop.f32.mrf.mxu0  ;;  %v5666_v2 = vpop.f32.mrf.mxu1 }
0x14e5   :  { %5128 = vst [vmem:[#allocation11 + $0x68] sm:$0xff] %v5112_v18  ;;  %v5093_v24 = vadd.f32 %v5664_v49, %v4996_v10  ;;  %v5603_v56 = vadd.f32 %v5602_v34, %v5601_v38  ;;  %v5667_v15 = vadd.f32 %v5666_v2, %v5665_v54 }
0x14e7   :  { %v5113_v48 = vadd.f32 %v5093_v24, %v8321_v5  ;;  %v4999_v8 = vadd.f32 %v5603_v56, %v8563_v17 }
0x14e9   :  { %5129 = vst [vmem:[#allocation11 + $0x70] sm:$0xff] %v5113_v48  ;;  %v5096_v63 = vadd.f32 %v5667_v15, %v4999_v8 }
0x14eb   :  { %v5114_v23 = vadd.f32 %v5096_v63, %v8335_v7 }
0x14ed   :  { %5130 = vst [vmem:[#allocation11 + $0x78] sm:$0xff] %v5114_v23 }
0x14ee   :  { %6676 = shalt.err (!%p6673_p1)
}
0x14ef   :  { %5142 = dma.vmem_to_hbm [thread:$0]  %s5137_s23, 2048, %s8615_s12, [#allocation4], %s6700_s19, %s6700_s19, %s6701_s20  }
0x14f0   :  { %6691 = dma.done.wait [#allocation4], 2048  }
0x14f1   :  { %6692 = vsyncadd [#allocation4], 4294965248 }
0x14f2   :  { %5146 = vsyncpa [#allocation3], 1 }
0x14f3   :  { %5147 = vsyncpa [#allocation6], 1 }
0x14f4   :  { %5148 = vsyncpa [#allocation9], 1 }
0x14f5   :  { %5149 = vsyncpa [#allocation4], 1 }

</bundles_post_ra>
